<compile_context>
chip_gen: v6e
topology: v6e:2x2x1
jax: 0.10.0
libtpu: 0.0.40
codegen_flags: <defaults>
</compile_context>

<pallas_src>
import jax
import jax.numpy as jnp
from jax import lax
from jax.experimental import pallas as pl
from jax.experimental.pallas import tpu as pltpu

H = W = 16                  # image_dim
NPIX = H * W                # 256 pixels -> 2 full lane tiles
NUM_BINS = 5                # event voxel bins
CH = 32                     # hidden channels
HEAD = 3                    # 1 image channel + 2 flow channels
HEADP = 8                   # head padded to a full sublane tile
KVOX = 9 * NUM_BINS         # 45 im2col rows for the voxel channels
KPAD = 48                   # padded to a multiple of 8 (sublane aligned)
KTAP = 16                   # 9 prev-image taps padded to 16 (MXU contraction)


# --------------------------------------------------------------------------
# Fused recurrent kernel: voxel conv + prev-image conv + heads, TB frames
# per grid step, prev_image carried in VMEM scratch across the whole run.
# --------------------------------------------------------------------------
def fused_frames_kernel(xcol_ref, mask_ref, w1v_ref, b1_ref, w1p_ref,
                        wh_ref, bh_ref, out_ref, prev_ref, taps_ref):
    @pl.when(pl.program_id(0) == 0)
    def _():
        # prev_image starts as zeros (torch.zeros([1,1,H,W])); tap rows 9..15
        # stay zero for the whole run (only rows 0..8 are rewritten below).
        prev_ref[...] = jnp.zeros((1, NPIX), jnp.float32)
        taps_ref[...] = jnp.zeros((KTAP, NPIX), jnp.float32)

    nt = out_ref.shape[0]                      # frames in this block (static)
    # hoisted row-0 selector (image row gets sigmoid, flow rows pass through)
    row0 = lax.broadcasted_iota(jnp.int32, (HEADP, NPIX), 0) == 0

    def frame_body(i, carry):
        # --- non-recurrent voxel conv: (CH, KPAD) @ (KPAD, NPIX) + bias ----
        feat = (jnp.dot(w1v_ref[...], xcol_ref[i],
                        preferred_element_type=jnp.float32) + b1_ref[...])

        # --- recurrent prev-image 3x3 conv on the MXU --------------------
        prev = prev_ref[...]                                  # (1, NPIX)
        for tap in range(9):                                  # static unroll
            ky, kx = tap // 3, tap % 3
            off = (ky - 1) * W + (kx - 1)                     # flattened shift
            if off == 0:
                shifted = prev
            else:
                shifted = pltpu.roll(prev, shift=(-off) % NPIX, axis=1)
            # zero-padding mask, stored into the (KTAP, NPIX) tap tile
            taps_ref[tap:tap + 1, :] = shifted * mask_ref[tap:tap + 1, :]
        feat = feat + jnp.dot(w1p_ref[...], taps_ref[...],
                              preferred_element_type=jnp.float32)
        feat = jnp.maximum(feat, 0.0)                         # ReLU

        # --- fused 1x1 heads: row 0 image (sigmoid), rows 1:3 flow --------
        head = (jnp.dot(wh_ref[...], feat,
                        preferred_element_type=jnp.float32) + bh_ref[...])
        pred = jax.nn.sigmoid(head[0:1, :])                   # EUP on 1 row
        out = jnp.where(row0, jnp.broadcast_to(pred, (HEADP, NPIX)), head)
        out_ref[i] = out                                      # (8, 256) store

        prev_ref[...] = pred                                  # carry forward
        return carry

    lax.fori_loop(0, nt, frame_body, 0, unroll=True)


def reconstruct_frames(xcol, masks, w1v, b1, w1p16, wh, bh, tb):
    T = xcol.shape[0]
    assert T % tb == 0
    return pl.pallas_call(
        fused_frames_kernel,
        out_shape=jax.ShapeDtypeStruct((T, HEADP, NPIX), jnp.float32),
        grid_spec=pltpu.PrefetchScalarGridSpec(
            num_scalar_prefetch=0,
            grid=(T // tb,),
            in_specs=[
                pl.BlockSpec((tb, KPAD, NPIX), lambda t: (t, 0, 0)),  # im2col
                pl.BlockSpec((9, NPIX), lambda t: (0, 0)),            # tap masks
                pl.BlockSpec((CH, KPAD), lambda t: (0, 0)),           # voxel w
                pl.BlockSpec((CH, 1), lambda t: (0, 0)),              # bias
                pl.BlockSpec((CH, KTAP), lambda t: (0, 0)),           # prev-tap w
                pl.BlockSpec((HEADP, CH), lambda t: (0, 0)),          # head w
                pl.BlockSpec((HEADP, 1), lambda t: (0, 0)),           # head b
            ],
            out_specs=pl.BlockSpec((tb, HEADP, NPIX), lambda t: (t, 0, 0)),
            scratch_shapes=[
                pltpu.VMEM((1, NPIX), jnp.float32),     # recurrent prev image
                pltpu.VMEM((KTAP, NPIX), jnp.float32),  # masked rolled taps
            ],
        ),
        compiler_params=pltpu.CompilerParams(
            # frame axis is a true recurrence -> must stay sequential
            dimension_semantics=("arbitrary",)),
    )(xcol, masks, w1v, b1, w1p16, wh, bh)


# --------------------------------------------------------------------------
# Plain-JAX glue
# --------------------------------------------------------------------------
def voxel_im2col(event_voxels):
    """(T, NUM_BINS, H, W) -> (T, KPAD, NPIX); rows are tap-major / bin-minor,
    zero-padded rows [KVOX:KPAD] keep the contraction dim sublane-aligned."""
    T = event_voxels.shape[0]
    evp = jnp.pad(event_voxels, ((0, 0), (0, 0), (1, 1), (1, 1)))
    taps = [evp[:, :, ky:ky + H, kx:kx + W]
            for ky in range(3) for kx in range(3)]
    x = jnp.stack(taps, axis=1).reshape(T, KVOX, NPIX)
    return jnp.pad(x, ((0, 0), (0, KPAD - KVOX), (0, 0)))


def make_tap_masks():
    """(9, NPIX) validity masks implementing the zero padding of the 3x3 conv
    on the flattened (lane-rolled) prev image."""
    ys = jnp.arange(H)[:, None]
    xs = jnp.arange(W)[None, :]
    rows = []
    for ky in range(3):
        for kx in range(3):
            dy, dx = ky - 1, kx - 1
            valid = ((xs + dx >= 0) & (xs + dx < W) &
                     (ys + dy >= 0) & (ys + dy < H))
            rows.append(valid.reshape(NPIX))
    return jnp.stack(rows, axis=0).astype(jnp.float32)


def _pick_tb(T, cap=16):
    """Largest divisor of T not exceeding `cap` (frames per grid block)."""
    return max(d for d in range(1, min(T, cap) + 1) if T % d == 0)


@jax.jit
def reconstructor_forward(event_voxels, gt_frames, params):
    """Mirrors the recurrent per-frame loop in Reconstructor.forward():
    prev_image starts at zeros; each step consumes (event_voxel, prev_image),
    produces (pred_image, flow), prev_image <- pred_image, and a per-frame
    MSE reconstruction metric is computed against the ground-truth frame."""
    w1v, w1p16, b1, wh, bh = params
    T = event_voxels.shape[0]
    tb = _pick_tb(T)

    xcol = voxel_im2col(event_voxels)                    # (T, KPAD, NPIX)
    masks = make_tap_masks()                             # (9, NPIX)
    head = reconstruct_frames(xcol, masks, w1v, b1, w1p16, wh, bh, tb)

    preds = head[:, 0, :].reshape(T, H, W)
    flows = jnp.moveaxis(head[:, 1:1 + 2, :].reshape(T, 2, H, W), 1, -1)
    # per-frame reconstruction metric (MSE vs. ground truth), wrapper-side
    mses = jnp.mean((head[:, 0, :] - gt_frames.reshape(T, NPIX)) ** 2, axis=1)
    return preds, flows, mses


def make_params(key):
    k1, k2, k3, k4, k5 = jax.random.split(key, 5)
    w1v = jax.random.normal(k1, (CH, KVOX), jnp.float32) * 0.1
    w1v = jnp.pad(w1v, ((0, 0), (0, KPAD - KVOX)))           # (CH, KPAD)
    w1p = jax.random.normal(k2, (CH, 9), jnp.float32) * 0.1   # prev-image taps
    w1p16 = jnp.pad(w1p, ((0, 0), (0, KTAP - 9)))             # (CH, KTAP)
    b1 = jax.random.normal(k3, (CH, 1), jnp.float32) * 0.01
    wh = jax.random.normal(k4, (HEAD, CH), jnp.float32) * 0.1
    wh = jnp.pad(wh, ((0, HEADP - HEAD), (0, 0)))             # (HEADP, CH)
    bh = jax.random.normal(k5, (HEAD, 1), jnp.float32) * 0.01
    bh = jnp.pad(bh, ((0, HEADP - HEAD), (0, 0)))             # (HEADP, 1)
    return w1v, w1p16, b1, wh, bh


if __name__ == "__main__":
    key = jax.random.PRNGKey(0)
    kp, ke, kg = jax.random.split(key, 3)
    params = make_params(kp)

    T = 8  # frames in the synthetic sequence
    event_voxels = jax.random.normal(ke, (T, NUM_BINS, H, W), jnp.float32)
    gt_frames = jax.random.uniform(kg, (T, H, W), jnp.float32)

    preds, flows, mses = reconstructor_forward(event_voxels, gt_frames, params)
    jax.block_until_ready((preds, flows, mses))

    assert preds.shape == (T, H, W)
    assert flows.shape == (T, H, W, 2)
    assert mses.shape == (T,)
    assert bool(jnp.all(jnp.isfinite(preds)))
    assert bool(jnp.all(jnp.isfinite(flows)))
    assert bool(jnp.all(jnp.isfinite(mses)))
    print("KERNEL_OK")
</pallas_src>

<mosaic_0001>
module attributes {stable_mosaic.version = 11 : i64} {
  func.func @fused_frames_kernel(%arg0: i32, %arg1: memref<8x48x256xf32, #tpu.memory_space<vmem>>, %arg2: memref<9x256xf32, #tpu.memory_space<vmem>>, %arg3: memref<32x48xf32, #tpu.memory_space<vmem>>, %arg4: memref<32x1xf32, #tpu.memory_space<vmem>>, %arg5: memref<32x16xf32, #tpu.memory_space<vmem>>, %arg6: memref<8x32xf32, #tpu.memory_space<vmem>>, %arg7: memref<8x1xf32, #tpu.memory_space<vmem>>, %arg8: memref<8x8x256xf32, #tpu.memory_space<vmem>>, %arg9: memref<1x256xf32, #tpu.memory_space<vmem>>, %arg10: memref<16x256xf32, #tpu.memory_space<vmem>>) attributes {dimension_semantics = [#tpu.dimension_semantics<arbitrary>], iteration_bounds = array<i64: 1>, scalar_prefetch = 0 : i64, scratch_operands = 2 : i64, tpu.core_type = #tpu.core_type<tc>, window_params = [{transform_indices = @transform_0, window_bounds = array<i64: 8, 48, 256>}, {pipeline_mode = #tpu.pipeline_mode<synchronous>, transform_indices = @transform_1, window_bounds = array<i64: 9, 256>}, {pipeline_mode = #tpu.pipeline_mode<synchronous>, transform_indices = @transform_2, window_bounds = array<i64: 32, 48>}, {pipeline_mode = #tpu.pipeline_mode<synchronous>, transform_indices = @transform_3, window_bounds = array<i64: 32, 1>}, {pipeline_mode = #tpu.pipeline_mode<synchronous>, transform_indices = @transform_4, window_bounds = array<i64: 32, 16>}, {pipeline_mode = #tpu.pipeline_mode<synchronous>, transform_indices = @transform_5, window_bounds = array<i64: 8, 32>}, {pipeline_mode = #tpu.pipeline_mode<synchronous>, transform_indices = @transform_6, window_bounds = array<i64: 8, 1>}, {transform_indices = @transform_7, window_bounds = array<i64: 8, 8, 256>}]} {
    %c0_i32 = arith.constant 0 : i32
    %0 = arith.cmpi eq, %arg0, %c0_i32 : i32
    %1 = arith.extui %0 : i1 to i32
    %c0_i32_0 = arith.constant 0 : i32
    %2 = arith.cmpi ne, %1, %c0_i32_0 : i32
    scf.if %2 {
      %cst_538 = arith.constant 0.000000e+00 : f32
      %558 = vector.broadcast %cst_538 : f32 to vector<1x256xf32>
      %c0_539 = arith.constant 0 : index
      %c0_540 = arith.constant 0 : index
      %559 = vector.load %arg9[%c0_539, %c0_540] : memref<1x256xf32, #tpu.memory_space<vmem>>, vector<1x256xf32>
      tpu.vector_store %arg9[%c0_539, %c0_540], %558 {strides = array<i32>} : memref<1x256xf32, #tpu.memory_space<vmem>>, vector<1x256xf32>,
      %cst_541 = arith.constant 0.000000e+00 : f32
      %560 = vector.broadcast %cst_541 : f32 to vector<16x256xf32>
      %c0_542 = arith.constant 0 : index
      %c0_543 = arith.constant 0 : index
      %561 = vector.load %arg10[%c0_542, %c0_543] : memref<16x256xf32, #tpu.memory_space<vmem>>, vector<16x256xf32>
      tpu.vector_store %arg10[%c0_542, %c0_543], %560 {strides = array<i32>} : memref<16x256xf32, #tpu.memory_space<vmem>>, vector<16x256xf32>,
    } else {
    }
    %3 = tpu.iota {dimensions = array<i32: 0>} : vector<8x256xi32>
    %c0_i32_1 = arith.constant 0 : i32
    %4 = vector.broadcast %c0_i32_1 : i32 to vector<8x256xi32>
    %5 = arith.cmpi eq, %3, %4 : vector<8x256xi32>
    %c0_i32_2 = arith.constant 0 : i32
    %c0 = arith.constant 0 : index
    %c0_3 = arith.constant 0 : index
    %6 = vector.load %arg3[%c0, %c0_3] : memref<32x48xf32, #tpu.memory_space<vmem>>, vector<32x48xf32>
    %7 = arith.index_cast %c0_i32_2 : i32 to index
    %c0_4 = arith.constant 0 : index
    %c0_5 = arith.constant 0 : index
    %8 = vector.load %arg1[%7, %c0_4, %c0_5] : memref<8x48x256xf32, #tpu.memory_space<vmem>>, vector<1x48x256xf32>
    %9 = vector.shape_cast %8 : vector<1x48x256xf32> to vector<48x256xf32>
    %cst = arith.constant dense<0.000000e+00> : vector<32x256xf32>
    %10 = tpu.matmul %6, %9, %cst {dimension_numbers = #tpu.dot_dimension_numbers<[1], [0], [0], [1], [0, 0, 1, 1], [], []>} : vector<32x48xf32>, vector<48x256xf32>, vector<32x256xf32> -> vector<32x256xf32>
    %c0_6 = arith.constant 0 : index
    %c0_7 = arith.constant 0 : index
    %11 = vector.load %arg4[%c0_6, %c0_7] : memref<32x1xf32, #tpu.memory_space<vmem>>, vector<32x1xf32>
    %12 = vector.broadcast %11 : vector<32x1xf32> to vector<32x256xf32>
    %13 = arith.addf %10, %12 : vector<32x256xf32>
    %c0_8 = arith.constant 0 : index
    %c0_9 = arith.constant 0 : index
    %14 = vector.load %arg9[%c0_8, %c0_9] : memref<1x256xf32, #tpu.memory_space<vmem>>, vector<1x256xf32>
    %c17_i32 = arith.constant 17 : i32
    %15 = tpu.dynamic_rotate %14 by %c17_i32 dim 1 : vector<1x256xf32>, i32 -> vector<1x256xf32>
    %c0_10 = arith.constant 0 : index
    %c0_11 = arith.constant 0 : index
    %16 = vector.load %arg2[%c0_10, %c0_11] : memref<9x256xf32, #tpu.memory_space<vmem>>, vector<1x256xf32>
    %17 = arith.mulf %15, %16 : vector<1x256xf32>
    %c0_12 = arith.constant 0 : index
    %c0_13 = arith.constant 0 : index
    %18 = vector.load %arg10[%c0_12, %c0_13] : memref<16x256xf32, #tpu.memory_space<vmem>>, vector<1x256xf32>
    tpu.vector_store %arg10[%c0_12, %c0_13], %17 {strides = array<i32>} : memref<16x256xf32, #tpu.memory_space<vmem>>, vector<1x256xf32>,
    %c16_i32 = arith.constant 16 : i32
    %19 = tpu.dynamic_rotate %14 by %c16_i32 dim 1 : vector<1x256xf32>, i32 -> vector<1x256xf32>
    %c1 = arith.constant 1 : index
    %c0_14 = arith.constant 0 : index
    %20 = vector.load %arg2[%c1, %c0_14] : memref<9x256xf32, #tpu.memory_space<vmem>>, vector<1x256xf32>
    %21 = arith.mulf %19, %20 : vector<1x256xf32>
    %c1_15 = arith.constant 1 : index
    %c0_16 = arith.constant 0 : index
    %22 = vector.load %arg10[%c1_15, %c0_16] : memref<16x256xf32, #tpu.memory_space<vmem>>, vector<1x256xf32>
    tpu.vector_store %arg10[%c1_15, %c0_16], %21 {strides = array<i32>} : memref<16x256xf32, #tpu.memory_space<vmem>>, vector<1x256xf32>,
    %c15_i32 = arith.constant 15 : i32
    %23 = tpu.dynamic_rotate %14 by %c15_i32 dim 1 : vector<1x256xf32>, i32 -> vector<1x256xf32>
    %c2 = arith.constant 2 : index
    %c0_17 = arith.constant 0 : index
    %24 = vector.load %arg2[%c2, %c0_17] : memref<9x256xf32, #tpu.memory_space<vmem>>, vector<1x256xf32>
    %25 = arith.mulf %23, %24 : vector<1x256xf32>
    %c2_18 = arith.constant 2 : index
    %c0_19 = arith.constant 0 : index
    %26 = vector.load %arg10[%c2_18, %c0_19] : memref<16x256xf32, #tpu.memory_space<vmem>>, vector<1x256xf32>
    tpu.vector_store %arg10[%c2_18, %c0_19], %25 {strides = array<i32>} : memref<16x256xf32, #tpu.memory_space<vmem>>, vector<1x256xf32>,
    %c1_i32 = arith.constant 1 : i32
    %27 = tpu.dynamic_rotate %14 by %c1_i32 dim 1 : vector<1x256xf32>, i32 -> vector<1x256xf32>
    %c3 = arith.constant 3 : index
    %c0_20 = arith.constant 0 : index
    %28 = vector.load %arg2[%c3, %c0_20] : memref<9x256xf32, #tpu.memory_space<vmem>>, vector<1x256xf32>
    %29 = arith.mulf %27, %28 : vector<1x256xf32>
    %c3_21 = arith.constant 3 : index
    %c0_22 = arith.constant 0 : index
    %30 = vector.load %arg10[%c3_21, %c0_22] : memref<16x256xf32, #tpu.memory_space<vmem>>, vector<1x256xf32>
    tpu.vector_store %arg10[%c3_21, %c0_22], %29 {strides = array<i32>} : memref<16x256xf32, #tpu.memory_space<vmem>>, vector<1x256xf32>,
    %c4 = arith.constant 4 : index
    %c0_23 = arith.constant 0 : index
    %31 = vector.load %arg2[%c4, %c0_23] : memref<9x256xf32, #tpu.memory_space<vmem>>, vector<1x256xf32>
    %32 = arith.mulf %14, %31 : vector<1x256xf32>
    %c4_24 = arith.constant 4 : index
    %c0_25 = arith.constant 0 : index
    %33 = vector.load %arg10[%c4_24, %c0_25] : memref<16x256xf32, #tpu.memory_space<vmem>>, vector<1x256xf32>
    tpu.vector_store %arg10[%c4_24, %c0_25], %32 {strides = array<i32>} : memref<16x256xf32, #tpu.memory_space<vmem>>, vector<1x256xf32>,
    %c255_i32 = arith.constant 255 : i32
    %34 = tpu.dynamic_rotate %14 by %c255_i32 dim 1 : vector<1x256xf32>, i32 -> vector<1x256xf32>
    %c5 = arith.constant 5 : index
    %c0_26 = arith.constant 0 : index
    %35 = vector.load %arg2[%c5, %c0_26] : memref<9x256xf32, #tpu.memory_space<vmem>>, vector<1x256xf32>
    %36 = arith.mulf %34, %35 : vector<1x256xf32>
    %c5_27 = arith.constant 5 : index
    %c0_28 = arith.constant 0 : index
    %37 = vector.load %arg10[%c5_27, %c0_28] : memref<16x256xf32, #tpu.memory_space<vmem>>, vector<1x256xf32>
    tpu.vector_store %arg10[%c5_27, %c0_28], %36 {strides = array<i32>} : memref<16x256xf32, #tpu.memory_space<vmem>>, vector<1x256xf32>,
    %c241_i32 = arith.constant 241 : i32
    %38 = tpu.dynamic_rotate %14 by %c241_i32 dim 1 : vector<1x256xf32>, i32 -> vector<1x256xf32>
    %c6 = arith.constant 6 : index
    %c0_29 = arith.constant 0 : index
    %39 = vector.load %arg2[%c6, %c0_29] : memref<9x256xf32, #tpu.memory_space<vmem>>, vector<1x256xf32>
    %40 = arith.mulf %38, %39 : vector<1x256xf32>
    %c6_30 = arith.constant 6 : index
    %c0_31 = arith.constant 0 : index
    %41 = vector.load %arg10[%c6_30, %c0_31] : memref<16x256xf32, #tpu.memory_space<vmem>>, vector<1x256xf32>
    tpu.vector_store %arg10[%c6_30, %c0_31], %40 {strides = array<i32>} : memref<16x256xf32, #tpu.memory_space<vmem>>, vector<1x256xf32>,
    %c240_i32 = arith.constant 240 : i32
    %42 = tpu.dynamic_rotate %14 by %c240_i32 dim 1 : vector<1x256xf32>, i32 -> vector<1x256xf32>
    %c7 = arith.constant 7 : index
    %c0_32 = arith.constant 0 : index
    %43 = vector.load %arg2[%c7, %c0_32] : memref<9x256xf32, #tpu.memory_space<vmem>>, vector<1x256xf32>
    %44 = arith.mulf %42, %43 : vector<1x256xf32>
    %c7_33 = arith.constant 7 : index
    %c0_34 = arith.constant 0 : index
    %45 = vector.load %arg10[%c7_33, %c0_34] : memref<16x256xf32, #tpu.memory_space<vmem>>, vector<1x256xf32>
    tpu.vector_store %arg10[%c7_33, %c0_34], %44 {strides = array<i32>} : memref<16x256xf32, #tpu.memory_space<vmem>>, vector<1x256xf32>,
    %c239_i32 = arith.constant 239 : i32
    %46 = tpu.dynamic_rotate %14 by %c239_i32 dim 1 : vector<1x256xf32>, i32 -> vector<1x256xf32>
    %c8 = arith.constant 8 : index
    %c0_35 = arith.constant 0 : index
    %47 = vector.load %arg2[%c8, %c0_35] : memref<9x256xf32, #tpu.memory_space<vmem>>, vector<1x256xf32>
    %48 = arith.mulf %46, %47 : vector<1x256xf32>
    %c8_36 = arith.constant 8 : index
    %c0_37 = arith.constant 0 : index
    %49 = vector.load %arg10[%c8_36, %c0_37] : memref<16x256xf32, #tpu.memory_space<vmem>>, vector<1x256xf32>
    tpu.vector_store %arg10[%c8_36, %c0_37], %48 {strides = array<i32>} : memref<16x256xf32, #tpu.memory_space<vmem>>, vector<1x256xf32>,
    %c0_38 = arith.constant 0 : index
    %c0_39 = arith.constant 0 : index
    %50 = vector.load %arg5[%c0_38, %c0_39] : memref<32x16xf32, #tpu.memory_space<vmem>>, vector<32x16xf32>
    %c0_40 = arith.constant 0 : index
    %c0_41 = arith.constant 0 : index
    %51 = vector.load %arg10[%c0_40, %c0_41] : memref<16x256xf32, #tpu.memory_space<vmem>>, vector<16x256xf32>
    %cst_42 = arith.constant dense<0.000000e+00> : vector<32x256xf32>
    %52 = tpu.matmul %50, %51, %cst_42 {dimension_numbers = #tpu.dot_dimension_numbers<[1], [0], [0], [1], [0, 0, 1, 1], [], []>} : vector<32x16xf32>, vector<16x256xf32>, vector<32x256xf32> -> vector<32x256xf32>
    %53 = arith.addf %13, %52 : vector<32x256xf32>
    %cst_43 = arith.constant 0.000000e+00 : f32
    %54 = vector.broadcast %cst_43 : f32 to vector<32x256xf32>
    %55 = arith.maximumf %53, %54 : vector<32x256xf32>
    %c0_44 = arith.constant 0 : index
    %c0_45 = arith.constant 0 : index
    %56 = vector.load %arg6[%c0_44, %c0_45] : memref<8x32xf32, #tpu.memory_space<vmem>>, vector<8x32xf32>
    %cst_46 = arith.constant dense<0.000000e+00> : vector<8x256xf32>
    %57 = tpu.matmul %56, %55, %cst_46 {dimension_numbers = #tpu.dot_dimension_numbers<[1], [0], [0], [1], [0, 0, 1, 1], [], []>} : vector<8x32xf32>, vector<32x256xf32>, vector<8x256xf32> -> vector<8x256xf32>
    %c0_47 = arith.constant 0 : index
    %c0_48 = arith.constant 0 : index
    %58 = vector.load %arg7[%c0_47, %c0_48] : memref<8x1xf32, #tpu.memory_space<vmem>>, vector<8x1xf32>
    %59 = vector.broadcast %58 : vector<8x1xf32> to vector<8x256xf32>
    %60 = arith.addf %57, %59 : vector<8x256xf32>
    %61 = vector.extract_strided_slice %60 {offsets = [0, 0], sizes = [1, 256], strides = [1, 1]} : vector<8x256xf32> to vector<1x256xf32>
    %62 = arith.negf %61 : vector<1x256xf32>
    %63 = math.exp %62 : vector<1x256xf32>
    %cst_49 = arith.constant 1.000000e+00 : f32
    %64 = vector.broadcast %cst_49 : f32 to vector<1x256xf32>
    %65 = arith.addf %64, %63 : vector<1x256xf32>
    %66 = arith.divf %64, %65 : vector<1x256xf32>
    %67 = vector.shape_cast %66 : vector<1x256xf32> to vector<1x256xf32>
    %68 = vector.broadcast %67 : vector<1x256xf32> to vector<8x256xf32>
    %69 = arith.select %5, %68, %60 : vector<8x256xi1>, vector<8x256xf32>
    %70 = arith.index_cast %c0_i32_2 : i32 to index
    %c0_50 = arith.constant 0 : index
    %c0_51 = arith.constant 0 : index
    %71 = vector.load %arg8[%70, %c0_50, %c0_51] : memref<8x8x256xf32, #tpu.memory_space<vmem>>, vector<1x8x256xf32>
    %72 = vector.shape_cast %71 : vector<1x8x256xf32> to vector<8x256xf32>
    %73 = vector.shape_cast %69 : vector<8x256xf32> to vector<1x8x256xf32>
    tpu.vector_store %arg8[%70, %c0_50, %c0_51], %73 {strides = array<i32>} : memref<8x8x256xf32, #tpu.memory_space<vmem>>, vector<1x8x256xf32>,
    %c0_52 = arith.constant 0 : index
    %c0_53 = arith.constant 0 : index
    %74 = vector.load %arg9[%c0_52, %c0_53] : memref<1x256xf32, #tpu.memory_space<vmem>>, vector<1x256xf32>
    tpu.vector_store %arg9[%c0_52, %c0_53], %66 {strides = array<i32>} : memref<1x256xf32, #tpu.memory_space<vmem>>, vector<1x256xf32>,
    %c1_i32_54 = arith.constant 1 : i32
    %c0_55 = arith.constant 0 : index
    %c0_56 = arith.constant 0 : index
    %75 = vector.load %arg3[%c0_55, %c0_56] : memref<32x48xf32, #tpu.memory_space<vmem>>, vector<32x48xf32>
    %76 = arith.index_cast %c1_i32_54 : i32 to index
    %c0_57 = arith.constant 0 : index
    %c0_58 = arith.constant 0 : index
    %77 = vector.load %arg1[%76, %c0_57, %c0_58] : memref<8x48x256xf32, #tpu.memory_space<vmem>>, vector<1x48x256xf32>
    %78 = vector.shape_cast %77 : vector<1x48x256xf32> to vector<48x256xf32>
    %cst_59 = arith.constant dense<0.000000e+00> : vector<32x256xf32>
    %79 = tpu.matmul %75, %78, %cst_59 {dimension_numbers = #tpu.dot_dimension_numbers<[1], [0], [0], [1], [0, 0, 1, 1], [], []>} : vector<32x48xf32>, vector<48x256xf32>, vector<32x256xf32> -> vector<32x256xf32>
    %c0_60 = arith.constant 0 : index
    %c0_61 = arith.constant 0 : index
    %80 = vector.load %arg4[%c0_60, %c0_61] : memref<32x1xf32, #tpu.memory_space<vmem>>, vector<32x1xf32>
    %81 = vector.broadcast %80 : vector<32x1xf32> to vector<32x256xf32>
    %82 = arith.addf %79, %81 : vector<32x256xf32>
    %c0_62 = arith.constant 0 : index
    %c0_63 = arith.constant 0 : index
    %83 = vector.load %arg9[%c0_62, %c0_63] : memref<1x256xf32, #tpu.memory_space<vmem>>, vector<1x256xf32>
    %c17_i32_64 = arith.constant 17 : i32
    %84 = tpu.dynamic_rotate %83 by %c17_i32_64 dim 1 : vector<1x256xf32>, i32 -> vector<1x256xf32>
    %c0_65 = arith.constant 0 : index
    %c0_66 = arith.constant 0 : index
    %85 = vector.load %arg2[%c0_65, %c0_66] : memref<9x256xf32, #tpu.memory_space<vmem>>, vector<1x256xf32>
    %86 = arith.mulf %84, %85 : vector<1x256xf32>
    %c0_67 = arith.constant 0 : index
    %c0_68 = arith.constant 0 : index
    %87 = vector.load %arg10[%c0_67, %c0_68] : memref<16x256xf32, #tpu.memory_space<vmem>>, vector<1x256xf32>
    tpu.vector_store %arg10[%c0_67, %c0_68], %86 {strides = array<i32>} : memref<16x256xf32, #tpu.memory_space<vmem>>, vector<1x256xf32>,
    %c16_i32_69 = arith.constant 16 : i32
    %88 = tpu.dynamic_rotate %83 by %c16_i32_69 dim 1 : vector<1x256xf32>, i32 -> vector<1x256xf32>
    %c1_70 = arith.constant 1 : index
    %c0_71 = arith.constant 0 : index
    %89 = vector.load %arg2[%c1_70, %c0_71] : memref<9x256xf32, #tpu.memory_space<vmem>>, vector<1x256xf32>
    %90 = arith.mulf %88, %89 : vector<1x256xf32>
    %c1_72 = arith.constant 1 : index
    %c0_73 = arith.constant 0 : index
    %91 = vector.load %arg10[%c1_72, %c0_73] : memref<16x256xf32, #tpu.memory_space<vmem>>, vector<1x256xf32>
    tpu.vector_store %arg10[%c1_72, %c0_73], %90 {strides = array<i32>} : memref<16x256xf32, #tpu.memory_space<vmem>>, vector<1x256xf32>,
    %c15_i32_74 = arith.constant 15 : i32
    %92 = tpu.dynamic_rotate %83 by %c15_i32_74 dim 1 : vector<1x256xf32>, i32 -> vector<1x256xf32>
    %c2_75 = arith.constant 2 : index
    %c0_76 = arith.constant 0 : index
    %93 = vector.load %arg2[%c2_75, %c0_76] : memref<9x256xf32, #tpu.memory_space<vmem>>, vector<1x256xf32>
    %94 = arith.mulf %92, %93 : vector<1x256xf32>
    %c2_77 = arith.constant 2 : index
    %c0_78 = arith.constant 0 : index
    %95 = vector.load %arg10[%c2_77, %c0_78] : memref<16x256xf32, #tpu.memory_space<vmem>>, vector<1x256xf32>
    tpu.vector_store %arg10[%c2_77, %c0_78], %94 {strides = array<i32>} : memref<16x256xf32, #tpu.memory_space<vmem>>, vector<1x256xf32>,
    %c1_i32_79 = arith.constant 1 : i32
    %96 = tpu.dynamic_rotate %83 by %c1_i32_79 dim 1 : vector<1x256xf32>, i32 -> vector<1x256xf32>
    %c3_80 = arith.constant 3 : index
    %c0_81 = arith.constant 0 : index
    %97 = vector.load %arg2[%c3_80, %c0_81] : memref<9x256xf32, #tpu.memory_space<vmem>>, vector<1x256xf32>
    %98 = arith.mulf %96, %97 : vector<1x256xf32>
    %c3_82 = arith.constant 3 : index
    %c0_83 = arith.constant 0 : index
    %99 = vector.load %arg10[%c3_82, %c0_83] : memref<16x256xf32, #tpu.memory_space<vmem>>, vector<1x256xf32>
    tpu.vector_store %arg10[%c3_82, %c0_83], %98 {strides = array<i32>} : memref<16x256xf32, #tpu.memory_space<vmem>>, vector<1x256xf32>,
    %c4_84 = arith.constant 4 : index
    %c0_85 = arith.constant 0 : index
    %100 = vector.load %arg2[%c4_84, %c0_85] : memref<9x256xf32, #tpu.memory_space<vmem>>, vector<1x256xf32>
    %101 = arith.mulf %83, %100 : vector<1x256xf32>
    %c4_86 = arith.constant 4 : index
    %c0_87 = arith.constant 0 : index
    %102 = vector.load %arg10[%c4_86, %c0_87] : memref<16x256xf32, #tpu.memory_space<vmem>>, vector<1x256xf32>
    tpu.vector_store %arg10[%c4_86, %c0_87], %101 {strides = array<i32>} : memref<16x256xf32, #tpu.memory_space<vmem>>, vector<1x256xf32>,
    %c255_i32_88 = arith.constant 255 : i32
    %103 = tpu.dynamic_rotate %83 by %c255_i32_88 dim 1 : vector<1x256xf32>, i32 -> vector<1x256xf32>
    %c5_89 = arith.constant 5 : index
    %c0_90 = arith.constant 0 : index
    %104 = vector.load %arg2[%c5_89, %c0_90] : memref<9x256xf32, #tpu.memory_space<vmem>>, vector<1x256xf32>
    %105 = arith.mulf %103, %104 : vector<1x256xf32>
    %c5_91 = arith.constant 5 : index
    %c0_92 = arith.constant 0 : index
    %106 = vector.load %arg10[%c5_91, %c0_92] : memref<16x256xf32, #tpu.memory_space<vmem>>, vector<1x256xf32>
    tpu.vector_store %arg10[%c5_91, %c0_92], %105 {strides = array<i32>} : memref<16x256xf32, #tpu.memory_space<vmem>>, vector<1x256xf32>,
    %c241_i32_93 = arith.constant 241 : i32
    %107 = tpu.dynamic_rotate %83 by %c241_i32_93 dim 1 : vector<1x256xf32>, i32 -> vector<1x256xf32>
    %c6_94 = arith.constant 6 : index
    %c0_95 = arith.constant 0 : index
    %108 = vector.load %arg2[%c6_94, %c0_95] : memref<9x256xf32, #tpu.memory_space<vmem>>, vector<1x256xf32>
    %109 = arith.mulf %107, %108 : vector<1x256xf32>
    %c6_96 = arith.constant 6 : index
    %c0_97 = arith.constant 0 : index
    %110 = vector.load %arg10[%c6_96, %c0_97] : memref<16x256xf32, #tpu.memory_space<vmem>>, vector<1x256xf32>
    tpu.vector_store %arg10[%c6_96, %c0_97], %109 {strides = array<i32>} : memref<16x256xf32, #tpu.memory_space<vmem>>, vector<1x256xf32>,
    %c240_i32_98 = arith.constant 240 : i32
    %111 = tpu.dynamic_rotate %83 by %c240_i32_98 dim 1 : vector<1x256xf32>, i32 -> vector<1x256xf32>
    %c7_99 = arith.constant 7 : index
    %c0_100 = arith.constant 0 : index
    %112 = vector.load %arg2[%c7_99, %c0_100] : memref<9x256xf32, #tpu.memory_space<vmem>>, vector<1x256xf32>
    %113 = arith.mulf %111, %112 : vector<1x256xf32>
    %c7_101 = arith.constant 7 : index
    %c0_102 = arith.constant 0 : index
    %114 = vector.load %arg10[%c7_101, %c0_102] : memref<16x256xf32, #tpu.memory_space<vmem>>, vector<1x256xf32>
    tpu.vector_store %arg10[%c7_101, %c0_102], %113 {strides = array<i32>} : memref<16x256xf32, #tpu.memory_space<vmem>>, vector<1x256xf32>,
    %c239_i32_103 = arith.constant 239 : i32
    %115 = tpu.dynamic_rotate %83 by %c239_i32_103 dim 1 : vector<1x256xf32>, i32 -> vector<1x256xf32>
    %c8_104 = arith.constant 8 : index
    %c0_105 = arith.constant 0 : index
    %116 = vector.load %arg2[%c8_104, %c0_105] : memref<9x256xf32, #tpu.memory_space<vmem>>, vector<1x256xf32>
    %117 = arith.mulf %115, %116 : vector<1x256xf32>
    %c8_106 = arith.constant 8 : index
    %c0_107 = arith.constant 0 : index
    %118 = vector.load %arg10[%c8_106, %c0_107] : memref<16x256xf32, #tpu.memory_space<vmem>>, vector<1x256xf32>
    tpu.vector_store %arg10[%c8_106, %c0_107], %117 {strides = array<i32>} : memref<16x256xf32, #tpu.memory_space<vmem>>, vector<1x256xf32>,
    %c0_108 = arith.constant 0 : index
    %c0_109 = arith.constant 0 : index
    %119 = vector.load %arg5[%c0_108, %c0_109] : memref<32x16xf32, #tpu.memory_space<vmem>>, vector<32x16xf32>
    %c0_110 = arith.constant 0 : index
    %c0_111 = arith.constant 0 : index
    %120 = vector.load %arg10[%c0_110, %c0_111] : memref<16x256xf32, #tpu.memory_space<vmem>>, vector<16x256xf32>
    %cst_112 = arith.constant dense<0.000000e+00> : vector<32x256xf32>
    %121 = tpu.matmul %119, %120, %cst_112 {dimension_numbers = #tpu.dot_dimension_numbers<[1], [0], [0], [1], [0, 0, 1, 1], [], []>} : vector<32x16xf32>, vector<16x256xf32>, vector<32x256xf32> -> vector<32x256xf32>
    %122 = arith.addf %82, %121 : vector<32x256xf32>
    %cst_113 = arith.constant 0.000000e+00 : f32
    %123 = vector.broadcast %cst_113 : f32 to vector<32x256xf32>
    %124 = arith.maximumf %122, %123 : vector<32x256xf32>
    %c0_114 = arith.constant 0 : index
    %c0_115 = arith.constant 0 : index
    %125 = vector.load %arg6[%c0_114, %c0_115] : memref<8x32xf32, #tpu.memory_space<vmem>>, vector<8x32xf32>
    %cst_116 = arith.constant dense<0.000000e+00> : vector<8x256xf32>
    %126 = tpu.matmul %125, %124, %cst_116 {dimension_numbers = #tpu.dot_dimension_numbers<[1], [0], [0], [1], [0, 0, 1, 1], [], []>} : vector<8x32xf32>, vector<32x256xf32>, vector<8x256xf32> -> vector<8x256xf32>
    %c0_117 = arith.constant 0 : index
    %c0_118 = arith.constant 0 : index
    %127 = vector.load %arg7[%c0_117, %c0_118] : memref<8x1xf32, #tpu.memory_space<vmem>>, vector<8x1xf32>
    %128 = vector.broadcast %127 : vector<8x1xf32> to vector<8x256xf32>
    %129 = arith.addf %126, %128 : vector<8x256xf32>
    %130 = vector.extract_strided_slice %129 {offsets = [0, 0], sizes = [1, 256], strides = [1, 1]} : vector<8x256xf32> to vector<1x256xf32>
    %131 = arith.negf %130 : vector<1x256xf32>
    %132 = math.exp %131 : vector<1x256xf32>
    %cst_119 = arith.constant 1.000000e+00 : f32
    %133 = vector.broadcast %cst_119 : f32 to vector<1x256xf32>
    %134 = arith.addf %133, %132 : vector<1x256xf32>
    %135 = arith.divf %133, %134 : vector<1x256xf32>
    %136 = vector.shape_cast %135 : vector<1x256xf32> to vector<1x256xf32>
    %137 = vector.broadcast %136 : vector<1x256xf32> to vector<8x256xf32>
    %138 = arith.select %5, %137, %129 : vector<8x256xi1>, vector<8x256xf32>
    %139 = arith.index_cast %c1_i32_54 : i32 to index
    %c0_120 = arith.constant 0 : index
    %c0_121 = arith.constant 0 : index
    %140 = vector.load %arg8[%139, %c0_120, %c0_121] : memref<8x8x256xf32, #tpu.memory_space<vmem>>, vector<1x8x256xf32>
    %141 = vector.shape_cast %140 : vector<1x8x256xf32> to vector<8x256xf32>
    %142 = vector.shape_cast %138 : vector<8x256xf32> to vector<1x8x256xf32>
    tpu.vector_store %arg8[%139, %c0_120, %c0_121], %142 {strides = array<i32>} : memref<8x8x256xf32, #tpu.memory_space<vmem>>, vector<1x8x256xf32>,
    %c0_122 = arith.constant 0 : index
    %c0_123 = arith.constant 0 : index
    %143 = vector.load %arg9[%c0_122, %c0_123] : memref<1x256xf32, #tpu.memory_space<vmem>>, vector<1x256xf32>
    tpu.vector_store %arg9[%c0_122, %c0_123], %135 {strides = array<i32>} : memref<1x256xf32, #tpu.memory_space<vmem>>, vector<1x256xf32>,
    %c2_i32 = arith.constant 2 : i32
    %c0_124 = arith.constant 0 : index
    %c0_125 = arith.constant 0 : index
    %144 = vector.load %arg3[%c0_124, %c0_125] : memref<32x48xf32, #tpu.memory_space<vmem>>, vector<32x48xf32>
    %145 = arith.index_cast %c2_i32 : i32 to index
    %c0_126 = arith.constant 0 : index
    %c0_127 = arith.constant 0 : index
    %146 = vector.load %arg1[%145, %c0_126, %c0_127] : memref<8x48x256xf32, #tpu.memory_space<vmem>>, vector<1x48x256xf32>
    %147 = vector.shape_cast %146 : vector<1x48x256xf32> to vector<48x256xf32>
    %cst_128 = arith.constant dense<0.000000e+00> : vector<32x256xf32>
    %148 = tpu.matmul %144, %147, %cst_128 {dimension_numbers = #tpu.dot_dimension_numbers<[1], [0], [0], [1], [0, 0, 1, 1], [], []>} : vector<32x48xf32>, vector<48x256xf32>, vector<32x256xf32> -> vector<32x256xf32>
    %c0_129 = arith.constant 0 : index
    %c0_130 = arith.constant 0 : index
    %149 = vector.load %arg4[%c0_129, %c0_130] : memref<32x1xf32, #tpu.memory_space<vmem>>, vector<32x1xf32>
    %150 = vector.broadcast %149 : vector<32x1xf32> to vector<32x256xf32>
    %151 = arith.addf %148, %150 : vector<32x256xf32>
    %c0_131 = arith.constant 0 : index
    %c0_132 = arith.constant 0 : index
    %152 = vector.load %arg9[%c0_131, %c0_132] : memref<1x256xf32, #tpu.memory_space<vmem>>, vector<1x256xf32>
    %c17_i32_133 = arith.constant 17 : i32
    %153 = tpu.dynamic_rotate %152 by %c17_i32_133 dim 1 : vector<1x256xf32>, i32 -> vector<1x256xf32>
    %c0_134 = arith.constant 0 : index
    %c0_135 = arith.constant 0 : index
    %154 = vector.load %arg2[%c0_134, %c0_135] : memref<9x256xf32, #tpu.memory_space<vmem>>, vector<1x256xf32>
    %155 = arith.mulf %153, %154 : vector<1x256xf32>
    %c0_136 = arith.constant 0 : index
    %c0_137 = arith.constant 0 : index
    %156 = vector.load %arg10[%c0_136, %c0_137] : memref<16x256xf32, #tpu.memory_space<vmem>>, vector<1x256xf32>
    tpu.vector_store %arg10[%c0_136, %c0_137], %155 {strides = array<i32>} : memref<16x256xf32, #tpu.memory_space<vmem>>, vector<1x256xf32>,
    %c16_i32_138 = arith.constant 16 : i32
    %157 = tpu.dynamic_rotate %152 by %c16_i32_138 dim 1 : vector<1x256xf32>, i32 -> vector<1x256xf32>
    %c1_139 = arith.constant 1 : index
    %c0_140 = arith.constant 0 : index
    %158 = vector.load %arg2[%c1_139, %c0_140] : memref<9x256xf32, #tpu.memory_space<vmem>>, vector<1x256xf32>
    %159 = arith.mulf %157, %158 : vector<1x256xf32>
    %c1_141 = arith.constant 1 : index
    %c0_142 = arith.constant 0 : index
    %160 = vector.load %arg10[%c1_141, %c0_142] : memref<16x256xf32, #tpu.memory_space<vmem>>, vector<1x256xf32>
    tpu.vector_store %arg10[%c1_141, %c0_142], %159 {strides = array<i32>} : memref<16x256xf32, #tpu.memory_space<vmem>>, vector<1x256xf32>,
    %c15_i32_143 = arith.constant 15 : i32
    %161 = tpu.dynamic_rotate %152 by %c15_i32_143 dim 1 : vector<1x256xf32>, i32 -> vector<1x256xf32>
    %c2_144 = arith.constant 2 : index
    %c0_145 = arith.constant 0 : index
    %162 = vector.load %arg2[%c2_144, %c0_145] : memref<9x256xf32, #tpu.memory_space<vmem>>, vector<1x256xf32>
    %163 = arith.mulf %161, %162 : vector<1x256xf32>
    %c2_146 = arith.constant 2 : index
    %c0_147 = arith.constant 0 : index
    %164 = vector.load %arg10[%c2_146, %c0_147] : memref<16x256xf32, #tpu.memory_space<vmem>>, vector<1x256xf32>
    tpu.vector_store %arg10[%c2_146, %c0_147], %163 {strides = array<i32>} : memref<16x256xf32, #tpu.memory_space<vmem>>, vector<1x256xf32>,
    %c1_i32_148 = arith.constant 1 : i32
    %165 = tpu.dynamic_rotate %152 by %c1_i32_148 dim 1 : vector<1x256xf32>, i32 -> vector<1x256xf32>
    %c3_149 = arith.constant 3 : index
    %c0_150 = arith.constant 0 : index
    %166 = vector.load %arg2[%c3_149, %c0_150] : memref<9x256xf32, #tpu.memory_space<vmem>>, vector<1x256xf32>
    %167 = arith.mulf %165, %166 : vector<1x256xf32>
    %c3_151 = arith.constant 3 : index
    %c0_152 = arith.constant 0 : index
    %168 = vector.load %arg10[%c3_151, %c0_152] : memref<16x256xf32, #tpu.memory_space<vmem>>, vector<1x256xf32>
    tpu.vector_store %arg10[%c3_151, %c0_152], %167 {strides = array<i32>} : memref<16x256xf32, #tpu.memory_space<vmem>>, vector<1x256xf32>,
    %c4_153 = arith.constant 4 : index
    %c0_154 = arith.constant 0 : index
    %169 = vector.load %arg2[%c4_153, %c0_154] : memref<9x256xf32, #tpu.memory_space<vmem>>, vector<1x256xf32>
    %170 = arith.mulf %152, %169 : vector<1x256xf32>
    %c4_155 = arith.constant 4 : index
    %c0_156 = arith.constant 0 : index
    %171 = vector.load %arg10[%c4_155, %c0_156] : memref<16x256xf32, #tpu.memory_space<vmem>>, vector<1x256xf32>
    tpu.vector_store %arg10[%c4_155, %c0_156], %170 {strides = array<i32>} : memref<16x256xf32, #tpu.memory_space<vmem>>, vector<1x256xf32>,
    %c255_i32_157 = arith.constant 255 : i32
    %172 = tpu.dynamic_rotate %152 by %c255_i32_157 dim 1 : vector<1x256xf32>, i32 -> vector<1x256xf32>
    %c5_158 = arith.constant 5 : index
    %c0_159 = arith.constant 0 : index
    %173 = vector.load %arg2[%c5_158, %c0_159] : memref<9x256xf32, #tpu.memory_space<vmem>>, vector<1x256xf32>
    %174 = arith.mulf %172, %173 : vector<1x256xf32>
    %c5_160 = arith.constant 5 : index
    %c0_161 = arith.constant 0 : index
    %175 = vector.load %arg10[%c5_160, %c0_161] : memref<16x256xf32, #tpu.memory_space<vmem>>, vector<1x256xf32>
    tpu.vector_store %arg10[%c5_160, %c0_161], %174 {strides = array<i32>} : memref<16x256xf32, #tpu.memory_space<vmem>>, vector<1x256xf32>,
    %c241_i32_162 = arith.constant 241 : i32
    %176 = tpu.dynamic_rotate %152 by %c241_i32_162 dim 1 : vector<1x256xf32>, i32 -> vector<1x256xf32>
    %c6_163 = arith.constant 6 : index
    %c0_164 = arith.constant 0 : index
    %177 = vector.load %arg2[%c6_163, %c0_164] : memref<9x256xf32, #tpu.memory_space<vmem>>, vector<1x256xf32>
    %178 = arith.mulf %176, %177 : vector<1x256xf32>
    %c6_165 = arith.constant 6 : index
    %c0_166 = arith.constant 0 : index
    %179 = vector.load %arg10[%c6_165, %c0_166] : memref<16x256xf32, #tpu.memory_space<vmem>>, vector<1x256xf32>
    tpu.vector_store %arg10[%c6_165, %c0_166], %178 {strides = array<i32>} : memref<16x256xf32, #tpu.memory_space<vmem>>, vector<1x256xf32>,
    %c240_i32_167 = arith.constant 240 : i32
    %180 = tpu.dynamic_rotate %152 by %c240_i32_167 dim 1 : vector<1x256xf32>, i32 -> vector<1x256xf32>
    %c7_168 = arith.constant 7 : index
    %c0_169 = arith.constant 0 : index
    %181 = vector.load %arg2[%c7_168, %c0_169] : memref<9x256xf32, #tpu.memory_space<vmem>>, vector<1x256xf32>
    %182 = arith.mulf %180, %181 : vector<1x256xf32>
    %c7_170 = arith.constant 7 : index
    %c0_171 = arith.constant 0 : index
    %183 = vector.load %arg10[%c7_170, %c0_171] : memref<16x256xf32, #tpu.memory_space<vmem>>, vector<1x256xf32>
    tpu.vector_store %arg10[%c7_170, %c0_171], %182 {strides = array<i32>} : memref<16x256xf32, #tpu.memory_space<vmem>>, vector<1x256xf32>,
    %c239_i32_172 = arith.constant 239 : i32
    %184 = tpu.dynamic_rotate %152 by %c239_i32_172 dim 1 : vector<1x256xf32>, i32 -> vector<1x256xf32>
    %c8_173 = arith.constant 8 : index
    %c0_174 = arith.constant 0 : index
    %185 = vector.load %arg2[%c8_173, %c0_174] : memref<9x256xf32, #tpu.memory_space<vmem>>, vector<1x256xf32>
    %186 = arith.mulf %184, %185 : vector<1x256xf32>
    %c8_175 = arith.constant 8 : index
    %c0_176 = arith.constant 0 : index
    %187 = vector.load %arg10[%c8_175, %c0_176] : memref<16x256xf32, #tpu.memory_space<vmem>>, vector<1x256xf32>
    tpu.vector_store %arg10[%c8_175, %c0_176], %186 {strides = array<i32>} : memref<16x256xf32, #tpu.memory_space<vmem>>, vector<1x256xf32>,
    %c0_177 = arith.constant 0 : index
    %c0_178 = arith.constant 0 : index
    %188 = vector.load %arg5[%c0_177, %c0_178] : memref<32x16xf32, #tpu.memory_space<vmem>>, vector<32x16xf32>
    %c0_179 = arith.constant 0 : index
    %c0_180 = arith.constant 0 : index
    %189 = vector.load %arg10[%c0_179, %c0_180] : memref<16x256xf32, #tpu.memory_space<vmem>>, vector<16x256xf32>
    %cst_181 = arith.constant dense<0.000000e+00> : vector<32x256xf32>
    %190 = tpu.matmul %188, %189, %cst_181 {dimension_numbers = #tpu.dot_dimension_numbers<[1], [0], [0], [1], [0, 0, 1, 1], [], []>} : vector<32x16xf32>, vector<16x256xf32>, vector<32x256xf32> -> vector<32x256xf32>
    %191 = arith.addf %151, %190 : vector<32x256xf32>
    %cst_182 = arith.constant 0.000000e+00 : f32
    %192 = vector.broadcast %cst_182 : f32 to vector<32x256xf32>
    %193 = arith.maximumf %191, %192 : vector<32x256xf32>
    %c0_183 = arith.constant 0 : index
    %c0_184 = arith.constant 0 : index
    %194 = vector.load %arg6[%c0_183, %c0_184] : memref<8x32xf32, #tpu.memory_space<vmem>>, vector<8x32xf32>
    %cst_185 = arith.constant dense<0.000000e+00> : vector<8x256xf32>
    %195 = tpu.matmul %194, %193, %cst_185 {dimension_numbers = #tpu.dot_dimension_numbers<[1], [0], [0], [1], [0, 0, 1, 1], [], []>} : vector<8x32xf32>, vector<32x256xf32>, vector<8x256xf32> -> vector<8x256xf32>
    %c0_186 = arith.constant 0 : index
    %c0_187 = arith.constant 0 : index
    %196 = vector.load %arg7[%c0_186, %c0_187] : memref<8x1xf32, #tpu.memory_space<vmem>>, vector<8x1xf32>
    %197 = vector.broadcast %196 : vector<8x1xf32> to vector<8x256xf32>
    %198 = arith.addf %195, %197 : vector<8x256xf32>
    %199 = vector.extract_strided_slice %198 {offsets = [0, 0], sizes = [1, 256], strides = [1, 1]} : vector<8x256xf32> to vector<1x256xf32>
    %200 = arith.negf %199 : vector<1x256xf32>
    %201 = math.exp %200 : vector<1x256xf32>
    %cst_188 = arith.constant 1.000000e+00 : f32
    %202 = vector.broadcast %cst_188 : f32 to vector<1x256xf32>
    %203 = arith.addf %202, %201 : vector<1x256xf32>
    %204 = arith.divf %202, %203 : vector<1x256xf32>
    %205 = vector.shape_cast %204 : vector<1x256xf32> to vector<1x256xf32>
    %206 = vector.broadcast %205 : vector<1x256xf32> to vector<8x256xf32>
    %207 = arith.select %5, %206, %198 : vector<8x256xi1>, vector<8x256xf32>
    %208 = arith.index_cast %c2_i32 : i32 to index
    %c0_189 = arith.constant 0 : index
    %c0_190 = arith.constant 0 : index
    %209 = vector.load %arg8[%208, %c0_189, %c0_190] : memref<8x8x256xf32, #tpu.memory_space<vmem>>, vector<1x8x256xf32>
    %210 = vector.shape_cast %209 : vector<1x8x256xf32> to vector<8x256xf32>
    %211 = vector.shape_cast %207 : vector<8x256xf32> to vector<1x8x256xf32>
    tpu.vector_store %arg8[%208, %c0_189, %c0_190], %211 {strides = array<i32>} : memref<8x8x256xf32, #tpu.memory_space<vmem>>, vector<1x8x256xf32>,
    %c0_191 = arith.constant 0 : index
    %c0_192 = arith.constant 0 : index
    %212 = vector.load %arg9[%c0_191, %c0_192] : memref<1x256xf32, #tpu.memory_space<vmem>>, vector<1x256xf32>
    tpu.vector_store %arg9[%c0_191, %c0_192], %204 {strides = array<i32>} : memref<1x256xf32, #tpu.memory_space<vmem>>, vector<1x256xf32>,
    %c3_i32 = arith.constant 3 : i32
    %c0_193 = arith.constant 0 : index
    %c0_194 = arith.constant 0 : index
    %213 = vector.load %arg3[%c0_193, %c0_194] : memref<32x48xf32, #tpu.memory_space<vmem>>, vector<32x48xf32>
    %214 = arith.index_cast %c3_i32 : i32 to index
    %c0_195 = arith.constant 0 : index
    %c0_196 = arith.constant 0 : index
    %215 = vector.load %arg1[%214, %c0_195, %c0_196] : memref<8x48x256xf32, #tpu.memory_space<vmem>>, vector<1x48x256xf32>
    %216 = vector.shape_cast %215 : vector<1x48x256xf32> to vector<48x256xf32>
    %cst_197 = arith.constant dense<0.000000e+00> : vector<32x256xf32>
    %217 = tpu.matmul %213, %216, %cst_197 {dimension_numbers = #tpu.dot_dimension_numbers<[1], [0], [0], [1], [0, 0, 1, 1], [], []>} : vector<32x48xf32>, vector<48x256xf32>, vector<32x256xf32> -> vector<32x256xf32>
    %c0_198 = arith.constant 0 : index
    %c0_199 = arith.constant 0 : index
    %218 = vector.load %arg4[%c0_198, %c0_199] : memref<32x1xf32, #tpu.memory_space<vmem>>, vector<32x1xf32>
    %219 = vector.broadcast %218 : vector<32x1xf32> to vector<32x256xf32>
    %220 = arith.addf %217, %219 : vector<32x256xf32>
    %c0_200 = arith.constant 0 : index
    %c0_201 = arith.constant 0 : index
    %221 = vector.load %arg9[%c0_200, %c0_201] : memref<1x256xf32, #tpu.memory_space<vmem>>, vector<1x256xf32>
    %c17_i32_202 = arith.constant 17 : i32
    %222 = tpu.dynamic_rotate %221 by %c17_i32_202 dim 1 : vector<1x256xf32>, i32 -> vector<1x256xf32>
    %c0_203 = arith.constant 0 : index
    %c0_204 = arith.constant 0 : index
    %223 = vector.load %arg2[%c0_203, %c0_204] : memref<9x256xf32, #tpu.memory_space<vmem>>, vector<1x256xf32>
    %224 = arith.mulf %222, %223 : vector<1x256xf32>
    %c0_205 = arith.constant 0 : index
    %c0_206 = arith.constant 0 : index
    %225 = vector.load %arg10[%c0_205, %c0_206] : memref<16x256xf32, #tpu.memory_space<vmem>>, vector<1x256xf32>
    tpu.vector_store %arg10[%c0_205, %c0_206], %224 {strides = array<i32>} : memref<16x256xf32, #tpu.memory_space<vmem>>, vector<1x256xf32>,
    %c16_i32_207 = arith.constant 16 : i32
    %226 = tpu.dynamic_rotate %221 by %c16_i32_207 dim 1 : vector<1x256xf32>, i32 -> vector<1x256xf32>
    %c1_208 = arith.constant 1 : index
    %c0_209 = arith.constant 0 : index
    %227 = vector.load %arg2[%c1_208, %c0_209] : memref<9x256xf32, #tpu.memory_space<vmem>>, vector<1x256xf32>
    %228 = arith.mulf %226, %227 : vector<1x256xf32>
    %c1_210 = arith.constant 1 : index
    %c0_211 = arith.constant 0 : index
    %229 = vector.load %arg10[%c1_210, %c0_211] : memref<16x256xf32, #tpu.memory_space<vmem>>, vector<1x256xf32>
    tpu.vector_store %arg10[%c1_210, %c0_211], %228 {strides = array<i32>} : memref<16x256xf32, #tpu.memory_space<vmem>>, vector<1x256xf32>,
    %c15_i32_212 = arith.constant 15 : i32
    %230 = tpu.dynamic_rotate %221 by %c15_i32_212 dim 1 : vector<1x256xf32>, i32 -> vector<1x256xf32>
    %c2_213 = arith.constant 2 : index
    %c0_214 = arith.constant 0 : index
    %231 = vector.load %arg2[%c2_213, %c0_214] : memref<9x256xf32, #tpu.memory_space<vmem>>, vector<1x256xf32>
    %232 = arith.mulf %230, %231 : vector<1x256xf32>
    %c2_215 = arith.constant 2 : index
    %c0_216 = arith.constant 0 : index
    %233 = vector.load %arg10[%c2_215, %c0_216] : memref<16x256xf32, #tpu.memory_space<vmem>>, vector<1x256xf32>
    tpu.vector_store %arg10[%c2_215, %c0_216], %232 {strides = array<i32>} : memref<16x256xf32, #tpu.memory_space<vmem>>, vector<1x256xf32>,
    %c1_i32_217 = arith.constant 1 : i32
    %234 = tpu.dynamic_rotate %221 by %c1_i32_217 dim 1 : vector<1x256xf32>, i32 -> vector<1x256xf32>
    %c3_218 = arith.constant 3 : index
    %c0_219 = arith.constant 0 : index
    %235 = vector.load %arg2[%c3_218, %c0_219] : memref<9x256xf32, #tpu.memory_space<vmem>>, vector<1x256xf32>
    %236 = arith.mulf %234, %235 : vector<1x256xf32>
    %c3_220 = arith.constant 3 : index
    %c0_221 = arith.constant 0 : index
    %237 = vector.load %arg10[%c3_220, %c0_221] : memref<16x256xf32, #tpu.memory_space<vmem>>, vector<1x256xf32>
    tpu.vector_store %arg10[%c3_220, %c0_221], %236 {strides = array<i32>} : memref<16x256xf32, #tpu.memory_space<vmem>>, vector<1x256xf32>,
    %c4_222 = arith.constant 4 : index
    %c0_223 = arith.constant 0 : index
    %238 = vector.load %arg2[%c4_222, %c0_223] : memref<9x256xf32, #tpu.memory_space<vmem>>, vector<1x256xf32>
    %239 = arith.mulf %221, %238 : vector<1x256xf32>
    %c4_224 = arith.constant 4 : index
    %c0_225 = arith.constant 0 : index
    %240 = vector.load %arg10[%c4_224, %c0_225] : memref<16x256xf32, #tpu.memory_space<vmem>>, vector<1x256xf32>
    tpu.vector_store %arg10[%c4_224, %c0_225], %239 {strides = array<i32>} : memref<16x256xf32, #tpu.memory_space<vmem>>, vector<1x256xf32>,
    %c255_i32_226 = arith.constant 255 : i32
    %241 = tpu.dynamic_rotate %221 by %c255_i32_226 dim 1 : vector<1x256xf32>, i32 -> vector<1x256xf32>
    %c5_227 = arith.constant 5 : index
    %c0_228 = arith.constant 0 : index
    %242 = vector.load %arg2[%c5_227, %c0_228] : memref<9x256xf32, #tpu.memory_space<vmem>>, vector<1x256xf32>
    %243 = arith.mulf %241, %242 : vector<1x256xf32>
    %c5_229 = arith.constant 5 : index
    %c0_230 = arith.constant 0 : index
    %244 = vector.load %arg10[%c5_229, %c0_230] : memref<16x256xf32, #tpu.memory_space<vmem>>, vector<1x256xf32>
    tpu.vector_store %arg10[%c5_229, %c0_230], %243 {strides = array<i32>} : memref<16x256xf32, #tpu.memory_space<vmem>>, vector<1x256xf32>,
    %c241_i32_231 = arith.constant 241 : i32
    %245 = tpu.dynamic_rotate %221 by %c241_i32_231 dim 1 : vector<1x256xf32>, i32 -> vector<1x256xf32>
    %c6_232 = arith.constant 6 : index
    %c0_233 = arith.constant 0 : index
    %246 = vector.load %arg2[%c6_232, %c0_233] : memref<9x256xf32, #tpu.memory_space<vmem>>, vector<1x256xf32>
    %247 = arith.mulf %245, %246 : vector<1x256xf32>
    %c6_234 = arith.constant 6 : index
    %c0_235 = arith.constant 0 : index
    %248 = vector.load %arg10[%c6_234, %c0_235] : memref<16x256xf32, #tpu.memory_space<vmem>>, vector<1x256xf32>
    tpu.vector_store %arg10[%c6_234, %c0_235], %247 {strides = array<i32>} : memref<16x256xf32, #tpu.memory_space<vmem>>, vector<1x256xf32>,
    %c240_i32_236 = arith.constant 240 : i32
    %249 = tpu.dynamic_rotate %221 by %c240_i32_236 dim 1 : vector<1x256xf32>, i32 -> vector<1x256xf32>
    %c7_237 = arith.constant 7 : index
    %c0_238 = arith.constant 0 : index
    %250 = vector.load %arg2[%c7_237, %c0_238] : memref<9x256xf32, #tpu.memory_space<vmem>>, vector<1x256xf32>
    %251 = arith.mulf %249, %250 : vector<1x256xf32>
    %c7_239 = arith.constant 7 : index
    %c0_240 = arith.constant 0 : index
    %252 = vector.load %arg10[%c7_239, %c0_240] : memref<16x256xf32, #tpu.memory_space<vmem>>, vector<1x256xf32>
    tpu.vector_store %arg10[%c7_239, %c0_240], %251 {strides = array<i32>} : memref<16x256xf32, #tpu.memory_space<vmem>>, vector<1x256xf32>,
    %c239_i32_241 = arith.constant 239 : i32
    %253 = tpu.dynamic_rotate %221 by %c239_i32_241 dim 1 : vector<1x256xf32>, i32 -> vector<1x256xf32>
    %c8_242 = arith.constant 8 : index
    %c0_243 = arith.constant 0 : index
    %254 = vector.load %arg2[%c8_242, %c0_243] : memref<9x256xf32, #tpu.memory_space<vmem>>, vector<1x256xf32>
    %255 = arith.mulf %253, %254 : vector<1x256xf32>
    %c8_244 = arith.constant 8 : index
    %c0_245 = arith.constant 0 : index
    %256 = vector.load %arg10[%c8_244, %c0_245] : memref<16x256xf32, #tpu.memory_space<vmem>>, vector<1x256xf32>
    tpu.vector_store %arg10[%c8_244, %c0_245], %255 {strides = array<i32>} : memref<16x256xf32, #tpu.memory_space<vmem>>, vector<1x256xf32>,
    %c0_246 = arith.constant 0 : index
    %c0_247 = arith.constant 0 : index
    %257 = vector.load %arg5[%c0_246, %c0_247] : memref<32x16xf32, #tpu.memory_space<vmem>>, vector<32x16xf32>
    %c0_248 = arith.constant 0 : index
    %c0_249 = arith.constant 0 : index
    %258 = vector.load %arg10[%c0_248, %c0_249] : memref<16x256xf32, #tpu.memory_space<vmem>>, vector<16x256xf32>
    %cst_250 = arith.constant dense<0.000000e+00> : vector<32x256xf32>
    %259 = tpu.matmul %257, %258, %cst_250 {dimension_numbers = #tpu.dot_dimension_numbers<[1], [0], [0], [1], [0, 0, 1, 1], [], []>} : vector<32x16xf32>, vector<16x256xf32>, vector<32x256xf32> -> vector<32x256xf32>
    %260 = arith.addf %220, %259 : vector<32x256xf32>
    %cst_251 = arith.constant 0.000000e+00 : f32
    %261 = vector.broadcast %cst_251 : f32 to vector<32x256xf32>
    %262 = arith.maximumf %260, %261 : vector<32x256xf32>
    %c0_252 = arith.constant 0 : index
    %c0_253 = arith.constant 0 : index
    %263 = vector.load %arg6[%c0_252, %c0_253] : memref<8x32xf32, #tpu.memory_space<vmem>>, vector<8x32xf32>
    %cst_254 = arith.constant dense<0.000000e+00> : vector<8x256xf32>
    %264 = tpu.matmul %263, %262, %cst_254 {dimension_numbers = #tpu.dot_dimension_numbers<[1], [0], [0], [1], [0, 0, 1, 1], [], []>} : vector<8x32xf32>, vector<32x256xf32>, vector<8x256xf32> -> vector<8x256xf32>
    %c0_255 = arith.constant 0 : index
    %c0_256 = arith.constant 0 : index
    %265 = vector.load %arg7[%c0_255, %c0_256] : memref<8x1xf32, #tpu.memory_space<vmem>>, vector<8x1xf32>
    %266 = vector.broadcast %265 : vector<8x1xf32> to vector<8x256xf32>
    %267 = arith.addf %264, %266 : vector<8x256xf32>
    %268 = vector.extract_strided_slice %267 {offsets = [0, 0], sizes = [1, 256], strides = [1, 1]} : vector<8x256xf32> to vector<1x256xf32>
    %269 = arith.negf %268 : vector<1x256xf32>
    %270 = math.exp %269 : vector<1x256xf32>
    %cst_257 = arith.constant 1.000000e+00 : f32
    %271 = vector.broadcast %cst_257 : f32 to vector<1x256xf32>
    %272 = arith.addf %271, %270 : vector<1x256xf32>
    %273 = arith.divf %271, %272 : vector<1x256xf32>
    %274 = vector.shape_cast %273 : vector<1x256xf32> to vector<1x256xf32>
    %275 = vector.broadcast %274 : vector<1x256xf32> to vector<8x256xf32>
    %276 = arith.select %5, %275, %267 : vector<8x256xi1>, vector<8x256xf32>
    %277 = arith.index_cast %c3_i32 : i32 to index
    %c0_258 = arith.constant 0 : index
    %c0_259 = arith.constant 0 : index
    %278 = vector.load %arg8[%277, %c0_258, %c0_259] : memref<8x8x256xf32, #tpu.memory_space<vmem>>, vector<1x8x256xf32>
    %279 = vector.shape_cast %278 : vector<1x8x256xf32> to vector<8x256xf32>
    %280 = vector.shape_cast %276 : vector<8x256xf32> to vector<1x8x256xf32>
    tpu.vector_store %arg8[%277, %c0_258, %c0_259], %280 {strides = array<i32>} : memref<8x8x256xf32, #tpu.memory_space<vmem>>, vector<1x8x256xf32>,
    %c0_260 = arith.constant 0 : index
    %c0_261 = arith.constant 0 : index
    %281 = vector.load %arg9[%c0_260, %c0_261] : memref<1x256xf32, #tpu.memory_space<vmem>>, vector<1x256xf32>
    tpu.vector_store %arg9[%c0_260, %c0_261], %273 {strides = array<i32>} : memref<1x256xf32, #tpu.memory_space<vmem>>, vector<1x256xf32>,
    %c4_i32 = arith.constant 4 : i32
    %c0_262 = arith.constant 0 : index
    %c0_263 = arith.constant 0 : index
    %282 = vector.load %arg3[%c0_262, %c0_263] : memref<32x48xf32, #tpu.memory_space<vmem>>, vector<32x48xf32>
    %283 = arith.index_cast %c4_i32 : i32 to index
    %c0_264 = arith.constant 0 : index
    %c0_265 = arith.constant 0 : index
    %284 = vector.load %arg1[%283, %c0_264, %c0_265] : memref<8x48x256xf32, #tpu.memory_space<vmem>>, vector<1x48x256xf32>
    %285 = vector.shape_cast %284 : vector<1x48x256xf32> to vector<48x256xf32>
    %cst_266 = arith.constant dense<0.000000e+00> : vector<32x256xf32>
    %286 = tpu.matmul %282, %285, %cst_266 {dimension_numbers = #tpu.dot_dimension_numbers<[1], [0], [0], [1], [0, 0, 1, 1], [], []>} : vector<32x48xf32>, vector<48x256xf32>, vector<32x256xf32> -> vector<32x256xf32>
    %c0_267 = arith.constant 0 : index
    %c0_268 = arith.constant 0 : index
    %287 = vector.load %arg4[%c0_267, %c0_268] : memref<32x1xf32, #tpu.memory_space<vmem>>, vector<32x1xf32>
    %288 = vector.broadcast %287 : vector<32x1xf32> to vector<32x256xf32>
    %289 = arith.addf %286, %288 : vector<32x256xf32>
    %c0_269 = arith.constant 0 : index
    %c0_270 = arith.constant 0 : index
    %290 = vector.load %arg9[%c0_269, %c0_270] : memref<1x256xf32, #tpu.memory_space<vmem>>, vector<1x256xf32>
    %c17_i32_271 = arith.constant 17 : i32
    %291 = tpu.dynamic_rotate %290 by %c17_i32_271 dim 1 : vector<1x256xf32>, i32 -> vector<1x256xf32>
    %c0_272 = arith.constant 0 : index
    %c0_273 = arith.constant 0 : index
    %292 = vector.load %arg2[%c0_272, %c0_273] : memref<9x256xf32, #tpu.memory_space<vmem>>, vector<1x256xf32>
    %293 = arith.mulf %291, %292 : vector<1x256xf32>
    %c0_274 = arith.constant 0 : index
    %c0_275 = arith.constant 0 : index
    %294 = vector.load %arg10[%c0_274, %c0_275] : memref<16x256xf32, #tpu.memory_space<vmem>>, vector<1x256xf32>
    tpu.vector_store %arg10[%c0_274, %c0_275], %293 {strides = array<i32>} : memref<16x256xf32, #tpu.memory_space<vmem>>, vector<1x256xf32>,
    %c16_i32_276 = arith.constant 16 : i32
    %295 = tpu.dynamic_rotate %290 by %c16_i32_276 dim 1 : vector<1x256xf32>, i32 -> vector<1x256xf32>
    %c1_277 = arith.constant 1 : index
    %c0_278 = arith.constant 0 : index
    %296 = vector.load %arg2[%c1_277, %c0_278] : memref<9x256xf32, #tpu.memory_space<vmem>>, vector<1x256xf32>
    %297 = arith.mulf %295, %296 : vector<1x256xf32>
    %c1_279 = arith.constant 1 : index
    %c0_280 = arith.constant 0 : index
    %298 = vector.load %arg10[%c1_279, %c0_280] : memref<16x256xf32, #tpu.memory_space<vmem>>, vector<1x256xf32>
    tpu.vector_store %arg10[%c1_279, %c0_280], %297 {strides = array<i32>} : memref<16x256xf32, #tpu.memory_space<vmem>>, vector<1x256xf32>,
    %c15_i32_281 = arith.constant 15 : i32
    %299 = tpu.dynamic_rotate %290 by %c15_i32_281 dim 1 : vector<1x256xf32>, i32 -> vector<1x256xf32>
    %c2_282 = arith.constant 2 : index
    %c0_283 = arith.constant 0 : index
    %300 = vector.load %arg2[%c2_282, %c0_283] : memref<9x256xf32, #tpu.memory_space<vmem>>, vector<1x256xf32>
    %301 = arith.mulf %299, %300 : vector<1x256xf32>
    %c2_284 = arith.constant 2 : index
    %c0_285 = arith.constant 0 : index
    %302 = vector.load %arg10[%c2_284, %c0_285] : memref<16x256xf32, #tpu.memory_space<vmem>>, vector<1x256xf32>
    tpu.vector_store %arg10[%c2_284, %c0_285], %301 {strides = array<i32>} : memref<16x256xf32, #tpu.memory_space<vmem>>, vector<1x256xf32>,
    %c1_i32_286 = arith.constant 1 : i32
    %303 = tpu.dynamic_rotate %290 by %c1_i32_286 dim 1 : vector<1x256xf32>, i32 -> vector<1x256xf32>
    %c3_287 = arith.constant 3 : index
    %c0_288 = arith.constant 0 : index
    %304 = vector.load %arg2[%c3_287, %c0_288] : memref<9x256xf32, #tpu.memory_space<vmem>>, vector<1x256xf32>
    %305 = arith.mulf %303, %304 : vector<1x256xf32>
    %c3_289 = arith.constant 3 : index
    %c0_290 = arith.constant 0 : index
    %306 = vector.load %arg10[%c3_289, %c0_290] : memref<16x256xf32, #tpu.memory_space<vmem>>, vector<1x256xf32>
    tpu.vector_store %arg10[%c3_289, %c0_290], %305 {strides = array<i32>} : memref<16x256xf32, #tpu.memory_space<vmem>>, vector<1x256xf32>,
    %c4_291 = arith.constant 4 : index
    %c0_292 = arith.constant 0 : index
    %307 = vector.load %arg2[%c4_291, %c0_292] : memref<9x256xf32, #tpu.memory_space<vmem>>, vector<1x256xf32>
    %308 = arith.mulf %290, %307 : vector<1x256xf32>
    %c4_293 = arith.constant 4 : index
    %c0_294 = arith.constant 0 : index
    %309 = vector.load %arg10[%c4_293, %c0_294] : memref<16x256xf32, #tpu.memory_space<vmem>>, vector<1x256xf32>
    tpu.vector_store %arg10[%c4_293, %c0_294], %308 {strides = array<i32>} : memref<16x256xf32, #tpu.memory_space<vmem>>, vector<1x256xf32>,
    %c255_i32_295 = arith.constant 255 : i32
    %310 = tpu.dynamic_rotate %290 by %c255_i32_295 dim 1 : vector<1x256xf32>, i32 -> vector<1x256xf32>
    %c5_296 = arith.constant 5 : index
    %c0_297 = arith.constant 0 : index
    %311 = vector.load %arg2[%c5_296, %c0_297] : memref<9x256xf32, #tpu.memory_space<vmem>>, vector<1x256xf32>
    %312 = arith.mulf %310, %311 : vector<1x256xf32>
    %c5_298 = arith.constant 5 : index
    %c0_299 = arith.constant 0 : index
    %313 = vector.load %arg10[%c5_298, %c0_299] : memref<16x256xf32, #tpu.memory_space<vmem>>, vector<1x256xf32>
    tpu.vector_store %arg10[%c5_298, %c0_299], %312 {strides = array<i32>} : memref<16x256xf32, #tpu.memory_space<vmem>>, vector<1x256xf32>,
    %c241_i32_300 = arith.constant 241 : i32
    %314 = tpu.dynamic_rotate %290 by %c241_i32_300 dim 1 : vector<1x256xf32>, i32 -> vector<1x256xf32>
    %c6_301 = arith.constant 6 : index
    %c0_302 = arith.constant 0 : index
    %315 = vector.load %arg2[%c6_301, %c0_302] : memref<9x256xf32, #tpu.memory_space<vmem>>, vector<1x256xf32>
    %316 = arith.mulf %314, %315 : vector<1x256xf32>
    %c6_303 = arith.constant 6 : index
    %c0_304 = arith.constant 0 : index
    %317 = vector.load %arg10[%c6_303, %c0_304] : memref<16x256xf32, #tpu.memory_space<vmem>>, vector<1x256xf32>
    tpu.vector_store %arg10[%c6_303, %c0_304], %316 {strides = array<i32>} : memref<16x256xf32, #tpu.memory_space<vmem>>, vector<1x256xf32>,
    %c240_i32_305 = arith.constant 240 : i32
    %318 = tpu.dynamic_rotate %290 by %c240_i32_305 dim 1 : vector<1x256xf32>, i32 -> vector<1x256xf32>
    %c7_306 = arith.constant 7 : index
    %c0_307 = arith.constant 0 : index
    %319 = vector.load %arg2[%c7_306, %c0_307] : memref<9x256xf32, #tpu.memory_space<vmem>>, vector<1x256xf32>
    %320 = arith.mulf %318, %319 : vector<1x256xf32>
    %c7_308 = arith.constant 7 : index
    %c0_309 = arith.constant 0 : index
    %321 = vector.load %arg10[%c7_308, %c0_309] : memref<16x256xf32, #tpu.memory_space<vmem>>, vector<1x256xf32>
    tpu.vector_store %arg10[%c7_308, %c0_309], %320 {strides = array<i32>} : memref<16x256xf32, #tpu.memory_space<vmem>>, vector<1x256xf32>,
    %c239_i32_310 = arith.constant 239 : i32
    %322 = tpu.dynamic_rotate %290 by %c239_i32_310 dim 1 : vector<1x256xf32>, i32 -> vector<1x256xf32>
    %c8_311 = arith.constant 8 : index
    %c0_312 = arith.constant 0 : index
    %323 = vector.load %arg2[%c8_311, %c0_312] : memref<9x256xf32, #tpu.memory_space<vmem>>, vector<1x256xf32>
    %324 = arith.mulf %322, %323 : vector<1x256xf32>
    %c8_313 = arith.constant 8 : index
    %c0_314 = arith.constant 0 : index
    %325 = vector.load %arg10[%c8_313, %c0_314] : memref<16x256xf32, #tpu.memory_space<vmem>>, vector<1x256xf32>
    tpu.vector_store %arg10[%c8_313, %c0_314], %324 {strides = array<i32>} : memref<16x256xf32, #tpu.memory_space<vmem>>, vector<1x256xf32>,
    %c0_315 = arith.constant 0 : index
    %c0_316 = arith.constant 0 : index
    %326 = vector.load %arg5[%c0_315, %c0_316] : memref<32x16xf32, #tpu.memory_space<vmem>>, vector<32x16xf32>
    %c0_317 = arith.constant 0 : index
    %c0_318 = arith.constant 0 : index
    %327 = vector.load %arg10[%c0_317, %c0_318] : memref<16x256xf32, #tpu.memory_space<vmem>>, vector<16x256xf32>
    %cst_319 = arith.constant dense<0.000000e+00> : vector<32x256xf32>
    %328 = tpu.matmul %326, %327, %cst_319 {dimension_numbers = #tpu.dot_dimension_numbers<[1], [0], [0], [1], [0, 0, 1, 1], [], []>} : vector<32x16xf32>, vector<16x256xf32>, vector<32x256xf32> -> vector<32x256xf32>
    %329 = arith.addf %289, %328 : vector<32x256xf32>
    %cst_320 = arith.constant 0.000000e+00 : f32
    %330 = vector.broadcast %cst_320 : f32 to vector<32x256xf32>
    %331 = arith.maximumf %329, %330 : vector<32x256xf32>
    %c0_321 = arith.constant 0 : index
    %c0_322 = arith.constant 0 : index
    %332 = vector.load %arg6[%c0_321, %c0_322] : memref<8x32xf32, #tpu.memory_space<vmem>>, vector<8x32xf32>
    %cst_323 = arith.constant dense<0.000000e+00> : vector<8x256xf32>
    %333 = tpu.matmul %332, %331, %cst_323 {dimension_numbers = #tpu.dot_dimension_numbers<[1], [0], [0], [1], [0, 0, 1, 1], [], []>} : vector<8x32xf32>, vector<32x256xf32>, vector<8x256xf32> -> vector<8x256xf32>
    %c0_324 = arith.constant 0 : index
    %c0_325 = arith.constant 0 : index
    %334 = vector.load %arg7[%c0_324, %c0_325] : memref<8x1xf32, #tpu.memory_space<vmem>>, vector<8x1xf32>
    %335 = vector.broadcast %334 : vector<8x1xf32> to vector<8x256xf32>
    %336 = arith.addf %333, %335 : vector<8x256xf32>
    %337 = vector.extract_strided_slice %336 {offsets = [0, 0], sizes = [1, 256], strides = [1, 1]} : vector<8x256xf32> to vector<1x256xf32>
    %338 = arith.negf %337 : vector<1x256xf32>
    %339 = math.exp %338 : vector<1x256xf32>
    %cst_326 = arith.constant 1.000000e+00 : f32
    %340 = vector.broadcast %cst_326 : f32 to vector<1x256xf32>
    %341 = arith.addf %340, %339 : vector<1x256xf32>
    %342 = arith.divf %340, %341 : vector<1x256xf32>
    %343 = vector.shape_cast %342 : vector<1x256xf32> to vector<1x256xf32>
    %344 = vector.broadcast %343 : vector<1x256xf32> to vector<8x256xf32>
    %345 = arith.select %5, %344, %336 : vector<8x256xi1>, vector<8x256xf32>
    %346 = arith.index_cast %c4_i32 : i32 to index
    %c0_327 = arith.constant 0 : index
    %c0_328 = arith.constant 0 : index
    %347 = vector.load %arg8[%346, %c0_327, %c0_328] : memref<8x8x256xf32, #tpu.memory_space<vmem>>, vector<1x8x256xf32>
    %348 = vector.shape_cast %347 : vector<1x8x256xf32> to vector<8x256xf32>
    %349 = vector.shape_cast %345 : vector<8x256xf32> to vector<1x8x256xf32>
    tpu.vector_store %arg8[%346, %c0_327, %c0_328], %349 {strides = array<i32>} : memref<8x8x256xf32, #tpu.memory_space<vmem>>, vector<1x8x256xf32>,
    %c0_329 = arith.constant 0 : index
    %c0_330 = arith.constant 0 : index
    %350 = vector.load %arg9[%c0_329, %c0_330] : memref<1x256xf32, #tpu.memory_space<vmem>>, vector<1x256xf32>
    tpu.vector_store %arg9[%c0_329, %c0_330], %342 {strides = array<i32>} : memref<1x256xf32, #tpu.memory_space<vmem>>, vector<1x256xf32>,
    %c5_i32 = arith.constant 5 : i32
    %c0_331 = arith.constant 0 : index
    %c0_332 = arith.constant 0 : index
    %351 = vector.load %arg3[%c0_331, %c0_332] : memref<32x48xf32, #tpu.memory_space<vmem>>, vector<32x48xf32>
    %352 = arith.index_cast %c5_i32 : i32 to index
    %c0_333 = arith.constant 0 : index
    %c0_334 = arith.constant 0 : index
    %353 = vector.load %arg1[%352, %c0_333, %c0_334] : memref<8x48x256xf32, #tpu.memory_space<vmem>>, vector<1x48x256xf32>
    %354 = vector.shape_cast %353 : vector<1x48x256xf32> to vector<48x256xf32>
    %cst_335 = arith.constant dense<0.000000e+00> : vector<32x256xf32>
    %355 = tpu.matmul %351, %354, %cst_335 {dimension_numbers = #tpu.dot_dimension_numbers<[1], [0], [0], [1], [0, 0, 1, 1], [], []>} : vector<32x48xf32>, vector<48x256xf32>, vector<32x256xf32> -> vector<32x256xf32>
    %c0_336 = arith.constant 0 : index
    %c0_337 = arith.constant 0 : index
    %356 = vector.load %arg4[%c0_336, %c0_337] : memref<32x1xf32, #tpu.memory_space<vmem>>, vector<32x1xf32>
    %357 = vector.broadcast %356 : vector<32x1xf32> to vector<32x256xf32>
    %358 = arith.addf %355, %357 : vector<32x256xf32>
    %c0_338 = arith.constant 0 : index
    %c0_339 = arith.constant 0 : index
    %359 = vector.load %arg9[%c0_338, %c0_339] : memref<1x256xf32, #tpu.memory_space<vmem>>, vector<1x256xf32>
    %c17_i32_340 = arith.constant 17 : i32
    %360 = tpu.dynamic_rotate %359 by %c17_i32_340 dim 1 : vector<1x256xf32>, i32 -> vector<1x256xf32>
    %c0_341 = arith.constant 0 : index
    %c0_342 = arith.constant 0 : index
    %361 = vector.load %arg2[%c0_341, %c0_342] : memref<9x256xf32, #tpu.memory_space<vmem>>, vector<1x256xf32>
    %362 = arith.mulf %360, %361 : vector<1x256xf32>
    %c0_343 = arith.constant 0 : index
    %c0_344 = arith.constant 0 : index
    %363 = vector.load %arg10[%c0_343, %c0_344] : memref<16x256xf32, #tpu.memory_space<vmem>>, vector<1x256xf32>
    tpu.vector_store %arg10[%c0_343, %c0_344], %362 {strides = array<i32>} : memref<16x256xf32, #tpu.memory_space<vmem>>, vector<1x256xf32>,
    %c16_i32_345 = arith.constant 16 : i32
    %364 = tpu.dynamic_rotate %359 by %c16_i32_345 dim 1 : vector<1x256xf32>, i32 -> vector<1x256xf32>
    %c1_346 = arith.constant 1 : index
    %c0_347 = arith.constant 0 : index
    %365 = vector.load %arg2[%c1_346, %c0_347] : memref<9x256xf32, #tpu.memory_space<vmem>>, vector<1x256xf32>
    %366 = arith.mulf %364, %365 : vector<1x256xf32>
    %c1_348 = arith.constant 1 : index
    %c0_349 = arith.constant 0 : index
    %367 = vector.load %arg10[%c1_348, %c0_349] : memref<16x256xf32, #tpu.memory_space<vmem>>, vector<1x256xf32>
    tpu.vector_store %arg10[%c1_348, %c0_349], %366 {strides = array<i32>} : memref<16x256xf32, #tpu.memory_space<vmem>>, vector<1x256xf32>,
    %c15_i32_350 = arith.constant 15 : i32
    %368 = tpu.dynamic_rotate %359 by %c15_i32_350 dim 1 : vector<1x256xf32>, i32 -> vector<1x256xf32>
    %c2_351 = arith.constant 2 : index
    %c0_352 = arith.constant 0 : index
    %369 = vector.load %arg2[%c2_351, %c0_352] : memref<9x256xf32, #tpu.memory_space<vmem>>, vector<1x256xf32>
    %370 = arith.mulf %368, %369 : vector<1x256xf32>
    %c2_353 = arith.constant 2 : index
    %c0_354 = arith.constant 0 : index
    %371 = vector.load %arg10[%c2_353, %c0_354] : memref<16x256xf32, #tpu.memory_space<vmem>>, vector<1x256xf32>
    tpu.vector_store %arg10[%c2_353, %c0_354], %370 {strides = array<i32>} : memref<16x256xf32, #tpu.memory_space<vmem>>, vector<1x256xf32>,
    %c1_i32_355 = arith.constant 1 : i32
    %372 = tpu.dynamic_rotate %359 by %c1_i32_355 dim 1 : vector<1x256xf32>, i32 -> vector<1x256xf32>
    %c3_356 = arith.constant 3 : index
    %c0_357 = arith.constant 0 : index
    %373 = vector.load %arg2[%c3_356, %c0_357] : memref<9x256xf32, #tpu.memory_space<vmem>>, vector<1x256xf32>
    %374 = arith.mulf %372, %373 : vector<1x256xf32>
    %c3_358 = arith.constant 3 : index
    %c0_359 = arith.constant 0 : index
    %375 = vector.load %arg10[%c3_358, %c0_359] : memref<16x256xf32, #tpu.memory_space<vmem>>, vector<1x256xf32>
    tpu.vector_store %arg10[%c3_358, %c0_359], %374 {strides = array<i32>} : memref<16x256xf32, #tpu.memory_space<vmem>>, vector<1x256xf32>,
    %c4_360 = arith.constant 4 : index
    %c0_361 = arith.constant 0 : index
    %376 = vector.load %arg2[%c4_360, %c0_361] : memref<9x256xf32, #tpu.memory_space<vmem>>, vector<1x256xf32>
    %377 = arith.mulf %359, %376 : vector<1x256xf32>
    %c4_362 = arith.constant 4 : index
    %c0_363 = arith.constant 0 : index
    %378 = vector.load %arg10[%c4_362, %c0_363] : memref<16x256xf32, #tpu.memory_space<vmem>>, vector<1x256xf32>
    tpu.vector_store %arg10[%c4_362, %c0_363], %377 {strides = array<i32>} : memref<16x256xf32, #tpu.memory_space<vmem>>, vector<1x256xf32>,
    %c255_i32_364 = arith.constant 255 : i32
    %379 = tpu.dynamic_rotate %359 by %c255_i32_364 dim 1 : vector<1x256xf32>, i32 -> vector<1x256xf32>
    %c5_365 = arith.constant 5 : index
    %c0_366 = arith.constant 0 : index
    %380 = vector.load %arg2[%c5_365, %c0_366] : memref<9x256xf32, #tpu.memory_space<vmem>>, vector<1x256xf32>
    %381 = arith.mulf %379, %380 : vector<1x256xf32>
    %c5_367 = arith.constant 5 : index
    %c0_368 = arith.constant 0 : index
    %382 = vector.load %arg10[%c5_367, %c0_368] : memref<16x256xf32, #tpu.memory_space<vmem>>, vector<1x256xf32>
    tpu.vector_store %arg10[%c5_367, %c0_368], %381 {strides = array<i32>} : memref<16x256xf32, #tpu.memory_space<vmem>>, vector<1x256xf32>,
    %c241_i32_369 = arith.constant 241 : i32
    %383 = tpu.dynamic_rotate %359 by %c241_i32_369 dim 1 : vector<1x256xf32>, i32 -> vector<1x256xf32>
    %c6_370 = arith.constant 6 : index
    %c0_371 = arith.constant 0 : index
    %384 = vector.load %arg2[%c6_370, %c0_371] : memref<9x256xf32, #tpu.memory_space<vmem>>, vector<1x256xf32>
    %385 = arith.mulf %383, %384 : vector<1x256xf32>
    %c6_372 = arith.constant 6 : index
    %c0_373 = arith.constant 0 : index
    %386 = vector.load %arg10[%c6_372, %c0_373] : memref<16x256xf32, #tpu.memory_space<vmem>>, vector<1x256xf32>
    tpu.vector_store %arg10[%c6_372, %c0_373], %385 {strides = array<i32>} : memref<16x256xf32, #tpu.memory_space<vmem>>, vector<1x256xf32>,
    %c240_i32_374 = arith.constant 240 : i32
    %387 = tpu.dynamic_rotate %359 by %c240_i32_374 dim 1 : vector<1x256xf32>, i32 -> vector<1x256xf32>
    %c7_375 = arith.constant 7 : index
    %c0_376 = arith.constant 0 : index
    %388 = vector.load %arg2[%c7_375, %c0_376] : memref<9x256xf32, #tpu.memory_space<vmem>>, vector<1x256xf32>
    %389 = arith.mulf %387, %388 : vector<1x256xf32>
    %c7_377 = arith.constant 7 : index
    %c0_378 = arith.constant 0 : index
    %390 = vector.load %arg10[%c7_377, %c0_378] : memref<16x256xf32, #tpu.memory_space<vmem>>, vector<1x256xf32>
    tpu.vector_store %arg10[%c7_377, %c0_378], %389 {strides = array<i32>} : memref<16x256xf32, #tpu.memory_space<vmem>>, vector<1x256xf32>,
    %c239_i32_379 = arith.constant 239 : i32
    %391 = tpu.dynamic_rotate %359 by %c239_i32_379 dim 1 : vector<1x256xf32>, i32 -> vector<1x256xf32>
    %c8_380 = arith.constant 8 : index
    %c0_381 = arith.constant 0 : index
    %392 = vector.load %arg2[%c8_380, %c0_381] : memref<9x256xf32, #tpu.memory_space<vmem>>, vector<1x256xf32>
    %393 = arith.mulf %391, %392 : vector<1x256xf32>
    %c8_382 = arith.constant 8 : index
    %c0_383 = arith.constant 0 : index
    %394 = vector.load %arg10[%c8_382, %c0_383] : memref<16x256xf32, #tpu.memory_space<vmem>>, vector<1x256xf32>
    tpu.vector_store %arg10[%c8_382, %c0_383], %393 {strides = array<i32>} : memref<16x256xf32, #tpu.memory_space<vmem>>, vector<1x256xf32>,
    %c0_384 = arith.constant 0 : index
    %c0_385 = arith.constant 0 : index
    %395 = vector.load %arg5[%c0_384, %c0_385] : memref<32x16xf32, #tpu.memory_space<vmem>>, vector<32x16xf32>
    %c0_386 = arith.constant 0 : index
    %c0_387 = arith.constant 0 : index
    %396 = vector.load %arg10[%c0_386, %c0_387] : memref<16x256xf32, #tpu.memory_space<vmem>>, vector<16x256xf32>
    %cst_388 = arith.constant dense<0.000000e+00> : vector<32x256xf32>
    %397 = tpu.matmul %395, %396, %cst_388 {dimension_numbers = #tpu.dot_dimension_numbers<[1], [0], [0], [1], [0, 0, 1, 1], [], []>} : vector<32x16xf32>, vector<16x256xf32>, vector<32x256xf32> -> vector<32x256xf32>
    %398 = arith.addf %358, %397 : vector<32x256xf32>
    %cst_389 = arith.constant 0.000000e+00 : f32
    %399 = vector.broadcast %cst_389 : f32 to vector<32x256xf32>
    %400 = arith.maximumf %398, %399 : vector<32x256xf32>
    %c0_390 = arith.constant 0 : index
    %c0_391 = arith.constant 0 : index
    %401 = vector.load %arg6[%c0_390, %c0_391] : memref<8x32xf32, #tpu.memory_space<vmem>>, vector<8x32xf32>
    %cst_392 = arith.constant dense<0.000000e+00> : vector<8x256xf32>
    %402 = tpu.matmul %401, %400, %cst_392 {dimension_numbers = #tpu.dot_dimension_numbers<[1], [0], [0], [1], [0, 0, 1, 1], [], []>} : vector<8x32xf32>, vector<32x256xf32>, vector<8x256xf32> -> vector<8x256xf32>
    %c0_393 = arith.constant 0 : index
    %c0_394 = arith.constant 0 : index
    %403 = vector.load %arg7[%c0_393, %c0_394] : memref<8x1xf32, #tpu.memory_space<vmem>>, vector<8x1xf32>
    %404 = vector.broadcast %403 : vector<8x1xf32> to vector<8x256xf32>
    %405 = arith.addf %402, %404 : vector<8x256xf32>
    %406 = vector.extract_strided_slice %405 {offsets = [0, 0], sizes = [1, 256], strides = [1, 1]} : vector<8x256xf32> to vector<1x256xf32>
    %407 = arith.negf %406 : vector<1x256xf32>
    %408 = math.exp %407 : vector<1x256xf32>
    %cst_395 = arith.constant 1.000000e+00 : f32
    %409 = vector.broadcast %cst_395 : f32 to vector<1x256xf32>
    %410 = arith.addf %409, %408 : vector<1x256xf32>
    %411 = arith.divf %409, %410 : vector<1x256xf32>
    %412 = vector.shape_cast %411 : vector<1x256xf32> to vector<1x256xf32>
    %413 = vector.broadcast %412 : vector<1x256xf32> to vector<8x256xf32>
    %414 = arith.select %5, %413, %405 : vector<8x256xi1>, vector<8x256xf32>
    %415 = arith.index_cast %c5_i32 : i32 to index
    %c0_396 = arith.constant 0 : index
    %c0_397 = arith.constant 0 : index
    %416 = vector.load %arg8[%415, %c0_396, %c0_397] : memref<8x8x256xf32, #tpu.memory_space<vmem>>, vector<1x8x256xf32>
    %417 = vector.shape_cast %416 : vector<1x8x256xf32> to vector<8x256xf32>
    %418 = vector.shape_cast %414 : vector<8x256xf32> to vector<1x8x256xf32>
    tpu.vector_store %arg8[%415, %c0_396, %c0_397], %418 {strides = array<i32>} : memref<8x8x256xf32, #tpu.memory_space<vmem>>, vector<1x8x256xf32>,
    %c0_398 = arith.constant 0 : index
    %c0_399 = arith.constant 0 : index
    %419 = vector.load %arg9[%c0_398, %c0_399] : memref<1x256xf32, #tpu.memory_space<vmem>>, vector<1x256xf32>
    tpu.vector_store %arg9[%c0_398, %c0_399], %411 {strides = array<i32>} : memref<1x256xf32, #tpu.memory_space<vmem>>, vector<1x256xf32>,
    %c6_i32 = arith.constant 6 : i32
    %c0_400 = arith.constant 0 : index
    %c0_401 = arith.constant 0 : index
    %420 = vector.load %arg3[%c0_400, %c0_401] : memref<32x48xf32, #tpu.memory_space<vmem>>, vector<32x48xf32>
    %421 = arith.index_cast %c6_i32 : i32 to index
    %c0_402 = arith.constant 0 : index
    %c0_403 = arith.constant 0 : index
    %422 = vector.load %arg1[%421, %c0_402, %c0_403] : memref<8x48x256xf32, #tpu.memory_space<vmem>>, vector<1x48x256xf32>
    %423 = vector.shape_cast %422 : vector<1x48x256xf32> to vector<48x256xf32>
    %cst_404 = arith.constant dense<0.000000e+00> : vector<32x256xf32>
    %424 = tpu.matmul %420, %423, %cst_404 {dimension_numbers = #tpu.dot_dimension_numbers<[1], [0], [0], [1], [0, 0, 1, 1], [], []>} : vector<32x48xf32>, vector<48x256xf32>, vector<32x256xf32> -> vector<32x256xf32>
    %c0_405 = arith.constant 0 : index
    %c0_406 = arith.constant 0 : index
    %425 = vector.load %arg4[%c0_405, %c0_406] : memref<32x1xf32, #tpu.memory_space<vmem>>, vector<32x1xf32>
    %426 = vector.broadcast %425 : vector<32x1xf32> to vector<32x256xf32>
    %427 = arith.addf %424, %426 : vector<32x256xf32>
    %c0_407 = arith.constant 0 : index
    %c0_408 = arith.constant 0 : index
    %428 = vector.load %arg9[%c0_407, %c0_408] : memref<1x256xf32, #tpu.memory_space<vmem>>, vector<1x256xf32>
    %c17_i32_409 = arith.constant 17 : i32
    %429 = tpu.dynamic_rotate %428 by %c17_i32_409 dim 1 : vector<1x256xf32>, i32 -> vector<1x256xf32>
    %c0_410 = arith.constant 0 : index
    %c0_411 = arith.constant 0 : index
    %430 = vector.load %arg2[%c0_410, %c0_411] : memref<9x256xf32, #tpu.memory_space<vmem>>, vector<1x256xf32>
    %431 = arith.mulf %429, %430 : vector<1x256xf32>
    %c0_412 = arith.constant 0 : index
    %c0_413 = arith.constant 0 : index
    %432 = vector.load %arg10[%c0_412, %c0_413] : memref<16x256xf32, #tpu.memory_space<vmem>>, vector<1x256xf32>
    tpu.vector_store %arg10[%c0_412, %c0_413], %431 {strides = array<i32>} : memref<16x256xf32, #tpu.memory_space<vmem>>, vector<1x256xf32>,
    %c16_i32_414 = arith.constant 16 : i32
    %433 = tpu.dynamic_rotate %428 by %c16_i32_414 dim 1 : vector<1x256xf32>, i32 -> vector<1x256xf32>
    %c1_415 = arith.constant 1 : index
    %c0_416 = arith.constant 0 : index
    %434 = vector.load %arg2[%c1_415, %c0_416] : memref<9x256xf32, #tpu.memory_space<vmem>>, vector<1x256xf32>
    %435 = arith.mulf %433, %434 : vector<1x256xf32>
    %c1_417 = arith.constant 1 : index
    %c0_418 = arith.constant 0 : index
    %436 = vector.load %arg10[%c1_417, %c0_418] : memref<16x256xf32, #tpu.memory_space<vmem>>, vector<1x256xf32>
    tpu.vector_store %arg10[%c1_417, %c0_418], %435 {strides = array<i32>} : memref<16x256xf32, #tpu.memory_space<vmem>>, vector<1x256xf32>,
    %c15_i32_419 = arith.constant 15 : i32
    %437 = tpu.dynamic_rotate %428 by %c15_i32_419 dim 1 : vector<1x256xf32>, i32 -> vector<1x256xf32>
    %c2_420 = arith.constant 2 : index
    %c0_421 = arith.constant 0 : index
    %438 = vector.load %arg2[%c2_420, %c0_421] : memref<9x256xf32, #tpu.memory_space<vmem>>, vector<1x256xf32>
    %439 = arith.mulf %437, %438 : vector<1x256xf32>
    %c2_422 = arith.constant 2 : index
    %c0_423 = arith.constant 0 : index
    %440 = vector.load %arg10[%c2_422, %c0_423] : memref<16x256xf32, #tpu.memory_space<vmem>>, vector<1x256xf32>
    tpu.vector_store %arg10[%c2_422, %c0_423], %439 {strides = array<i32>} : memref<16x256xf32, #tpu.memory_space<vmem>>, vector<1x256xf32>,
    %c1_i32_424 = arith.constant 1 : i32
    %441 = tpu.dynamic_rotate %428 by %c1_i32_424 dim 1 : vector<1x256xf32>, i32 -> vector<1x256xf32>
    %c3_425 = arith.constant 3 : index
    %c0_426 = arith.constant 0 : index
    %442 = vector.load %arg2[%c3_425, %c0_426] : memref<9x256xf32, #tpu.memory_space<vmem>>, vector<1x256xf32>
    %443 = arith.mulf %441, %442 : vector<1x256xf32>
    %c3_427 = arith.constant 3 : index
    %c0_428 = arith.constant 0 : index
    %444 = vector.load %arg10[%c3_427, %c0_428] : memref<16x256xf32, #tpu.memory_space<vmem>>, vector<1x256xf32>
    tpu.vector_store %arg10[%c3_427, %c0_428], %443 {strides = array<i32>} : memref<16x256xf32, #tpu.memory_space<vmem>>, vector<1x256xf32>,
    %c4_429 = arith.constant 4 : index
    %c0_430 = arith.constant 0 : index
    %445 = vector.load %arg2[%c4_429, %c0_430] : memref<9x256xf32, #tpu.memory_space<vmem>>, vector<1x256xf32>
    %446 = arith.mulf %428, %445 : vector<1x256xf32>
    %c4_431 = arith.constant 4 : index
    %c0_432 = arith.constant 0 : index
    %447 = vector.load %arg10[%c4_431, %c0_432] : memref<16x256xf32, #tpu.memory_space<vmem>>, vector<1x256xf32>
    tpu.vector_store %arg10[%c4_431, %c0_432], %446 {strides = array<i32>} : memref<16x256xf32, #tpu.memory_space<vmem>>, vector<1x256xf32>,
    %c255_i32_433 = arith.constant 255 : i32
    %448 = tpu.dynamic_rotate %428 by %c255_i32_433 dim 1 : vector<1x256xf32>, i32 -> vector<1x256xf32>
    %c5_434 = arith.constant 5 : index
    %c0_435 = arith.constant 0 : index
    %449 = vector.load %arg2[%c5_434, %c0_435] : memref<9x256xf32, #tpu.memory_space<vmem>>, vector<1x256xf32>
    %450 = arith.mulf %448, %449 : vector<1x256xf32>
    %c5_436 = arith.constant 5 : index
    %c0_437 = arith.constant 0 : index
    %451 = vector.load %arg10[%c5_436, %c0_437] : memref<16x256xf32, #tpu.memory_space<vmem>>, vector<1x256xf32>
    tpu.vector_store %arg10[%c5_436, %c0_437], %450 {strides = array<i32>} : memref<16x256xf32, #tpu.memory_space<vmem>>, vector<1x256xf32>,
    %c241_i32_438 = arith.constant 241 : i32
    %452 = tpu.dynamic_rotate %428 by %c241_i32_438 dim 1 : vector<1x256xf32>, i32 -> vector<1x256xf32>
    %c6_439 = arith.constant 6 : index
    %c0_440 = arith.constant 0 : index
    %453 = vector.load %arg2[%c6_439, %c0_440] : memref<9x256xf32, #tpu.memory_space<vmem>>, vector<1x256xf32>
    %454 = arith.mulf %452, %453 : vector<1x256xf32>
    %c6_441 = arith.constant 6 : index
    %c0_442 = arith.constant 0 : index
    %455 = vector.load %arg10[%c6_441, %c0_442] : memref<16x256xf32, #tpu.memory_space<vmem>>, vector<1x256xf32>
    tpu.vector_store %arg10[%c6_441, %c0_442], %454 {strides = array<i32>} : memref<16x256xf32, #tpu.memory_space<vmem>>, vector<1x256xf32>,
    %c240_i32_443 = arith.constant 240 : i32
    %456 = tpu.dynamic_rotate %428 by %c240_i32_443 dim 1 : vector<1x256xf32>, i32 -> vector<1x256xf32>
    %c7_444 = arith.constant 7 : index
    %c0_445 = arith.constant 0 : index
    %457 = vector.load %arg2[%c7_444, %c0_445] : memref<9x256xf32, #tpu.memory_space<vmem>>, vector<1x256xf32>
    %458 = arith.mulf %456, %457 : vector<1x256xf32>
    %c7_446 = arith.constant 7 : index
    %c0_447 = arith.constant 0 : index
    %459 = vector.load %arg10[%c7_446, %c0_447] : memref<16x256xf32, #tpu.memory_space<vmem>>, vector<1x256xf32>
    tpu.vector_store %arg10[%c7_446, %c0_447], %458 {strides = array<i32>} : memref<16x256xf32, #tpu.memory_space<vmem>>, vector<1x256xf32>,
    %c239_i32_448 = arith.constant 239 : i32
    %460 = tpu.dynamic_rotate %428 by %c239_i32_448 dim 1 : vector<1x256xf32>, i32 -> vector<1x256xf32>
    %c8_449 = arith.constant 8 : index
    %c0_450 = arith.constant 0 : index
    %461 = vector.load %arg2[%c8_449, %c0_450] : memref<9x256xf32, #tpu.memory_space<vmem>>, vector<1x256xf32>
    %462 = arith.mulf %460, %461 : vector<1x256xf32>
    %c8_451 = arith.constant 8 : index
    %c0_452 = arith.constant 0 : index
    %463 = vector.load %arg10[%c8_451, %c0_452] : memref<16x256xf32, #tpu.memory_space<vmem>>, vector<1x256xf32>
    tpu.vector_store %arg10[%c8_451, %c0_452], %462 {strides = array<i32>} : memref<16x256xf32, #tpu.memory_space<vmem>>, vector<1x256xf32>,
    %c0_453 = arith.constant 0 : index
    %c0_454 = arith.constant 0 : index
    %464 = vector.load %arg5[%c0_453, %c0_454] : memref<32x16xf32, #tpu.memory_space<vmem>>, vector<32x16xf32>
    %c0_455 = arith.constant 0 : index
    %c0_456 = arith.constant 0 : index
    %465 = vector.load %arg10[%c0_455, %c0_456] : memref<16x256xf32, #tpu.memory_space<vmem>>, vector<16x256xf32>
    %cst_457 = arith.constant dense<0.000000e+00> : vector<32x256xf32>
    %466 = tpu.matmul %464, %465, %cst_457 {dimension_numbers = #tpu.dot_dimension_numbers<[1], [0], [0], [1], [0, 0, 1, 1], [], []>} : vector<32x16xf32>, vector<16x256xf32>, vector<32x256xf32> -> vector<32x256xf32>
    %467 = arith.addf %427, %466 : vector<32x256xf32>
    %cst_458 = arith.constant 0.000000e+00 : f32
    %468 = vector.broadcast %cst_458 : f32 to vector<32x256xf32>
    %469 = arith.maximumf %467, %468 : vector<32x256xf32>
    %c0_459 = arith.constant 0 : index
    %c0_460 = arith.constant 0 : index
    %470 = vector.load %arg6[%c0_459, %c0_460] : memref<8x32xf32, #tpu.memory_space<vmem>>, vector<8x32xf32>
    %cst_461 = arith.constant dense<0.000000e+00> : vector<8x256xf32>
    %471 = tpu.matmul %470, %469, %cst_461 {dimension_numbers = #tpu.dot_dimension_numbers<[1], [0], [0], [1], [0, 0, 1, 1], [], []>} : vector<8x32xf32>, vector<32x256xf32>, vector<8x256xf32> -> vector<8x256xf32>
    %c0_462 = arith.constant 0 : index
    %c0_463 = arith.constant 0 : index
    %472 = vector.load %arg7[%c0_462, %c0_463] : memref<8x1xf32, #tpu.memory_space<vmem>>, vector<8x1xf32>
    %473 = vector.broadcast %472 : vector<8x1xf32> to vector<8x256xf32>
    %474 = arith.addf %471, %473 : vector<8x256xf32>
    %475 = vector.extract_strided_slice %474 {offsets = [0, 0], sizes = [1, 256], strides = [1, 1]} : vector<8x256xf32> to vector<1x256xf32>
    %476 = arith.negf %475 : vector<1x256xf32>
    %477 = math.exp %476 : vector<1x256xf32>
    %cst_464 = arith.constant 1.000000e+00 : f32
    %478 = vector.broadcast %cst_464 : f32 to vector<1x256xf32>
    %479 = arith.addf %478, %477 : vector<1x256xf32>
    %480 = arith.divf %478, %479 : vector<1x256xf32>
    %481 = vector.shape_cast %480 : vector<1x256xf32> to vector<1x256xf32>
    %482 = vector.broadcast %481 : vector<1x256xf32> to vector<8x256xf32>
    %483 = arith.select %5, %482, %474 : vector<8x256xi1>, vector<8x256xf32>
    %484 = arith.index_cast %c6_i32 : i32 to index
    %c0_465 = arith.constant 0 : index
    %c0_466 = arith.constant 0 : index
    %485 = vector.load %arg8[%484, %c0_465, %c0_466] : memref<8x8x256xf32, #tpu.memory_space<vmem>>, vector<1x8x256xf32>
    %486 = vector.shape_cast %485 : vector<1x8x256xf32> to vector<8x256xf32>
    %487 = vector.shape_cast %483 : vector<8x256xf32> to vector<1x8x256xf32>
    tpu.vector_store %arg8[%484, %c0_465, %c0_466], %487 {strides = array<i32>} : memref<8x8x256xf32, #tpu.memory_space<vmem>>, vector<1x8x256xf32>,
    %c0_467 = arith.constant 0 : index
    %c0_468 = arith.constant 0 : index
    %488 = vector.load %arg9[%c0_467, %c0_468] : memref<1x256xf32, #tpu.memory_space<vmem>>, vector<1x256xf32>
    tpu.vector_store %arg9[%c0_467, %c0_468], %480 {strides = array<i32>} : memref<1x256xf32, #tpu.memory_space<vmem>>, vector<1x256xf32>,
    %c7_i32 = arith.constant 7 : i32
    %c0_469 = arith.constant 0 : index
    %c0_470 = arith.constant 0 : index
    %489 = vector.load %arg3[%c0_469, %c0_470] : memref<32x48xf32, #tpu.memory_space<vmem>>, vector<32x48xf32>
    %490 = arith.index_cast %c7_i32 : i32 to index
    %c0_471 = arith.constant 0 : index
    %c0_472 = arith.constant 0 : index
    %491 = vector.load %arg1[%490, %c0_471, %c0_472] : memref<8x48x256xf32, #tpu.memory_space<vmem>>, vector<1x48x256xf32>
    %492 = vector.shape_cast %491 : vector<1x48x256xf32> to vector<48x256xf32>
    %cst_473 = arith.constant dense<0.000000e+00> : vector<32x256xf32>
    %493 = tpu.matmul %489, %492, %cst_473 {dimension_numbers = #tpu.dot_dimension_numbers<[1], [0], [0], [1], [0, 0, 1, 1], [], []>} : vector<32x48xf32>, vector<48x256xf32>, vector<32x256xf32> -> vector<32x256xf32>
    %c0_474 = arith.constant 0 : index
    %c0_475 = arith.constant 0 : index
    %494 = vector.load %arg4[%c0_474, %c0_475] : memref<32x1xf32, #tpu.memory_space<vmem>>, vector<32x1xf32>
    %495 = vector.broadcast %494 : vector<32x1xf32> to vector<32x256xf32>
    %496 = arith.addf %493, %495 : vector<32x256xf32>
    %c0_476 = arith.constant 0 : index
    %c0_477 = arith.constant 0 : index
    %497 = vector.load %arg9[%c0_476, %c0_477] : memref<1x256xf32, #tpu.memory_space<vmem>>, vector<1x256xf32>
    %c17_i32_478 = arith.constant 17 : i32
    %498 = tpu.dynamic_rotate %497 by %c17_i32_478 dim 1 : vector<1x256xf32>, i32 -> vector<1x256xf32>
    %c0_479 = arith.constant 0 : index
    %c0_480 = arith.constant 0 : index
    %499 = vector.load %arg2[%c0_479, %c0_480] : memref<9x256xf32, #tpu.memory_space<vmem>>, vector<1x256xf32>
    %500 = arith.mulf %498, %499 : vector<1x256xf32>
    %c0_481 = arith.constant 0 : index
    %c0_482 = arith.constant 0 : index
    %501 = vector.load %arg10[%c0_481, %c0_482] : memref<16x256xf32, #tpu.memory_space<vmem>>, vector<1x256xf32>
    tpu.vector_store %arg10[%c0_481, %c0_482], %500 {strides = array<i32>} : memref<16x256xf32, #tpu.memory_space<vmem>>, vector<1x256xf32>,
    %c16_i32_483 = arith.constant 16 : i32
    %502 = tpu.dynamic_rotate %497 by %c16_i32_483 dim 1 : vector<1x256xf32>, i32 -> vector<1x256xf32>
    %c1_484 = arith.constant 1 : index
    %c0_485 = arith.constant 0 : index
    %503 = vector.load %arg2[%c1_484, %c0_485] : memref<9x256xf32, #tpu.memory_space<vmem>>, vector<1x256xf32>
    %504 = arith.mulf %502, %503 : vector<1x256xf32>
    %c1_486 = arith.constant 1 : index
    %c0_487 = arith.constant 0 : index
    %505 = vector.load %arg10[%c1_486, %c0_487] : memref<16x256xf32, #tpu.memory_space<vmem>>, vector<1x256xf32>
    tpu.vector_store %arg10[%c1_486, %c0_487], %504 {strides = array<i32>} : memref<16x256xf32, #tpu.memory_space<vmem>>, vector<1x256xf32>,
    %c15_i32_488 = arith.constant 15 : i32
    %506 = tpu.dynamic_rotate %497 by %c15_i32_488 dim 1 : vector<1x256xf32>, i32 -> vector<1x256xf32>
    %c2_489 = arith.constant 2 : index
    %c0_490 = arith.constant 0 : index
    %507 = vector.load %arg2[%c2_489, %c0_490] : memref<9x256xf32, #tpu.memory_space<vmem>>, vector<1x256xf32>
    %508 = arith.mulf %506, %507 : vector<1x256xf32>
    %c2_491 = arith.constant 2 : index
    %c0_492 = arith.constant 0 : index
    %509 = vector.load %arg10[%c2_491, %c0_492] : memref<16x256xf32, #tpu.memory_space<vmem>>, vector<1x256xf32>
    tpu.vector_store %arg10[%c2_491, %c0_492], %508 {strides = array<i32>} : memref<16x256xf32, #tpu.memory_space<vmem>>, vector<1x256xf32>,
    %c1_i32_493 = arith.constant 1 : i32
    %510 = tpu.dynamic_rotate %497 by %c1_i32_493 dim 1 : vector<1x256xf32>, i32 -> vector<1x256xf32>
    %c3_494 = arith.constant 3 : index
    %c0_495 = arith.constant 0 : index
    %511 = vector.load %arg2[%c3_494, %c0_495] : memref<9x256xf32, #tpu.memory_space<vmem>>, vector<1x256xf32>
    %512 = arith.mulf %510, %511 : vector<1x256xf32>
    %c3_496 = arith.constant 3 : index
    %c0_497 = arith.constant 0 : index
    %513 = vector.load %arg10[%c3_496, %c0_497] : memref<16x256xf32, #tpu.memory_space<vmem>>, vector<1x256xf32>
    tpu.vector_store %arg10[%c3_496, %c0_497], %512 {strides = array<i32>} : memref<16x256xf32, #tpu.memory_space<vmem>>, vector<1x256xf32>,
    %c4_498 = arith.constant 4 : index
    %c0_499 = arith.constant 0 : index
    %514 = vector.load %arg2[%c4_498, %c0_499] : memref<9x256xf32, #tpu.memory_space<vmem>>, vector<1x256xf32>
    %515 = arith.mulf %497, %514 : vector<1x256xf32>
    %c4_500 = arith.constant 4 : index
    %c0_501 = arith.constant 0 : index
    %516 = vector.load %arg10[%c4_500, %c0_501] : memref<16x256xf32, #tpu.memory_space<vmem>>, vector<1x256xf32>
    tpu.vector_store %arg10[%c4_500, %c0_501], %515 {strides = array<i32>} : memref<16x256xf32, #tpu.memory_space<vmem>>, vector<1x256xf32>,
    %c255_i32_502 = arith.constant 255 : i32
    %517 = tpu.dynamic_rotate %497 by %c255_i32_502 dim 1 : vector<1x256xf32>, i32 -> vector<1x256xf32>
    %c5_503 = arith.constant 5 : index
    %c0_504 = arith.constant 0 : index
    %518 = vector.load %arg2[%c5_503, %c0_504] : memref<9x256xf32, #tpu.memory_space<vmem>>, vector<1x256xf32>
    %519 = arith.mulf %517, %518 : vector<1x256xf32>
    %c5_505 = arith.constant 5 : index
    %c0_506 = arith.constant 0 : index
    %520 = vector.load %arg10[%c5_505, %c0_506] : memref<16x256xf32, #tpu.memory_space<vmem>>, vector<1x256xf32>
    tpu.vector_store %arg10[%c5_505, %c0_506], %519 {strides = array<i32>} : memref<16x256xf32, #tpu.memory_space<vmem>>, vector<1x256xf32>,
    %c241_i32_507 = arith.constant 241 : i32
    %521 = tpu.dynamic_rotate %497 by %c241_i32_507 dim 1 : vector<1x256xf32>, i32 -> vector<1x256xf32>
    %c6_508 = arith.constant 6 : index
    %c0_509 = arith.constant 0 : index
    %522 = vector.load %arg2[%c6_508, %c0_509] : memref<9x256xf32, #tpu.memory_space<vmem>>, vector<1x256xf32>
    %523 = arith.mulf %521, %522 : vector<1x256xf32>
    %c6_510 = arith.constant 6 : index
    %c0_511 = arith.constant 0 : index
    %524 = vector.load %arg10[%c6_510, %c0_511] : memref<16x256xf32, #tpu.memory_space<vmem>>, vector<1x256xf32>
    tpu.vector_store %arg10[%c6_510, %c0_511], %523 {strides = array<i32>} : memref<16x256xf32, #tpu.memory_space<vmem>>, vector<1x256xf32>,
    %c240_i32_512 = arith.constant 240 : i32
    %525 = tpu.dynamic_rotate %497 by %c240_i32_512 dim 1 : vector<1x256xf32>, i32 -> vector<1x256xf32>
    %c7_513 = arith.constant 7 : index
    %c0_514 = arith.constant 0 : index
    %526 = vector.load %arg2[%c7_513, %c0_514] : memref<9x256xf32, #tpu.memory_space<vmem>>, vector<1x256xf32>
    %527 = arith.mulf %525, %526 : vector<1x256xf32>
    %c7_515 = arith.constant 7 : index
    %c0_516 = arith.constant 0 : index
    %528 = vector.load %arg10[%c7_515, %c0_516] : memref<16x256xf32, #tpu.memory_space<vmem>>, vector<1x256xf32>
    tpu.vector_store %arg10[%c7_515, %c0_516], %527 {strides = array<i32>} : memref<16x256xf32, #tpu.memory_space<vmem>>, vector<1x256xf32>,
    %c239_i32_517 = arith.constant 239 : i32
    %529 = tpu.dynamic_rotate %497 by %c239_i32_517 dim 1 : vector<1x256xf32>, i32 -> vector<1x256xf32>
    %c8_518 = arith.constant 8 : index
    %c0_519 = arith.constant 0 : index
    %530 = vector.load %arg2[%c8_518, %c0_519] : memref<9x256xf32, #tpu.memory_space<vmem>>, vector<1x256xf32>
    %531 = arith.mulf %529, %530 : vector<1x256xf32>
    %c8_520 = arith.constant 8 : index
    %c0_521 = arith.constant 0 : index
    %532 = vector.load %arg10[%c8_520, %c0_521] : memref<16x256xf32, #tpu.memory_space<vmem>>, vector<1x256xf32>
    tpu.vector_store %arg10[%c8_520, %c0_521], %531 {strides = array<i32>} : memref<16x256xf32, #tpu.memory_space<vmem>>, vector<1x256xf32>,
    %c0_522 = arith.constant 0 : index
    %c0_523 = arith.constant 0 : index
    %533 = vector.load %arg5[%c0_522, %c0_523] : memref<32x16xf32, #tpu.memory_space<vmem>>, vector<32x16xf32>
    %c0_524 = arith.constant 0 : index
    %c0_525 = arith.constant 0 : index
    %534 = vector.load %arg10[%c0_524, %c0_525] : memref<16x256xf32, #tpu.memory_space<vmem>>, vector<16x256xf32>
    %cst_526 = arith.constant dense<0.000000e+00> : vector<32x256xf32>
    %535 = tpu.matmul %533, %534, %cst_526 {dimension_numbers = #tpu.dot_dimension_numbers<[1], [0], [0], [1], [0, 0, 1, 1], [], []>} : vector<32x16xf32>, vector<16x256xf32>, vector<32x256xf32> -> vector<32x256xf32>
    %536 = arith.addf %496, %535 : vector<32x256xf32>
    %cst_527 = arith.constant 0.000000e+00 : f32
    %537 = vector.broadcast %cst_527 : f32 to vector<32x256xf32>
    %538 = arith.maximumf %536, %537 : vector<32x256xf32>
    %c0_528 = arith.constant 0 : index
    %c0_529 = arith.constant 0 : index
    %539 = vector.load %arg6[%c0_528, %c0_529] : memref<8x32xf32, #tpu.memory_space<vmem>>, vector<8x32xf32>
    %cst_530 = arith.constant dense<0.000000e+00> : vector<8x256xf32>
    %540 = tpu.matmul %539, %538, %cst_530 {dimension_numbers = #tpu.dot_dimension_numbers<[1], [0], [0], [1], [0, 0, 1, 1], [], []>} : vector<8x32xf32>, vector<32x256xf32>, vector<8x256xf32> -> vector<8x256xf32>
    %c0_531 = arith.constant 0 : index
    %c0_532 = arith.constant 0 : index
    %541 = vector.load %arg7[%c0_531, %c0_532] : memref<8x1xf32, #tpu.memory_space<vmem>>, vector<8x1xf32>
    %542 = vector.broadcast %541 : vector<8x1xf32> to vector<8x256xf32>
    %543 = arith.addf %540, %542 : vector<8x256xf32>
    %544 = vector.extract_strided_slice %543 {offsets = [0, 0], sizes = [1, 256], strides = [1, 1]} : vector<8x256xf32> to vector<1x256xf32>
    %545 = arith.negf %544 : vector<1x256xf32>
    %546 = math.exp %545 : vector<1x256xf32>
    %cst_533 = arith.constant 1.000000e+00 : f32
    %547 = vector.broadcast %cst_533 : f32 to vector<1x256xf32>
    %548 = arith.addf %547, %546 : vector<1x256xf32>
    %549 = arith.divf %547, %548 : vector<1x256xf32>
    %550 = vector.shape_cast %549 : vector<1x256xf32> to vector<1x256xf32>
    %551 = vector.broadcast %550 : vector<1x256xf32> to vector<8x256xf32>
    %552 = arith.select %5, %551, %543 : vector<8x256xi1>, vector<8x256xf32>
    %553 = arith.index_cast %c7_i32 : i32 to index
    %c0_534 = arith.constant 0 : index
    %c0_535 = arith.constant 0 : index
    %554 = vector.load %arg8[%553, %c0_534, %c0_535] : memref<8x8x256xf32, #tpu.memory_space<vmem>>, vector<1x8x256xf32>
    %555 = vector.shape_cast %554 : vector<1x8x256xf32> to vector<8x256xf32>
    %556 = vector.shape_cast %552 : vector<8x256xf32> to vector<1x8x256xf32>
    tpu.vector_store %arg8[%553, %c0_534, %c0_535], %556 {strides = array<i32>} : memref<8x8x256xf32, #tpu.memory_space<vmem>>, vector<1x8x256xf32>,
    %c0_536 = arith.constant 0 : index
    %c0_537 = arith.constant 0 : index
    %557 = vector.load %arg9[%c0_536, %c0_537] : memref<1x256xf32, #tpu.memory_space<vmem>>, vector<1x256xf32>
    tpu.vector_store %arg9[%c0_536, %c0_537], %549 {strides = array<i32>} : memref<1x256xf32, #tpu.memory_space<vmem>>, vector<1x256xf32>,
    %c8_i32 = arith.constant 8 : i32
    return
  }
  func.func @transform_0(%arg0: i32) -> (i32, i32, i32) {
    %c0_i32 = arith.constant 0 : i32
    %c0_i32_0 = arith.constant 0 : i32
    %c0_i32_1 = arith.constant 0 : i32
    return %arg0, %c0_i32, %c0_i32_0 : i32, i32, i32
  }
  func.func @transform_1(%arg0: i32) -> (i32, i32) {
    %c0_i32 = arith.constant 0 : i32
    %c0_i32_0 = arith.constant 0 : i32
    %c0_i32_1 = arith.constant 0 : i32
    return %c0_i32, %c0_i32_0 : i32, i32
  }
  func.func @transform_2(%arg0: i32) -> (i32, i32) {
    %c0_i32 = arith.constant 0 : i32
    %c0_i32_0 = arith.constant 0 : i32
    %c0_i32_1 = arith.constant 0 : i32
    return %c0_i32, %c0_i32_0 : i32, i32
  }
  func.func @transform_3(%arg0: i32) -> (i32, i32) {
    %c0_i32 = arith.constant 0 : i32
    %c0_i32_0 = arith.constant 0 : i32
    %c0_i32_1 = arith.constant 0 : i32
    return %c0_i32, %c0_i32_0 : i32, i32
  }
  func.func @transform_4(%arg0: i32) -> (i32, i32) {
    %c0_i32 = arith.constant 0 : i32
    %c0_i32_0 = arith.constant 0 : i32
    %c0_i32_1 = arith.constant 0 : i32
    return %c0_i32, %c0_i32_0 : i32, i32
  }
  func.func @transform_5(%arg0: i32) -> (i32, i32) {
    %c0_i32 = arith.constant 0 : i32
    %c0_i32_0 = arith.constant 0 : i32
    %c0_i32_1 = arith.constant 0 : i32
    return %c0_i32, %c0_i32_0 : i32, i32
  }
  func.func @transform_6(%arg0: i32) -> (i32, i32) {
    %c0_i32 = arith.constant 0 : i32
    %c0_i32_0 = arith.constant 0 : i32
    %c0_i32_1 = arith.constant 0 : i32
    return %c0_i32, %c0_i32_0 : i32, i32
  }
  func.func @transform_7(%arg0: i32) -> (i32, i32, i32) {
    %c0_i32 = arith.constant 0 : i32
    %c0_i32_0 = arith.constant 0 : i32
    %c0_i32_1 = arith.constant 0 : i32
    return %arg0, %c0_i32, %c0_i32_0 : i32, i32, i32
  }
}

</mosaic_0001>

<bundles_post_ra>
// kernel: squeeze.2
= control target key start
LH: loop header
LB: loop body
LE: loop exit
PB: predicated region body
PF: predicated region fallthrough
CT: control target
= control target key end

     0   :  { %s187_s8 = smov 96   ;;  %s188_s9 = smov 112   ;;  %s256_s0 = inlined_call_operand.vmem [shape: f32[8,256], index: 0, kind: input, shape index: {}]   ;;  %s257_s1 = inlined_call_operand.hbm [shape: f32[8,16,16], index: 1, kind: output, shape index: {}]  }
   0x1   :  { %v37_v0 = vld.sshfl [vmem:[%s256_s0] sm:$0xff pattern:$0xb3a29180]   ;;  %v151_v1 = vld.sshfl [vmem:[%s256_s0 + $0x4] sm:$0xff pattern:$0xb3a29180]  }
   0x2   :  { %38 = vrot.lane.b32.xlu1 %v37_v0, %s187_s8  ;;  %21 = vrot.lane.b32.xlu0 %v37_v0, %s188_s9 }
   0x3   :  { %2 = vsyncpa [#allocation1], 0  ;;  %s189_s12 = smov 80   ;;  %vm4_vm0 = vcmask 130048   ;;  %v3_v2 = vld [vmem:[%s256_s0] sm:$0xff]   ;;  %v149_v3 = vld [vmem:[%s256_s0 + $0x8] sm:$0xff]  }
   0x4   :  { %5 = vst.msk [vmem:[#allocation0] ss:$16 sm:$0x3] %vm4_vm0, %v3_v2   ;;  %6 = vst.msk [vmem:[#allocation0] ss:$16 sm:$0xc] %vm4_vm0, %v3_v2  }
   0x5   :  { %7 = vst.msk [vmem:[#allocation0] ss:$16 sm:$0x30] %vm4_vm0, %v3_v2   ;;  %8 = vst.msk [vmem:[#allocation0] ss:$16 sm:$0xc0] %vm4_vm0, %v3_v2  }
   0x6   :  { %47 = vrot.lane.b32.xlu1 %v151_v1, %s187_s8  ;;  %30 = vrot.lane.b32.xlu0 %v151_v1, %s188_s9  ;;  %13 = vst.msk [vmem:[#allocation0 + $0x8] ss:$16 sm:$0x3] %vm4_vm0, %v149_v3   ;;  %15 = vst.msk [vmem:[#allocation0 + $0x8] ss:$16 sm:$0xc] %vm4_vm0, %v149_v3  }
   0x7   :  { %17 = vst.msk [vmem:[#allocation0 + $0x8] ss:$16 sm:$0x30] %vm4_vm0, %v149_v3   ;;  %19 = vst.msk [vmem:[#allocation0 + $0x8] ss:$16 sm:$0xc0] %vm4_vm0, %v149_v3  }
   0x8   :  { %s190_s0 = smov 64   ;;  %s191_s17 = smov 48  }
   0x9   :  { %s192_s18 = smov 32   ;;  %s193_s19 = smov 16  }
   0xa   :  { %64 = vrot.lane.b32.xlu1 %v151_v1, %s189_s12  ;;  %55 = vrot.lane.b32.xlu0 %v37_v0, %s189_s12  ;;  %s194_s20 = smov [#allocation0]  }
   0xb   :  { %s143_s21 = sshll.u32 %s194_s20, 4  ;;  %s144_s21 = int_to_ptr.vmem [resolvable:$true] %s143_s21 }
   0xc   :  { %s165_s22 = scalar_lea.vmem %s144_s21, 2048  ;;  %p170_p1 = scmp.lt.s32.totalorder %s144_s21, %s144_s21 }
   0xd   :  { %p166_p0 = scmp.ne.s32.totalorder %s144_s21, %s165_s22  ;;  %p171_p2 = scmp.lt.s32.totalorder %s165_s22, %s165_s22 }
   0xe   :  { %81 = vrot.lane.b32.xlu1 %v151_v1, %s190_s0  ;;  %72 = vrot.lane.b32.xlu0 %v37_v0, %s190_s0 }
   0xf   :  { %p172_p3 = por %p171_p2, %p170_p1 }
  0x11   :  { %p173_p4 = pnand %p172_p3, %p166_p0 }
  0x12   :  { %98 = vrot.lane.b32.xlu1 %v151_v1, %s191_s17  ;;  %89 = vrot.lane.b32.xlu0 %v37_v0, %s191_s17 }
  0x16   :  { %115 = vrot.lane.b32.xlu1 %v151_v1, %s192_s18  ;;  %106 = vrot.lane.b32.xlu0 %v37_v0, %s192_s18 }
  0x1a   :  { %132 = vrot.lane.b32.xlu1 %v151_v1, %s193_s19  ;;  %123 = vrot.lane.b32.xlu0 %v37_v0, %s193_s19 }
  0x74   :  { %v39_v4 = vpop.permute.xlu1 %38   ;;  %v22_v5 = vpop.permute.xlu0 %21  }
  0x75   :  { %42 = vst.msk [vmem:[#allocation0 + $0x2] ss:$8 sm:$0xf] %vm4_vm0, %v39_v4   ;;  %44 = vst.msk [vmem:[#allocation0 + $0x2] ss:$8 sm:$0xf0] %vm4_vm0, %v39_v4  }
  0x76   :  { %25 = vst.msk [vmem:[#allocation0 + $0x1] ss:$8 sm:$0xf] %vm4_vm0, %v22_v5   ;;  %27 = vst.msk [vmem:[#allocation0 + $0x1] ss:$8 sm:$0xf0] %vm4_vm0, %v22_v5  }
  0x78   :  { %v48_v6 = vpop.permute.xlu1 %47   ;;  %v31_v7 = vpop.permute.xlu0 %30  }
  0x79   :  { %51 = vst.msk [vmem:[#allocation0 + $0x42] ss:$8 sm:$0xf] %vm4_vm0, %v48_v6   ;;  %53 = vst.msk [vmem:[#allocation0 + $0x42] ss:$8 sm:$0xf0] %vm4_vm0, %v48_v6  }
  0x7a   :  { %34 = vst.msk [vmem:[#allocation0 + $0x41] ss:$8 sm:$0xf] %vm4_vm0, %v31_v7   ;;  %36 = vst.msk [vmem:[#allocation0 + $0x41] ss:$8 sm:$0xf0] %vm4_vm0, %v31_v7  }
  0x7c   :  { %v65_v8 = vpop.permute.xlu1 %64   ;;  %v56_v9 = vpop.permute.xlu0 %55  }
  0x7d   :  { %68 = vst.msk [vmem:[#allocation0 + $0x43] ss:$8 sm:$0xf] %vm4_vm0, %v65_v8   ;;  %70 = vst.msk [vmem:[#allocation0 + $0x43] ss:$8 sm:$0xf0] %vm4_vm0, %v65_v8  }
  0x7e   :  { %59 = vst.msk [vmem:[#allocation0 + $0x3] ss:$8 sm:$0xf] %vm4_vm0, %v56_v9   ;;  %61 = vst.msk [vmem:[#allocation0 + $0x3] ss:$8 sm:$0xf0] %vm4_vm0, %v56_v9  }
  0x80   :  { %v82_v10 = vpop.permute.xlu1 %81   ;;  %v73_v11 = vpop.permute.xlu0 %72  }
  0x81   :  { %85 = vst.msk [vmem:[#allocation0 + $0x44] ss:$8 sm:$0xf] %vm4_vm0, %v82_v10   ;;  %87 = vst.msk [vmem:[#allocation0 + $0x44] ss:$8 sm:$0xf0] %vm4_vm0, %v82_v10  }
  0x82   :  { %76 = vst.msk [vmem:[#allocation0 + $0x4] ss:$8 sm:$0xf] %vm4_vm0, %v73_v11   ;;  %78 = vst.msk [vmem:[#allocation0 + $0x4] ss:$8 sm:$0xf0] %vm4_vm0, %v73_v11  }
  0x84   :  { %v99_v12 = vpop.permute.xlu1 %98   ;;  %v90_v13 = vpop.permute.xlu0 %89  }
  0x85   :  { %102 = vst.msk [vmem:[#allocation0 + $0x45] ss:$8 sm:$0xf] %vm4_vm0, %v99_v12   ;;  %104 = vst.msk [vmem:[#allocation0 + $0x45] ss:$8 sm:$0xf0] %vm4_vm0, %v99_v12  }
  0x86   :  { %93 = vst.msk [vmem:[#allocation0 + $0x5] ss:$8 sm:$0xf] %vm4_vm0, %v90_v13   ;;  %95 = vst.msk [vmem:[#allocation0 + $0x5] ss:$8 sm:$0xf0] %vm4_vm0, %v90_v13  }
  0x88   :  { %v116_v14 = vpop.permute.xlu1 %115   ;;  %v107_v15 = vpop.permute.xlu0 %106  }
  0x89   :  { %119 = vst.msk [vmem:[#allocation0 + $0x46] ss:$8 sm:$0xf] %vm4_vm0, %v116_v14   ;;  %121 = vst.msk [vmem:[#allocation0 + $0x46] ss:$8 sm:$0xf0] %vm4_vm0, %v116_v14  }
  0x8a   :  { %110 = vst.msk [vmem:[#allocation0 + $0x6] ss:$8 sm:$0xf] %vm4_vm0, %v107_v15   ;;  %112 = vst.msk [vmem:[#allocation0 + $0x6] ss:$8 sm:$0xf0] %vm4_vm0, %v107_v15  }
  0x8c   :  { %v133_v16 = vpop.permute.xlu1 %132   ;;  %v124_v17 = vpop.permute.xlu0 %123  }
  0x8d   :  { %136 = vst.msk [vmem:[#allocation0 + $0x47] ss:$8 sm:$0xf] %vm4_vm0, %v133_v16   ;;  %138 = vst.msk [vmem:[#allocation0 + $0x47] ss:$8 sm:$0xf0] %vm4_vm0, %v133_v16  }
  0x8e   :  { %127 = vst.msk [vmem:[#allocation0 + $0x7] ss:$8 sm:$0xf] %vm4_vm0, %v124_v17   ;;  %129 = vst.msk [vmem:[#allocation0 + $0x7] ss:$8 sm:$0xf0] %vm4_vm0, %v124_v17  }
  0x8f   :  { %176 = shalt.err (!%p173_p4)
}
  0x90   :  { %146 = dma.vmem_to_hbm [thread:$0]  %s144_s21, 2048, %s257_s1, [#allocation1]  }
  0x91   :  { %185 = dma.done.wait [#allocation1], 2048  }
  0x92   :  { %186 = vsyncadd [#allocation1], 4294965248 }
  0x93   :  { %148 = vsyncpa [#allocation1], 1 }

// kernel: reconstructor_forward.1
= control target key start
LH: loop header
LB: loop body
LE: loop exit
PB: predicated region body
PF: predicated region fallthrough
CT: control target
= control target key end

     0   :  { %v30_v0 = vlaneseq  ;;  %v6234_v1 = vmov 0.0   ;;  %s6235_s24 = smov 17   ;;  %s6236_s25 = smov 111   ;;  %vm82_vm1 = vcmask 392192   ;;  %v6243_v27 = vmov 0   ;;  %s8274_s1 = inlined_call_operand.vmem [shape: f32[9,256], index: 1, kind: input, shape index: {}]   ;;  %s8275_s0 = inlined_call_operand.vmem [shape: f32[8,48,256], index: 0, kind: input, shape index: {}]   ;;  %s8276_s2 = inlined_call_operand.vmem [shape: f32[32,48], index: 2, kind: input, shape index: {}]   ;;  %s8277_s3 = inlined_call_operand.vmem [shape: f32[32,1], index: 3, kind: input, shape index: {}]   ;;  %s8278_s6 = inlined_call_operand.vmem [shape: f32[8,1], index: 6, kind: input, shape index: {}]   ;;  %s8279_s4 = inlined_call_operand.vmem [shape: f32[32,16], index: 4, kind: input, shape index: {}]   ;;  %s8280_s5 = inlined_call_operand.vmem [shape: f32[8,32], index: 5, kind: input, shape index: {}]   ;;  %s8281_s7 = inlined_call_operand.vmem [shape: f32[8,8,256], index: 7, kind: output, shape index: {}]  }
   0x1   :  { %35 = vst [vmem:[#allocation3] sm:$0xff] %v6234_v1  ;;  %36 = vst [vmem:[#allocation3 + $0x8] sm:$0xff] %v6234_v1  ;;  %159 = vmatprep.mubr.f32.mxu0 %v6234_v1  ;;  %635 = vmatprep.mubr.f32.mxu1 %v6234_v1  ;;  %v5908_v9 = vld [vmem:[%s8274_s1 + $0x4] ss:$8 sm:$0x3]  ;;  %s6237_s28 = smov 16  }
   0x2   :  { %37 = vst [vmem:[#allocation3 + $0x10] sm:$0xff] %v6234_v1  ;;  %38 = vst [vmem:[#allocation3 + $0x18] sm:$0xff] %v6234_v1  ;;  %vm6292_vm0 = vcmp.lt.s32.totalorder %v30_v0, 256  ;;  %v6300_v3 = vshrl.u32 %v30_v0, 7  ;;  %s6238_s29 = smov 15   ;;  %s6239_s30 = smov 1   ;;  %6162 = vset.pattern.permute.xlu0 %v6243_v27  ;;  %6163 = vset.pattern.permute.xlu1 %v6243_v27 }
   0x3   :  { %34 = vst.msk [vmem:[#allocation2] sm:$0x3] %vm6292_vm0, %v6234_v1  ;;  %v57_v11 = vld [vmem:[%s8275_s0 + $0x58] sm:$0xff]  ;;  %v56_v12 = vld [vmem:[%s8275_s0 + $0x50] sm:$0xff]  ;;  %v55_v13 = vld [vmem:[%s8275_s0 + $0x48] sm:$0xff]  ;;  %s6240_s14 = smov 127  }
   0x4   :  { %v6303_v4 = vsub.s32 0, %v6300_v3  ;;  %v6306_v5 = vsub.s32 1, %v6300_v3  ;;  %115 = vmatprep.subr.mxu0 %v57_v11  ;;  %v54_v14 = vld [vmem:[%s8275_s0 + $0x40] sm:$0xff]  ;;  %v53_v15 = vld [vmem:[%s8275_s0 + $0x38] sm:$0xff]  ;;  %v52_v16 = vld [vmem:[%s8275_s0 + $0x30] sm:$0xff]  ;;  %s6241_s23 = smov 113  }
   0x5   :  { %116 = vmatpush1.msra.mxu0 %v56_v12  ;;  %v51_v17 = vld [vmem:[%s8275_s0 + $0x28] sm:$0xff]  ;;  %v50_v18 = vld [vmem:[%s8275_s0 + $0x20] sm:$0xff]  ;;  %v49_v19 = vld [vmem:[%s8275_s0 + $0x18] sm:$0xff]  ;;  %s6242_s12 = smov 112   ;;  %v6244_v33 = vmov 1966171168  }
   0x6   :  { %117 = vmatprep.subr.mxu0 %v55_v13  ;;  %v48_v20 = vld [vmem:[%s8275_s0 + $0x10] sm:$0xff]  ;;  %v47_v21 = vld [vmem:[%s8275_s0 + $0x8] sm:$0xff]  ;;  %v46_v22 = vld [vmem:[%s8275_s0] sm:$0xff]  ;;  %v223_v34 = vunpack.c.l.s4 %v6244_v33  ;;  %v6430_v35 = vand.u32 127, %v30_v0  ;;  %vm558_vm10 = vcmask 130048   ;;  %vm683_vm11 = vcmask 261120  }
   0x7   :  { %118 = vmatpush1.msra.mxu0 %v54_v14  ;;  %v6370_v23 = vld [vmem:[%s8276_s2] sm:$0xff]  ;;  %v6378_v24 = vld [vmem:[%s8276_s2 + $0x8] sm:$0xff]  ;;  %v6386_v25 = vld [vmem:[%s8276_s2 + $0x10] sm:$0xff]  ;;  %vm41_vm12 = vcmp.eq.s32.totalorder %v6300_v3, 0 }
   0x8   :  { %119 = vmatprep.subr.mxu0 %v53_v15  ;;  %v6394_v26 = vld [vmem:[%s8276_s2 + $0x18] sm:$0xff]  ;;  %v6407_v29 = vld [vmem:[%s8277_s3 + $0x10] sm:$0xff]  ;;  %v6414_v30 = vld [vmem:[%s8277_s3] sm:$0xff]  ;;  %v224_v38 = vunpack.c.0.s8 %v223_v34  ;;  %vm202_vm2 = vcmp.lt.s32.totalorder %v6430_v35, 17  ;;  %vm511_vm3 = vcmp.lt.s32.totalorder %v6430_v35, 111  ;;  %vm247_vm4 = vcmp.lt.s32.totalorder %v6430_v35, 16 }
   0x9   :  { %120 = vmatpush1.msra.mxu0 %v52_v16  ;;  %v6402_v28 = vld [vmem:[%s8277_s3 + $0x18] sm:$0xff]  ;;  %v6419_v31 = vld [vmem:[%s8277_s3 + $0x8] sm:$0xff]  ;;  %v6426_v32 = vld [vmem:[%s8278_s6] sm:$0xff]  ;;  %vm290_vm5 = vcmp.lt.s32.totalorder %v6430_v35, 15  ;;  %vm333_vm6 = vcmp.lt.s32.totalorder %v6430_v35, 1  ;;  %vm382_vm7 = vcmp.lt.s32.totalorder %v6430_v35, 127 }
   0xa   :  { %v184_v6 = vld [vmem:[#allocation2] sm:$0x3]  ;;  %121 = vmatprep.subr.mxu0 %v51_v17  ;;  %v5912_v37 = vld [vmem:[%s8274_s1 + $0x10] ss:$8 sm:$0x3]  ;;  %v6448_v46 = vsub.s32 %v224_v38, %v6300_v3  ;;  %vm425_vm8 = vcmp.lt.s32.totalorder %v6430_v35, 113 }
   0xb   :  { %v189_v7 = vrot.slane %v184_v6, %v6303_v4  ;;  %v193_v8 = vrot.slane %v184_v6, %v6306_v5  ;;  %v374_v10 = vmul.f32 %v5908_v9, %v184_v6  ;;  %122 = vmatpush1.msra.mxu0 %v50_v18  ;;  %v205_v36 = vld [vmem:[%s8274_s1] ss:$8 sm:$0x3]  ;;  %v5905_v41 = vld [vmem:[%s8274_s1 + $0x1] ss:$8 sm:$0x3]  ;;  %v520_v44 = vrot.slane %v5912_v37, %v6303_v4 }
   0xc   :  { %123 = vmatprep.subr.mxu0 %v49_v19  ;;  %v210_v42 = vrot.slane %v205_v36, %v6303_v4  ;;  %v214_v43 = vrot.slane %v205_v36, %v6306_v5  ;;  %v524_v45 = vrot.slane %v5912_v37, %v6306_v5  ;;  %v256_v49 = vrot.slane %v5905_v41, %v6303_v4  ;;  %v5906_v59 = vld [vmem:[%s8274_s1 + $0x2] ss:$8 sm:$0x3]  ;;  %v5907_v13 = vld [vmem:[%s8274_s1 + $0x3] ss:$8 sm:$0x3] }
   0xd   :  { %196 = vrot.lane.b32.xlu1 %v189_v7, %s6235_s24  ;;  %507 = vrot.lane.b32.xlu0 %v189_v7, %s6236_s25  ;;  %376 = vst.msk [vmem:[#allocation3 + $0x4] ss:$8 sm:$0x3] %vm6292_vm0, %v374_v10  ;;  %v260_v50 = vrot.slane %v5905_v41, %v6306_v5  ;;  %v346_v34 = vrot.slane %v5907_v13, %v6306_v5  ;;  %v5909_v36 = vld [vmem:[%s8274_s1 + $0x5] ss:$8 sm:$0x3] }
   0xe   :  { %124 = vmatpush1.msra.mxu0 %v48_v20  ;;  %vm468_vm9 = vcmp.lt.s32.totalorder %v6430_v35, 112 }
   0xf   :  { %125 = vmatprep.subr.mxu0 %v47_v21  ;;  %v342_v21 = vrot.slane %v5907_v13, %v6303_v4 }
  0x10   :  { %126 = vmatpush1.msra.mxu0 %v46_v22 }
  0x11   :  { %198 = vrot.lane.b32.xlu1 %v193_v8, %s6235_s24  ;;  %509 = vrot.lane.b32.xlu0 %v193_v8, %s6236_s25 }
  0x12   :  { %5901 = vmatmul.mubr.msk.f32.vlgmr.msra.gmra.mxu0 %vm82_vm1, %v6370_v23 }
  0x13   :  { %165 = vmatprep.mubr.f32.mxu0 %v6234_v1 }
  0x15   :  { %245 = vrot.lane.b32.xlu1 %v193_v8, %s6237_s28  ;;  %243 = vrot.lane.b32.xlu0 %v189_v7, %s6237_s28 }
  0x16   :  { %5902 = vmatmul.mubr.msk.f32.gmra.mxu0 %vm82_vm1, %v6378_v24 }
  0x17   :  { %171 = vmatprep.mubr.f32.mxu0 %v6234_v1 }
  0x19   :  { %288 = vrot.lane.b32.xlu1 %v193_v8, %s6238_s29  ;;  %286 = vrot.lane.b32.xlu0 %v189_v7, %s6238_s29 }
  0x1a   :  { %5903 = vmatmul.mubr.msk.f32.gmra.mxu0 %vm82_vm1, %v6386_v25 }
  0x1b   :  { %177 = vmatprep.mubr.f32.mxu0 %v6234_v1 }
  0x1d   :  { %331 = vrot.lane.b32.xlu1 %v193_v8, %s6239_s30  ;;  %329 = vrot.lane.b32.xlu0 %v189_v7, %s6239_s30 }
  0x1e   :  { %5904 = vmatmul.mubr.msk.f32.gmra.mxu0 %vm82_vm1, %v6394_v26 }
  0x1f   :  { %918 = vmatprep.mubr.f32.mxu0 %v6234_v1 }
  0x21   :  { %380 = vrot.lane.b32.xlu1 %v193_v8, %s6240_s14  ;;  %378 = vrot.lane.b32.xlu0 %v189_v7, %s6240_s14 }
  0x25   :  { %423 = vrot.lane.b32.xlu1 %v193_v8, %s6241_s23  ;;  %421 = vrot.lane.b32.xlu0 %v189_v7, %s6241_s23 }
  0x29   :  { %466 = vrot.lane.b32.xlu1 %v193_v8, %s6242_s12  ;;  %464 = vrot.lane.b32.xlu0 %v189_v7, %s6242_s12  ;;  %v299_v7 = vrot.slane %v5906_v59, %v6303_v4  ;;  %v303_v8 = vrot.slane %v5906_v59, %v6306_v5 }
  0x2d   :  { %79 = vperm.xlu0 %6162, %v6402_v28   ;;  %74 = vperm.xlu1 %6163, %v6407_v29  }
  0x31   :  { %64 = vperm.xlu0 %6162, %v6414_v30   ;;  %69 = vperm.xlu1 %6163, %v6419_v31  }
  0x35   :  { %680 = vperm.xlu1 %6163, %v6426_v32  }
  0x7f   :  { %v197_v39 = vpop.permute.xlu1 %196  ;;  %v508_v40 = vpop.permute.xlu0 %507 }
  0x83   :  { %v199_v47 = vpop.permute.xlu1 %198  ;;  %v510_v48 = vpop.permute.xlu0 %509 }
  0x84   :  { %v203_v51 = vsel %vm202_vm2, %v197_v39, %v199_v47  ;;  %v204_v52 = vsel %vm202_vm2, %v199_v47, %v197_v39  ;;  %v512_v53 = vsel %vm511_vm3, %v508_v40, %v510_v48  ;;  %v513_v54 = vsel %vm511_vm3, %v510_v48, %v508_v40 }
  0x85   :  { %v217_v55 = vmul.f32 %v210_v42, %v204_v52  ;;  %v218_v56 = vmul.f32 %v214_v43, %v203_v51  ;;  %v527_v57 = vmul.f32 %v520_v44, %v512_v53  ;;  %v528_v58 = vmul.f32 %v524_v45, %v513_v54 }
  0x86   :  { %v391_v43 = vrot.slane %v5909_v36, %v6303_v4  ;;  %v395_v48 = vrot.slane %v5909_v36, %v6306_v5 }
  0x87   :  { %v221_v60 = vcombine.low %v217_v55, %v218_v56  ;;  %v531_v61 = vcombine.low %v527_v57, %v528_v58  ;;  %v246_v62 = vpop.permute.xlu1 %245  ;;  %v244_v63 = vpop.permute.xlu0 %243 }
  0x88   :  { %v248_v0 = vsel %vm247_vm4, %v244_v63, %v246_v62  ;;  %v249_v6 = vsel %vm247_vm4, %v246_v62, %v244_v63  ;;  %v5911_v63 = vld [vmem:[%s8274_s1 + $0x7] ss:$8 sm:$0x3] }
  0x89   :  { %v228_v9 = vrot.slane %v221_v60, %v6448_v46  ;;  %v538_v10 = vrot.slane %v531_v61, %v6448_v46  ;;  %v263_v11 = vmul.f32 %v256_v49, %v249_v6  ;;  %v264_v12 = vmul.f32 %v260_v50, %v248_v0  ;;  %v5910_v49 = vld [vmem:[%s8274_s1 + $0x6] ss:$8 sm:$0x3] }
  0x8a   :  { %v434_v58 = vrot.slane %v5910_v49, %v6303_v4  ;;  %v438_v62 = vrot.slane %v5910_v49, %v6306_v5  ;;  %v5928_v49 = vld [vmem:[%s8275_s0 + $0xa0] sm:$0xff] }
  0x8b   :  { %v235_v14 = vrot.slane %v228_v9, %v6448_v46  ;;  %v545_v15 = vrot.slane %v538_v10, %v6448_v46  ;;  %v267_v16 = vcombine.low %v263_v11, %v264_v12  ;;  %v289_v17 = vpop.permute.xlu1 %288  ;;  %v287_v18 = vpop.permute.xlu0 %286  ;;  %v477_v11 = vrot.slane %v5911_v63, %v6303_v4 }
  0x8c   :  { %v291_v19 = vsel %vm290_vm5, %v287_v18, %v289_v17  ;;  %v292_v20 = vsel %vm290_vm5, %v289_v17, %v287_v18 }
  0x8d   :  { %241 = vst.msk [vmem:[#allocation3] ss:$8 sm:$0x3] %vm6292_vm0, %v235_v14  ;;  %548 = vst.msk [vmem:[#allocation3 + $0x10] ss:$8 sm:$0x3] %vm6292_vm0, %v545_v15  ;;  %v274_v22 = vrot.slane %v267_v16, %v6448_v46  ;;  %v306_v27 = vmul.f32 %v299_v7, %v292_v20  ;;  %v307_v33 = vmul.f32 %v303_v8, %v291_v19 }
  0x8e   :  { %v481_v15 = vrot.slane %v5911_v63, %v6306_v5 }
  0x8f   :  { %v281_v37 = vrot.slane %v274_v22, %v6448_v46  ;;  %v310_v38 = vcombine.low %v306_v27, %v307_v33  ;;  %v332_v39 = vpop.permute.xlu1 %331  ;;  %v330_v40 = vpop.permute.xlu0 %329 }
  0x90   :  { %v334_v41 = vsel %vm333_vm6, %v330_v40, %v332_v39  ;;  %v335_v42 = vsel %vm333_vm6, %v332_v39, %v330_v40 }
  0x91   :  { %284 = vst.msk [vmem:[#allocation3 + $0x1] ss:$8 sm:$0x3] %vm6292_vm0, %v281_v37  ;;  %v317_v44 = vrot.slane %v310_v38, %v6448_v46  ;;  %v349_v45 = vmul.f32 %v342_v21, %v335_v42  ;;  %v350_v47 = vmul.f32 %v346_v34, %v334_v41  ;;  %v6550_v41 = vld [vmem:[%s8279_s4] sm:$0xff]  ;;  %v6558_v42 = vld [vmem:[%s8279_s4 + $0x8] sm:$0xff] }
  0x93   :  { %v324_v50 = vrot.slane %v317_v44, %v6448_v46  ;;  %v353_v51 = vcombine.low %v349_v45, %v350_v47  ;;  %v381_v52 = vpop.permute.xlu1 %380  ;;  %v379_v53 = vpop.permute.xlu0 %378  ;;  %v6574_v44 = vld [vmem:[%s8279_s4 + $0x18] sm:$0xff]  ;;  %v5930_v47 = vld [vmem:[%s8275_s0 + $0xb0] sm:$0xff] }
  0x94   :  { %v383_v54 = vsel %vm382_vm7, %v379_v53, %v381_v52  ;;  %v384_v55 = vsel %vm382_vm7, %v381_v52, %v379_v53  ;;  %v557_v56 = vld [vmem:[#allocation3 + $0x18] sm:$0xff]  ;;  %v556_v57 = vld [vmem:[#allocation3 + $0x10] sm:$0xff]  ;;  %v5925_v52 = vld [vmem:[%s8275_s0 + $0x88] sm:$0xff] }
  0x95   :  { %327 = vst.msk [vmem:[#allocation3 + $0x2] ss:$8 sm:$0x3] %vm6292_vm0, %v324_v50  ;;  %v360_v59 = vrot.slane %v353_v51, %v6448_v46  ;;  %v398_v60 = vmul.f32 %v391_v43, %v383_v54  ;;  %v399_v61 = vmul.f32 %v395_v48, %v384_v55  ;;  %599 = vmatprep.subr.mxu1 %v557_v56  ;;  %v6566_v43 = vld [vmem:[%s8279_s4 + $0x10] sm:$0xff]  ;;  %v5931_v45 = vld [vmem:[%s8275_s0 + $0xb8] sm:$0xff]  ;;  %v5929_v48 = vld [vmem:[%s8275_s0 + $0xa8] sm:$0xff] }
  0x96   :  { %600 = vmatpush1.msra.mxu1 %v556_v57  ;;  %874 = vmatprep.subr.mxu0 %v5931_v45  ;;  %v5927_v50 = vld [vmem:[%s8275_s0 + $0x98] sm:$0xff]  ;;  %v5926_v51 = vld [vmem:[%s8275_s0 + $0x90] sm:$0xff]  ;;  %v5924_v53 = vld [vmem:[%s8275_s0 + $0x80] sm:$0xff] }
  0x97   :  { %v367_v0 = vrot.slane %v360_v59, %v6448_v46  ;;  %v402_v6 = vcombine.low %v398_v60, %v399_v61  ;;  %v424_v7 = vpop.permute.xlu1 %423  ;;  %v422_v8 = vpop.permute.xlu0 %421  ;;  %875 = vmatpush1.msra.mxu0 %v5930_v47  ;;  %v5923_v54 = vld [vmem:[%s8275_s0 + $0x78] sm:$0xff]  ;;  %v5922_v55 = vld [vmem:[%s8275_s0 + $0x70] sm:$0xff] }
  0x98   :  { %v426_v9 = vsel %vm425_vm8, %v422_v8, %v424_v7  ;;  %v427_v10 = vsel %vm425_vm8, %v424_v7, %v422_v8  ;;  %876 = vmatprep.subr.mxu0 %v5929_v48 }
  0x99   :  { %370 = vst.msk [vmem:[#allocation3 + $0x3] ss:$8 sm:$0x3] %vm6292_vm0, %v367_v0  ;;  %v409_v12 = vrot.slane %v402_v6, %v6448_v46  ;;  %v441_v13 = vmul.f32 %v434_v58, %v426_v9  ;;  %v442_v14 = vmul.f32 %v438_v62, %v427_v10  ;;  %877 = vmatpush1.msra.mxu0 %v5928_v49 }
  0x9a   :  { %878 = vmatprep.subr.mxu0 %v5927_v50 }
  0x9b   :  { %v416_v16 = vrot.slane %v409_v12, %v6448_v46  ;;  %v445_v17 = vcombine.low %v441_v13, %v442_v14  ;;  %v467_v18 = vpop.permute.xlu1 %466  ;;  %v465_v19 = vpop.permute.xlu0 %464  ;;  %879 = vmatpush1.msra.mxu0 %v5926_v51 }
  0x9c   :  { %v469_v20 = vsel %vm468_vm9, %v465_v19, %v467_v18  ;;  %v470_v21 = vsel %vm468_vm9, %v467_v18, %v465_v19  ;;  %880 = vmatprep.subr.mxu0 %v5925_v52 }
  0x9d   :  { %419 = vst.msk [vmem:[#allocation3 + $0x5] ss:$8 sm:$0x3] %vm6292_vm0, %v416_v16  ;;  %v452_v22 = vrot.slane %v445_v17, %v6448_v46  ;;  %v484_v27 = vmul.f32 %v477_v11, %v469_v20  ;;  %v485_v33 = vmul.f32 %v481_v15, %v470_v21  ;;  %881 = vmatpush1.msra.mxu0 %v5924_v53 }
  0x9e   :  { %882 = vmatprep.subr.mxu0 %v5923_v54 }
  0x9f   :  { %v459_v34 = vrot.slane %v452_v22, %v6448_v46  ;;  %v488_v36 = vcombine.low %v484_v27, %v485_v33  ;;  %883 = vmatpush1.msra.mxu0 %v5922_v55 }
  0xa1   :  { %462 = vst.msk [vmem:[#allocation3 + $0x6] ss:$8 sm:$0x3] %vm6292_vm0, %v459_v34  ;;  %v495_v37 = vrot.slane %v488_v36, %v6448_v46 }
  0xa3   :  { %v502_v38 = vrot.slane %v495_v37, %v6448_v46 }
  0xa5   :  { %505 = vst.msk [vmem:[#allocation3 + $0x7] ss:$8 sm:$0x3] %vm6292_vm0, %v502_v38 }
  0xa8   :  { %v75_v6 = vpop.permute.xlu1 %74  ;;  %v80_v9 = vpop.permute.xlu0 %79 }
  0xac   :  { %v554_v39 = vld [vmem:[#allocation3] sm:$0xff]  ;;  %v555_v40 = vld [vmem:[#allocation3 + $0x8] sm:$0xff]  ;;  %v70_v14 = vpop.permute.xlu1 %69  ;;  %v65_v17 = vpop.permute.xlu0 %64 }
  0xad   :  { %601 = vmatprep.subr.mxu1 %v555_v40 }
  0xae   :  { %602 = vmatpush1.msra.mxu1 %v554_v39 }
  0xaf   :  { %5913 = vmatmul.mubr.msk.f32.vlgmr.msra.gmra.mxu1 %vm558_vm10, %v6550_v41 }
  0xb0   :  { %641 = vmatprep.mubr.f32.mxu1 %v6234_v1 }
  0xb3   :  { %5914 = vmatmul.mubr.msk.f32.gmra.mxu1 %vm558_vm10, %v6558_v42 }
  0xb4   :  { %647 = vmatprep.mubr.f32.mxu1 %v6234_v1 }
  0xb7   :  { %5915 = vmatmul.mubr.msk.f32.gmra.mxu1 %vm558_vm10, %v6566_v43 }
  0xb8   :  { %653 = vmatprep.mubr.f32.mxu1 %v6234_v1 }
  0xbb   :  { %5916 = vmatmul.mubr.msk.f32.gmra.mxu1 %vm558_vm10, %v6574_v44 }
  0xbc   :  { %751 = vmatprep.mubr.f32.mxu1 %v6234_v1 }
  0xd2   :  { %v161_v56 = vpop.f32.mrf.mxu0 }
  0xd3   :  { %v162_v36 = vadd.f32 %v161_v56, %v65_v17  ;;  %v6612_v56 = vld [vmem:[%s8280_s5] sm:$0xff] }
  0xd4   :  { %v163_v57 = vpop.f32.mrf.mxu0 }
  0xd5   :  { %v164_v38 = vadd.f32 %v163_v57, %v65_v17  ;;  %v5921_v57 = vld [vmem:[%s8275_s0 + $0x68] sm:$0xff] }
  0xd6   :  { %v167_v58 = vpop.f32.mrf.mxu0  ;;  %884 = vmatprep.subr.mxu0 %v5921_v57 }
  0xd7   :  { %v168_v20 = vadd.f32 %v167_v58, %v70_v14  ;;  %v5920_v58 = vld [vmem:[%s8275_s0 + $0x60] sm:$0xff] }
  0xd8   :  { %v169_v59 = vpop.f32.mrf.mxu0  ;;  %885 = vmatpush1.msra.mxu0 %v5920_v58  ;;  %v5937_v58 = vld [vmem:[%s8274_s1 + $0x2] ss:$8 sm:$0x3] }
  0xd9   :  { %v170_v27 = vadd.f32 %v169_v59, %v70_v14  ;;  %5932 = vmatmul.mubr.msk.f32.vlgmr.msra.gmra.mxu0 %vm82_vm1, %v6370_v23  ;;  %v681_v59 = vpop.permute.xlu1 %680 }
  0xda   :  { %v173_v60 = vpop.f32.mrf.mxu0  ;;  %924 = vmatprep.mubr.f32.mxu0 %v6234_v1 }
  0xdb   :  { %v174_v15 = vadd.f32 %v173_v60, %v75_v6 }
  0xdc   :  { %v175_v63 = vpop.f32.mrf.mxu0 }
  0xdd   :  { %v176_v18 = vadd.f32 %v175_v63, %v75_v6  ;;  %5933 = vmatmul.mubr.msk.f32.gmra.mxu0 %vm82_vm1, %v6378_v24 }
  0xde   :  { %v179_v8 = vpop.f32.mrf.mxu0  ;;  %930 = vmatprep.mubr.f32.mxu0 %v6234_v1 }
  0xdf   :  { %v180_v11 = vadd.f32 %v179_v8, %v80_v9 }
  0xe0   :  { %v181_v12 = vpop.f32.mrf.mxu0 }
  0xe1   :  { %v182_v19 = vadd.f32 %v181_v12, %v80_v9  ;;  %5934 = vmatmul.mubr.msk.f32.gmra.mxu0 %vm82_vm1, %v6386_v25 }
  0xe2   :  { %936 = vmatprep.mubr.f32.mxu0 %v6234_v1 }
  0xe5   :  { %5935 = vmatmul.mubr.msk.f32.gmra.mxu0 %vm82_vm1, %v6394_v26 }
  0xe6   :  { %1646 = vmatprep.mubr.f32.mxu0 %v6234_v1 }
 0x16f   :  { %v637_v61 = vpop.f32.mrf.mxu1 }
 0x170   :  { %v660_v50 = vadd.f32 %v637_v61, %v162_v36 }
 0x171   :  { %v639_v62 = vpop.f32.mrf.mxu1 }
 0x172   :  { %v661_v48 = vadd.f32 %v639_v62, %v164_v38  ;;  %v668_v55 = vmax.f32 %v660_v50, 0.0 }
 0x173   :  { %v643_v0 = vpop.f32.mrf.mxu1 }
 0x174   :  { %v662_v45 = vadd.f32 %v643_v0, %v168_v20  ;;  %v669_v54 = vmax.f32 %v661_v48, 0.0 }
 0x175   :  { %v645_v7 = vpop.f32.mrf.mxu1 }
 0x176   :  { %v663_v39 = vadd.f32 %v645_v7, %v170_v27  ;;  %v670_v53 = vmax.f32 %v662_v45, 0.0  ;;  %v5936_v45 = vld [vmem:[%s8274_s1 + $0x1] ss:$8 sm:$0x3] }
 0x177   :  { %v649_v10 = vpop.f32.mrf.mxu1  ;;  %v1010_v57 = vrot.slane %v5936_v45, %v6306_v5 }
 0x178   :  { %v664_v37 = vadd.f32 %v649_v10, %v174_v15  ;;  %v671_v52 = vmax.f32 %v663_v39, 0.0 }
 0x179   :  { %v651_v13 = vpop.f32.mrf.mxu1 }
 0x17a   :  { %v665_v33 = vadd.f32 %v651_v13, %v176_v18  ;;  %v672_v51 = vmax.f32 %v664_v37, 0.0 }
 0x17b   :  { %v655_v16 = vpop.f32.mrf.mxu1 }
 0x17c   :  { %v666_v21 = vadd.f32 %v655_v16, %v180_v11  ;;  %v673_v49 = vmax.f32 %v665_v33, 0.0  ;;  %v5943_v33 = vld [vmem:[%s8274_s1 + $0x10] ss:$8 sm:$0x3] }
 0x17d   :  { %v657_v22 = vpop.f32.mrf.mxu1  ;;  %v1254_v36 = vrot.slane %v5943_v33, %v6306_v5 }
 0x17e   :  { %v667_v34 = vadd.f32 %v657_v22, %v182_v19  ;;  %v674_v47 = vmax.f32 %v666_v21, 0.0  ;;  %v5939_v19 = vld [vmem:[%s8274_s1 + $0x4] ss:$8 sm:$0x3] }
 0x180   :  { %v675_v40 = vmax.f32 %v667_v34, 0.0  ;;  %v1250_v34 = vrot.slane %v5943_v33, %v6303_v4 }
 0x182   :  { %711 = vmatprep.subr.mxu1 %v675_v40 }
 0x183   :  { %712 = vmatpush1.msra.mxu1 %v674_v47 }
 0x184   :  { %713 = vmatprep.subr.mxu1 %v673_v49 }
 0x185   :  { %714 = vmatpush1.msra.mxu1 %v672_v51 }
 0x186   :  { %715 = vmatprep.subr.mxu1 %v671_v52  ;;  %v1006_v52 = vrot.slane %v5936_v45, %v6303_v4  ;;  %v5941_v45 = vld [vmem:[%s8274_s1 + $0x6] ss:$8 sm:$0x3] }
 0x187   :  { %716 = vmatpush1.msra.mxu1 %v670_v53 }
 0x188   :  { %717 = vmatprep.subr.mxu1 %v669_v54 }
 0x189   :  { %718 = vmatpush1.msra.mxu1 %v668_v55 }
 0x18a   :  { %5917 = vmatmul.mubr.msk.f32.vlgmr.msra.gmra.mxu1 %vm683_vm11, %v6612_v56 }
 0x18b   :  { %1363 = vmatprep.mubr.f32.mxu1 %v6234_v1 }
 0x24a   :  { %v753_v60 = vpop.f32.mrf.mxu1 }
 0x24b   :  { %v754_v23 = vadd.f32 %v753_v60, %v681_v59 }
 0x24c   :  { %v755_v61 = vpop.f32.mrf.mxu1 }
 0x24d   :  { %v5918_v62 = vmul.f32 -1.442695, %v754_v23  ;;  %v756_v63 = vadd.f32 %v755_v61, %v681_v59 }
 0x24f   :  { %6164 = vpow2.f32 %v5918_v62  ;;  %v5919_v0 = vmul.f32 -1.442695, %v756_v63 }
 0x251   :  { %6166 = vpow2.f32 %v5919_v0  ;;  %v1046_v0 = vrot.slane %v5937_v58, %v6303_v4 }
 0x25c   :  { %v6165_v6 = vpop.eup %6164 }
 0x25d   :  { %v764_v7 = vadd.f32 1.0, %v6165_v6 }
 0x25e   :  { %v6167_v8 = vpop.eup %6166 }
 0x25f   :  { %6168 = vrcp.f32 %v764_v7  ;;  %v765_v9 = vadd.f32 1.0, %v6167_v8 }
 0x261   :  { %6170 = vrcp.f32 %v765_v9  ;;  %v1050_v9 = vrot.slane %v5937_v58, %v6306_v5  ;;  %v1174_v58 = vrot.slane %v5941_v45, %v6306_v5 }
 0x26c   :  { %v6169_v10 = vpop.eup %6168 }
 0x26d   :  { %v773_v11 = vrot.slane %v6169_v10, %v6303_v4 }
 0x26e   :  { %v6171_v12 = vpop.eup %6170 }
 0x26f   :  { %v778_v13 = vsel %vm41_vm12, %v773_v11, %v754_v23  ;;  %v777_v14 = vrot.slane %v6171_v12, %v6303_v4  ;;  %v784_v15 = vcombine.low %v6169_v10, %v6171_v12  ;;  %v5938_v10 = vld [vmem:[%s8274_s1 + $0x3] ss:$8 sm:$0x3] }
 0x270   :  { %780 = vst [vmem:[%s8281_s7] sm:$0xff] %v778_v13 }
 0x271   :  { %v779_v16 = vsel %vm41_vm12, %v777_v14, %v756_v63  ;;  %v791_v17 = vrot.slane %v784_v15, %v6448_v46 }
 0x272   :  { %781 = vst [vmem:[%s8281_s7 + $0x8] sm:$0xff] %v779_v16 }
 0x273   :  { %v798_v18 = vrot.slane %v791_v17, %v6448_v46  ;;  %v1086_v17 = vrot.slane %v5938_v10, %v6303_v4 }
 0x275   :  { %800 = vst.msk [vmem:[#allocation2] sm:$0x3] %vm6292_vm0, %v798_v18 }
 0x27c   :  { %v943_v20 = vld [vmem:[#allocation2] sm:$0x3] }
 0x27d   :  { %v952_v21 = vrot.slane %v943_v20, %v6306_v5  ;;  %v1116_v22 = vmul.f32 %v5939_v19, %v943_v20  ;;  %v948_v27 = vrot.slane %v943_v20, %v6303_v4 }
 0x27f   :  { %1117 = vst.msk [vmem:[#allocation3 + $0x4] ss:$8 sm:$0x3] %vm6292_vm0, %v1116_v22  ;;  %1241 = vrot.lane.b32.xlu1 %v952_v21, %s6236_s25  ;;  %1239 = vrot.lane.b32.xlu0 %v948_v27, %s6236_s25  ;;  %v5940_v22 = vld [vmem:[%s8274_s1 + $0x5] ss:$8 sm:$0x3] }
 0x283   :  { %957 = vrot.lane.b32.xlu1 %v952_v21, %s6235_s24  ;;  %955 = vrot.lane.b32.xlu0 %v948_v27, %s6235_s24 }
 0x287   :  { %997 = vrot.lane.b32.xlu1 %v952_v21, %s6237_s28  ;;  %995 = vrot.lane.b32.xlu0 %v948_v27, %s6237_s28 }
 0x28b   :  { %1037 = vrot.lane.b32.xlu1 %v952_v21, %s6238_s29  ;;  %1035 = vrot.lane.b32.xlu0 %v948_v27, %s6238_s29 }
 0x28f   :  { %1077 = vrot.lane.b32.xlu1 %v952_v21, %s6239_s30  ;;  %1075 = vrot.lane.b32.xlu0 %v948_v27, %s6239_s30 }
 0x293   :  { %1121 = vrot.lane.b32.xlu1 %v952_v21, %s6240_s14  ;;  %1119 = vrot.lane.b32.xlu0 %v948_v27, %s6240_s14 }
 0x297   :  { %1161 = vrot.lane.b32.xlu1 %v952_v21, %s6241_s23  ;;  %1159 = vrot.lane.b32.xlu0 %v948_v27, %s6241_s23 }
 0x29b   :  { %1201 = vrot.lane.b32.xlu1 %v952_v21, %s6242_s12  ;;  %1199 = vrot.lane.b32.xlu0 %v948_v27, %s6242_s12  ;;  %v1090_v21 = vrot.slane %v5938_v10, %v6306_v5 }
 0x29f   :  { %834 = vperm.xlu1 %6163, %v6407_v29   ;;  %839 = vperm.xlu0 %6162, %v6402_v28   ;;  %v961_v29 = vld [vmem:[%s8274_s1] ss:$8 sm:$0x3] }
 0x2a0   :  { %v966_v39 = vrot.slane %v961_v29, %v6303_v4  ;;  %v970_v40 = vrot.slane %v961_v29, %v6306_v5 }
 0x2a3   :  { %824 = vperm.xlu1 %6163, %v6414_v30   ;;  %829 = vperm.xlu0 %6162, %v6419_v31  }
 0x2a7   :  { %1408 = vperm.xlu0 %6162, %v6426_v32  }
 0x2f1   :  { %v1242_v37 = vpop.permute.xlu1 %1241  ;;  %v1240_v28 = vpop.permute.xlu0 %1239 }
 0x2f2   :  { %v1243_v30 = vsel %vm511_vm3, %v1240_v28, %v1242_v37  ;;  %v1244_v31 = vsel %vm511_vm3, %v1242_v37, %v1240_v28 }
 0x2f3   :  { %v1257_v32 = vmul.f32 %v1250_v34, %v1243_v30  ;;  %v1258_v38 = vmul.f32 %v1254_v36, %v1244_v31  ;;  %v1130_v31 = vrot.slane %v5940_v22, %v6303_v4 }
 0x2f5   :  { %v1261_v47 = vcombine.low %v1257_v32, %v1258_v38  ;;  %v958_v48 = vpop.permute.xlu1 %957  ;;  %v956_v49 = vpop.permute.xlu0 %955 }
 0x2f6   :  { %v959_v50 = vsel %vm202_vm2, %v956_v49, %v958_v48  ;;  %v960_v51 = vsel %vm202_vm2, %v958_v48, %v956_v49 }
 0x2f7   :  { %v1268_v53 = vrot.slane %v1261_v47, %v6448_v46  ;;  %v973_v54 = vmul.f32 %v966_v39, %v960_v51  ;;  %v974_v55 = vmul.f32 %v970_v40, %v959_v50  ;;  %v1134_v40 = vrot.slane %v5940_v22, %v6306_v5 }
 0x2f9   :  { %v1275_v59 = vrot.slane %v1268_v53, %v6448_v46  ;;  %v977_v60 = vcombine.low %v973_v54, %v974_v55  ;;  %v998_v23 = vpop.permute.xlu1 %997  ;;  %v996_v61 = vpop.permute.xlu0 %995  ;;  %v1170_v53 = vrot.slane %v5941_v45, %v6303_v4 }
 0x2fa   :  { %v999_v62 = vsel %vm247_vm4, %v996_v61, %v998_v23  ;;  %v1000_v63 = vsel %vm247_vm4, %v998_v23, %v996_v61 }
 0x2fb   :  { %1277 = vst.msk [vmem:[#allocation3 + $0x10] ss:$8 sm:$0x3] %vm6292_vm0, %v1275_v59  ;;  %v984_v6 = vrot.slane %v977_v60, %v6448_v46  ;;  %v1013_v7 = vmul.f32 %v1006_v52, %v1000_v63  ;;  %v1014_v8 = vmul.f32 %v1010_v57, %v999_v62  ;;  %v5942_v59 = vld [vmem:[%s8274_s1 + $0x7] ss:$8 sm:$0x3] }
 0x2fc   :  { %v1214_v10 = vrot.slane %v5942_v59, %v6306_v5 }
 0x2fd   :  { %v991_v11 = vrot.slane %v984_v6, %v6448_v46  ;;  %v1017_v12 = vcombine.low %v1013_v7, %v1014_v8  ;;  %v1038_v13 = vpop.permute.xlu1 %1037  ;;  %v1036_v14 = vpop.permute.xlu0 %1035  ;;  %v1210_v6 = vrot.slane %v5942_v59, %v6303_v4 }
 0x2fe   :  { %v1039_v15 = vsel %vm290_vm5, %v1036_v14, %v1038_v13  ;;  %v1040_v16 = vsel %vm290_vm5, %v1038_v13, %v1036_v14 }
 0x2ff   :  { %993 = vst.msk [vmem:[#allocation3] ss:$8 sm:$0x3] %vm6292_vm0, %v991_v11  ;;  %v1024_v18 = vrot.slane %v1017_v12, %v6448_v46  ;;  %v1053_v19 = vmul.f32 %v1046_v0, %v1040_v16  ;;  %v1054_v20 = vmul.f32 %v1050_v9, %v1039_v15 }
 0x301   :  { %v1031_v27 = vrot.slane %v1024_v18, %v6448_v46  ;;  %v1057_v33 = vcombine.low %v1053_v19, %v1054_v20  ;;  %v1078_v34 = vpop.permute.xlu1 %1077  ;;  %v1076_v36 = vpop.permute.xlu0 %1075 }
 0x302   :  { %v1079_v29 = vsel %vm333_vm6, %v1076_v36, %v1078_v34  ;;  %v1080_v37 = vsel %vm333_vm6, %v1078_v34, %v1076_v36  ;;  %v1286_v28 = vld [vmem:[#allocation3 + $0x18] sm:$0xff]  ;;  %v1285_v30 = vld [vmem:[#allocation3 + $0x10] sm:$0xff]  ;;  %v5962_v36 = vld [vmem:[%s8275_s0 + $0x108] sm:$0xff] }
 0x303   :  { %1033 = vst.msk [vmem:[#allocation3 + $0x1] ss:$8 sm:$0x3] %vm6292_vm0, %v1031_v27  ;;  %v1064_v32 = vrot.slane %v1057_v33, %v6448_v46  ;;  %v1093_v38 = vmul.f32 %v1086_v17, %v1080_v37  ;;  %v1094_v39 = vmul.f32 %v1090_v21, %v1079_v29  ;;  %1327 = vmatprep.subr.mxu1 %v1286_v28  ;;  %v5959_v29 = vld [vmem:[%s8275_s0 + $0xf0] sm:$0xff]  ;;  %v5958_v37 = vld [vmem:[%s8275_s0 + $0xe8] sm:$0xff]  ;;  %v5957_v28 = vld [vmem:[%s8275_s0 + $0xe0] sm:$0xff] }
 0x304   :  { %1328 = vmatpush1.msra.mxu1 %v1285_v30  ;;  %v5956_v30 = vld [vmem:[%s8275_s0 + $0xd8] sm:$0xff] }
 0x305   :  { %v1071_v47 = vrot.slane %v1064_v32, %v6448_v46  ;;  %v1097_v48 = vcombine.low %v1093_v38, %v1094_v39  ;;  %v1122_v49 = vpop.permute.xlu1 %1121  ;;  %v1120_v50 = vpop.permute.xlu0 %1119 }
 0x306   :  { %v1123_v51 = vsel %vm382_vm7, %v1120_v50, %v1122_v49  ;;  %v1124_v52 = vsel %vm382_vm7, %v1122_v49, %v1120_v50  ;;  %v920_v32 = vpop.f32.mrf.mxu0 }
 0x307   :  { %1073 = vst.msk [vmem:[#allocation3 + $0x2] ss:$8 sm:$0x3] %vm6292_vm0, %v1071_v47  ;;  %v1104_v54 = vrot.slane %v1097_v48, %v6448_v46  ;;  %v1137_v55 = vmul.f32 %v1130_v31, %v1123_v51  ;;  %v1138_v57 = vmul.f32 %v1134_v40, %v1124_v52  ;;  %v5955_v31 = vld [vmem:[%s8275_s0 + $0xd0] sm:$0xff] }
 0x308   :  { %v922_v38 = vpop.f32.mrf.mxu0 }
 0x309   :  { %v1111_v60 = vrot.slane %v1104_v54, %v6448_v46  ;;  %v1141_v23 = vcombine.low %v1137_v55, %v1138_v57  ;;  %v1162_v61 = vpop.permute.xlu1 %1161  ;;  %v1160_v62 = vpop.permute.xlu0 %1159 }
 0x30a   :  { %v1163_v63 = vsel %vm425_vm8, %v1160_v62, %v1162_v61  ;;  %v1164_v0 = vsel %vm425_vm8, %v1162_v61, %v1160_v62  ;;  %v926_v39 = vpop.f32.mrf.mxu0 }
 0x30b   :  { %1113 = vst.msk [vmem:[#allocation3 + $0x3] ss:$8 sm:$0x3] %vm6292_vm0, %v1111_v60  ;;  %v1148_v7 = vrot.slane %v1141_v23, %v6448_v46  ;;  %v1177_v8 = vmul.f32 %v1170_v53, %v1163_v63  ;;  %v1178_v9 = vmul.f32 %v1174_v58, %v1164_v0 }
 0x30c   :  { %v928_v40 = vpop.f32.mrf.mxu0 }
 0x30d   :  { %v1155_v11 = vrot.slane %v1148_v7, %v6448_v46  ;;  %v1181_v12 = vcombine.low %v1177_v8, %v1178_v9  ;;  %v1202_v13 = vpop.permute.xlu1 %1201  ;;  %v1200_v14 = vpop.permute.xlu0 %1199 }
 0x30e   :  { %v1203_v15 = vsel %vm468_vm9, %v1200_v14, %v1202_v13  ;;  %v1204_v16 = vsel %vm468_vm9, %v1202_v13, %v1200_v14  ;;  %v932_v45 = vpop.f32.mrf.mxu0 }
 0x30f   :  { %1157 = vst.msk [vmem:[#allocation3 + $0x5] ss:$8 sm:$0x3] %vm6292_vm0, %v1155_v11  ;;  %v1188_v17 = vrot.slane %v1181_v12, %v6448_v46  ;;  %v1217_v18 = vmul.f32 %v1210_v6, %v1203_v15  ;;  %v1218_v19 = vmul.f32 %v1214_v10, %v1204_v16 }
 0x310   :  { %v934_v48 = vpop.f32.mrf.mxu0 }
 0x311   :  { %v1195_v20 = vrot.slane %v1188_v17, %v6448_v46  ;;  %v1221_v21 = vcombine.low %v1217_v18, %v1218_v19 }
 0x312   :  { %v938_v51 = vpop.f32.mrf.mxu0 }
 0x313   :  { %1197 = vst.msk [vmem:[#allocation3 + $0x6] ss:$8 sm:$0x3] %vm6292_vm0, %v1195_v20  ;;  %v1228_v22 = vrot.slane %v1221_v21, %v6448_v46 }
 0x314   :  { %v940_v57 = vpop.f32.mrf.mxu0 }
 0x315   :  { %v1235_v27 = vrot.slane %v1228_v22, %v6448_v46 }
 0x317   :  { %1237 = vst.msk [vmem:[#allocation3 + $0x7] ss:$8 sm:$0x3] %vm6292_vm0, %v1235_v27 }
 0x31a   :  { %v840_v52 = vpop.permute.xlu0 %839  ;;  %v835_v54 = vpop.permute.xlu1 %834 }
 0x31b   :  { %v939_v60 = vadd.f32 %v938_v51, %v840_v52  ;;  %v935_v61 = vadd.f32 %v934_v48, %v835_v54  ;;  %v941_v62 = vadd.f32 %v940_v57, %v840_v52  ;;  %v933_v0 = vadd.f32 %v932_v45, %v835_v54  ;;  %v5972_v52 = vld [vmem:[%s8274_s1 + $0x4] ss:$8 sm:$0x3] }
 0x31e   :  { %v1283_v33 = vld [vmem:[#allocation3] sm:$0xff]  ;;  %v1284_v34 = vld [vmem:[#allocation3 + $0x8] sm:$0xff]  ;;  %v830_v59 = vpop.permute.xlu0 %829  ;;  %v825_v63 = vpop.permute.xlu1 %824 }
 0x31f   :  { %1329 = vmatprep.subr.mxu1 %v1284_v34  ;;  %v929_v8 = vadd.f32 %v928_v40, %v830_v59  ;;  %v927_v11 = vadd.f32 %v926_v39, %v830_v59  ;;  %v923_v13 = vadd.f32 %v922_v38, %v825_v63  ;;  %v921_v16 = vadd.f32 %v920_v32, %v825_v63  ;;  %v6230_v59 = vld [vmem:[%s8277_s3 + $0x18] sm:$0xff] }
 0x320   :  { %1330 = vmatpush1.msra.mxu1 %v1283_v33 }
 0x321   :  { %5944 = vmatmul.mubr.msk.f32.vlgmr.msra.gmra.mxu1 %vm558_vm10, %v6550_v41  ;;  %v5964_v41 = vld [vmem:[%s8275_s0 + $0x118] sm:$0xff] }
 0x322   :  { %1369 = vmatprep.mubr.f32.mxu1 %v6234_v1  ;;  %1602 = vmatprep.subr.mxu0 %v5964_v41 }
 0x325   :  { %5945 = vmatmul.mubr.msk.f32.gmra.mxu1 %vm558_vm10, %v6558_v42  ;;  %v5963_v42 = vld [vmem:[%s8275_s0 + $0x110] sm:$0xff] }
 0x326   :  { %1375 = vmatprep.mubr.f32.mxu1 %v6234_v1  ;;  %1603 = vmatpush1.msra.mxu0 %v5963_v42  ;;  %v5954_v42 = vld [vmem:[%s8275_s0 + $0xc8] sm:$0xff] }
 0x327   :  { %1604 = vmatprep.subr.mxu0 %v5962_v36  ;;  %v5953_v36 = vld [vmem:[%s8275_s0 + $0xc0] sm:$0xff] }
 0x329   :  { %5946 = vmatmul.mubr.msk.f32.gmra.mxu1 %vm558_vm10, %v6566_v43  ;;  %v5961_v43 = vld [vmem:[%s8275_s0 + $0x100] sm:$0xff] }
 0x32a   :  { %1381 = vmatprep.mubr.f32.mxu1 %v6234_v1  ;;  %1605 = vmatpush1.msra.mxu0 %v5961_v43  ;;  %v6228_v43 = vld [vmem:[%s8276_s2] sm:$0xff] }
 0x32d   :  { %5947 = vmatmul.mubr.msk.f32.gmra.mxu1 %vm558_vm10, %v6574_v44  ;;  %v5960_v44 = vld [vmem:[%s8275_s0 + $0xf8] sm:$0xff] }
 0x32e   :  { %1478 = vmatprep.mubr.f32.mxu1 %v6234_v1  ;;  %1606 = vmatprep.subr.mxu0 %v5960_v44 }
 0x32f   :  { %1607 = vmatpush1.msra.mxu0 %v5959_v29 }
 0x330   :  { %1608 = vmatprep.subr.mxu0 %v5958_v37 }
 0x331   :  { %1609 = vmatpush1.msra.mxu0 %v5957_v28 }
 0x332   :  { %1610 = vmatprep.subr.mxu0 %v5956_v30 }
 0x333   :  { %1611 = vmatpush1.msra.mxu0 %v5955_v31 }
 0x334   :  { %1612 = vmatprep.subr.mxu0 %v5954_v42 }
 0x335   :  { %1613 = vmatpush1.msra.mxu0 %v5953_v36 }
 0x336   :  { %5965 = vmatmul.mubr.msk.f32.vlgmr.msra.gmra.mxu0 %vm82_vm1, %v6228_v43 }
 0x337   :  { %1652 = vmatprep.mubr.f32.mxu0 %v6234_v1 }
 0x33a   :  { %5966 = vmatmul.mubr.msk.f32.gmra.mxu0 %vm82_vm1, %v6378_v24 }
 0x33b   :  { %1658 = vmatprep.mubr.f32.mxu0 %v6234_v1 }
 0x33e   :  { %5967 = vmatmul.mubr.msk.f32.gmra.mxu0 %vm82_vm1, %v6386_v25 }
 0x33f   :  { %1664 = vmatprep.mubr.f32.mxu0 %v6234_v1 }
 0x342   :  { %5968 = vmatmul.mubr.msk.f32.gmra.mxu0 %vm82_vm1, %v6394_v26 }
 0x343   :  { %2206 = vmatprep.mubr.f32.mxu0 %v6234_v1 }
 0x3e1   :  { %v1365_v47 = vpop.f32.mrf.mxu1 }
 0x3e2   :  { %v1388_v21 = vadd.f32 %v1365_v47, %v921_v16 }
 0x3e3   :  { %v1367_v49 = vpop.f32.mrf.mxu1 }
 0x3e4   :  { %v1389_v19 = vadd.f32 %v1367_v49, %v923_v13  ;;  %v1396_v41 = vmax.f32 %v1388_v21, 0.0 }
 0x3e5   :  { %v1371_v50 = vpop.f32.mrf.mxu1 }
 0x3e6   :  { %v1390_v17 = vadd.f32 %v1371_v50, %v927_v11  ;;  %v1397_v34 = vmax.f32 %v1389_v19, 0.0 }
 0x3e7   :  { %v1373_v53 = vpop.f32.mrf.mxu1 }
 0x3e8   :  { %v1391_v14 = vadd.f32 %v1373_v53, %v929_v8  ;;  %v1398_v33 = vmax.f32 %v1390_v17, 0.0 }
 0x3e9   :  { %v1377_v55 = vpop.f32.mrf.mxu1 }
 0x3ea   :  { %v1392_v12 = vadd.f32 %v1377_v55, %v933_v0  ;;  %v1399_v27 = vmax.f32 %v1391_v14, 0.0 }
 0x3eb   :  { %v1379_v58 = vpop.f32.mrf.mxu1 }
 0x3ec   :  { %v1393_v9 = vadd.f32 %v1379_v58, %v935_v61  ;;  %v1400_v22 = vmax.f32 %v1392_v12, 0.0  ;;  %v6229_v58 = vld [vmem:[%s8277_s3 + $0x10] sm:$0xff]  ;;  %v6233_v61 = vld [vmem:[%s8278_s6] sm:$0xff] }
 0x3ed   :  { %v1383_v23 = vpop.f32.mrf.mxu1 }
 0x3ee   :  { %v1394_v6 = vadd.f32 %v1383_v23, %v939_v60  ;;  %v1401_v20 = vmax.f32 %v1393_v9, 0.0  ;;  %v6231_v60 = vld [vmem:[%s8277_s3] sm:$0xff]  ;;  %v6232_v23 = vld [vmem:[%s8277_s3 + $0x8] sm:$0xff] }
 0x3ef   :  { %v1385_v7 = vpop.f32.mrf.mxu1 }
 0x3f0   :  { %v1395_v10 = vadd.f32 %v1385_v7, %v941_v62  ;;  %v1402_v18 = vmax.f32 %v1394_v6, 0.0  ;;  %v5976_v62 = vld [vmem:[%s8274_s1 + $0x10] ss:$8 sm:$0x3] }
 0x3f1   :  { %v1978_v63 = vrot.slane %v5976_v62, %v6303_v4  ;;  %v1982_v0 = vrot.slane %v5976_v62, %v6306_v5  ;;  %v1689_v6 = vld [vmem:[%s8274_s1] ss:$8 sm:$0x3] }
 0x3f2   :  { %v1403_v15 = vmax.f32 %v1395_v10, 0.0  ;;  %v1694_v13 = vrot.slane %v1689_v6, %v6303_v4  ;;  %v1698_v14 = vrot.slane %v1689_v6, %v6306_v5 }
 0x3f4   :  { %1438 = vmatprep.subr.mxu1 %v1403_v15  ;;  %v5969_v15 = vld [vmem:[%s8274_s1 + $0x1] ss:$8 sm:$0x3] }
 0x3f5   :  { %1439 = vmatpush1.msra.mxu1 %v1402_v18  ;;  %v1734_v21 = vrot.slane %v5969_v15, %v6303_v4 }
 0x3f6   :  { %1440 = vmatprep.subr.mxu1 %v1401_v20 }
 0x3f7   :  { %1441 = vmatpush1.msra.mxu1 %v1400_v22 }
 0x3f8   :  { %1442 = vmatprep.subr.mxu1 %v1399_v27 }
 0x3f9   :  { %1443 = vmatpush1.msra.mxu1 %v1398_v33 }
 0x3fa   :  { %1444 = vmatprep.subr.mxu1 %v1397_v34  ;;  %v1738_v34 = vrot.slane %v5969_v15, %v6306_v5 }
 0x3fb   :  { %1445 = vmatpush1.msra.mxu1 %v1396_v41  ;;  %v5970_v41 = vld [vmem:[%s8274_s1 + $0x2] ss:$8 sm:$0x3] }
 0x3fc   :  { %5948 = vmatmul.mubr.msk.f32.vlgmr.msra.gmra.mxu1 %vm683_vm11, %v6612_v56  ;;  %v1409_v56 = vpop.permute.xlu0 %1408 }
 0x3fd   :  { %2091 = vmatprep.mubr.f32.mxu1 %v6234_v1 }
 0x4bc   :  { %v1480_v44 = vpop.f32.mrf.mxu1 }
 0x4bd   :  { %v1481_v29 = vadd.f32 %v1480_v44, %v1409_v56 }
 0x4be   :  { %v1482_v37 = vpop.f32.mrf.mxu1 }
 0x4bf   :  { %v5949_v28 = vmul.f32 -1.442695, %v1481_v29  ;;  %v1483_v30 = vadd.f32 %v1482_v37, %v1409_v56  ;;  %v1774_v37 = vrot.slane %v5970_v41, %v6303_v4 }
 0x4c1   :  { %6172 = vpow2.f32 %v5949_v28  ;;  %v5950_v24 = vmul.f32 -1.442695, %v1483_v30 }
 0x4c3   :  { %6174 = vpow2.f32 %v5950_v24 }
 0x4ce   :  { %v6173_v31 = vpop.eup %6172 }
 0x4cf   :  { %v1491_v32 = vadd.f32 1.0, %v6173_v31  ;;  %v1778_v31 = vrot.slane %v5970_v41, %v6306_v5 }
 0x4d0   :  { %v6175_v38 = vpop.eup %6174 }
 0x4d1   :  { %6176 = vrcp.f32 %v1491_v32  ;;  %v1492_v25 = vadd.f32 1.0, %v6175_v38  ;;  %v5971_v32 = vld [vmem:[%s8274_s1 + $0x3] ss:$8 sm:$0x3] }
 0x4d3   :  { %6178 = vrcp.f32 %v1492_v25 }
 0x4de   :  { %v6177_v39 = vpop.eup %6176 }
 0x4df   :  { %v1500_v26 = vrot.slane %v6177_v39, %v6303_v4 }
 0x4e0   :  { %v6179_v40 = vpop.eup %6178 }
 0x4e1   :  { %v1505_v45 = vsel %vm41_vm12, %v1500_v26, %v1481_v29  ;;  %v1504_v47 = vrot.slane %v6179_v40, %v6303_v4  ;;  %v1512_v48 = vcombine.low %v6177_v39, %v6179_v40 }
 0x4e2   :  { %5951 = vst [vmem:[%s8281_s7 + $0x10] sm:$0xff] %v1505_v45 }
 0x4e3   :  { %v1506_v49 = vsel %vm41_vm12, %v1504_v47, %v1483_v30  ;;  %v1519_v50 = vrot.slane %v1512_v48, %v6448_v46  ;;  %v1814_v47 = vrot.slane %v5971_v32, %v6303_v4 }
 0x4e4   :  { %5952 = vst [vmem:[%s8281_s7 + $0x18] sm:$0xff] %v1506_v49 }
 0x4e5   :  { %v1526_v51 = vrot.slane %v1519_v50, %v6448_v46 }
 0x4e7   :  { %1528 = vst.msk [vmem:[#allocation2] sm:$0x3] %vm6292_vm0, %v1526_v51  ;;  %v1818_v51 = vrot.slane %v5971_v32, %v6306_v5 }
 0x4ee   :  { %v1671_v53 = vld [vmem:[#allocation2] sm:$0x3] }
 0x4ef   :  { %v1680_v54 = vrot.slane %v1671_v53, %v6306_v5  ;;  %v1844_v55 = vmul.f32 %v5972_v52, %v1671_v53  ;;  %v1676_v57 = vrot.slane %v1671_v53, %v6303_v4  ;;  %v5973_v52 = vld [vmem:[%s8274_s1 + $0x5] ss:$8 sm:$0x3] }
 0x4f0   :  { %v1862_v6 = vrot.slane %v5973_v52, %v6306_v5 }
 0x4f1   :  { %1845 = vst.msk [vmem:[#allocation3 + $0x4] ss:$8 sm:$0x3] %vm6292_vm0, %v1844_v55  ;;  %1969 = vrot.lane.b32.xlu0 %v1680_v54, %s6236_s25  ;;  %1967 = vrot.lane.b32.xlu1 %v1676_v57, %s6236_s25 }
 0x4f5   :  { %1685 = vrot.lane.b32.xlu0 %v1680_v54, %s6235_s24  ;;  %1683 = vrot.lane.b32.xlu1 %v1676_v57, %s6235_s24 }
 0x4f9   :  { %1725 = vrot.lane.b32.xlu0 %v1680_v54, %s6237_s28  ;;  %1723 = vrot.lane.b32.xlu1 %v1676_v57, %s6237_s28 }
 0x4fd   :  { %1765 = vrot.lane.b32.xlu0 %v1680_v54, %s6238_s29  ;;  %1763 = vrot.lane.b32.xlu1 %v1676_v57, %s6238_s29 }
 0x501   :  { %1805 = vrot.lane.b32.xlu0 %v1680_v54, %s6239_s30  ;;  %1803 = vrot.lane.b32.xlu1 %v1676_v57, %s6239_s30 }
 0x505   :  { %1849 = vrot.lane.b32.xlu0 %v1680_v54, %s6240_s14  ;;  %1847 = vrot.lane.b32.xlu1 %v1676_v57, %s6240_s14 }
 0x509   :  { %1889 = vrot.lane.b32.xlu0 %v1680_v54, %s6241_s23  ;;  %1887 = vrot.lane.b32.xlu1 %v1676_v57, %s6241_s23 }
 0x50d   :  { %1929 = vrot.lane.b32.xlu0 %v1680_v54, %s6242_s12  ;;  %1927 = vrot.lane.b32.xlu1 %v1676_v57, %s6242_s12 }
 0x511   :  { %1562 = vperm.xlu0 %6162, %v6229_v58   ;;  %1567 = vperm.xlu1 %6163, %v6230_v59  }
 0x515   :  { %1552 = vperm.xlu0 %6162, %v6231_v60   ;;  %1557 = vperm.xlu1 %6163, %v6232_v23  }
 0x519   :  { %2136 = vperm.xlu1 %6163, %v6233_v61   ;;  %v1858_v61 = vrot.slane %v5973_v52, %v6303_v4  ;;  %v5997_v52 = vld [vmem:[%s8275_s0 + $0x178] sm:$0xff] }
 0x563   :  { %v1970_v7 = vpop.permute.xlu0 %1969  ;;  %v1968_v8 = vpop.permute.xlu1 %1967 }
 0x564   :  { %v1971_v9 = vsel %vm511_vm3, %v1968_v8, %v1970_v7  ;;  %v1972_v10 = vsel %vm511_vm3, %v1970_v7, %v1968_v8  ;;  %v5974_v7 = vld [vmem:[%s8274_s1 + $0x6] ss:$8 sm:$0x3] }
 0x565   :  { %v1985_v11 = vmul.f32 %v1978_v63, %v1971_v9  ;;  %v1986_v12 = vmul.f32 %v1982_v0, %v1972_v10 }
 0x567   :  { %v1989_v16 = vcombine.low %v1985_v11, %v1986_v12  ;;  %v1686_v17 = vpop.permute.xlu0 %1685  ;;  %v1684_v18 = vpop.permute.xlu1 %1683 }
 0x568   :  { %v1687_v19 = vsel %vm202_vm2, %v1684_v18, %v1686_v17  ;;  %v1688_v20 = vsel %vm202_vm2, %v1686_v17, %v1684_v18  ;;  %v1902_v18 = vrot.slane %v5974_v7, %v6306_v5 }
 0x569   :  { %v1996_v22 = vrot.slane %v1989_v16, %v6448_v46  ;;  %v1701_v27 = vmul.f32 %v1694_v13, %v1688_v20  ;;  %v1702_v33 = vmul.f32 %v1698_v14, %v1687_v19  ;;  %v1898_v14 = vrot.slane %v5974_v7, %v6303_v4  ;;  %v5975_v19 = vld [vmem:[%s8274_s1 + $0x7] ss:$8 sm:$0x3] }
 0x56a   :  { %v1938_v41 = vrot.slane %v5975_v19, %v6303_v4 }
 0x56b   :  { %v2003_v42 = vrot.slane %v1996_v22, %v6448_v46  ;;  %v1705_v36 = vcombine.low %v1701_v27, %v1702_v33  ;;  %v1726_v43 = vpop.permute.xlu0 %1725  ;;  %v1724_v56 = vpop.permute.xlu1 %1723 }
 0x56c   :  { %v1727_v44 = vsel %vm247_vm4, %v1724_v56, %v1726_v43  ;;  %v1728_v29 = vsel %vm247_vm4, %v1726_v43, %v1724_v56  ;;  %v1942_v56 = vrot.slane %v5975_v19, %v6306_v5 }
 0x56d   :  { %2005 = vst.msk [vmem:[#allocation3 + $0x10] ss:$8 sm:$0x3] %vm6292_vm0, %v2003_v42  ;;  %v1712_v28 = vrot.slane %v1705_v36, %v6448_v46  ;;  %v1741_v30 = vmul.f32 %v1734_v21, %v1728_v29  ;;  %v1742_v24 = vmul.f32 %v1738_v34, %v1727_v44 }
 0x56f   :  { %v1719_v38 = vrot.slane %v1712_v28, %v6448_v46  ;;  %v1745_v25 = vcombine.low %v1741_v30, %v1742_v24  ;;  %v1766_v39 = vpop.permute.xlu0 %1765  ;;  %v1764_v26 = vpop.permute.xlu1 %1763 }
 0x570   :  { %v1767_v40 = vsel %vm290_vm5, %v1764_v26, %v1766_v39  ;;  %v1768_v45 = vsel %vm290_vm5, %v1766_v39, %v1764_v26 }
 0x571   :  { %1721 = vst.msk [vmem:[#allocation3] ss:$8 sm:$0x3] %vm6292_vm0, %v1719_v38  ;;  %v1752_v48 = vrot.slane %v1745_v25, %v6448_v46  ;;  %v1781_v49 = vmul.f32 %v1774_v37, %v1768_v45  ;;  %v1782_v50 = vmul.f32 %v1778_v31, %v1767_v40 }
 0x573   :  { %v1759_v53 = vrot.slane %v1752_v48, %v6448_v46  ;;  %v1785_v54 = vcombine.low %v1781_v49, %v1782_v50  ;;  %v1806_v55 = vpop.permute.xlu0 %1805  ;;  %v1804_v57 = vpop.permute.xlu1 %1803  ;;  %v7010_v48 = vld [vmem:[%s8279_s4] sm:$0xff]  ;;  %v7018_v49 = vld [vmem:[%s8279_s4 + $0x8] sm:$0xff]  ;;  %v7026_v50 = vld [vmem:[%s8279_s4 + $0x10] sm:$0xff] }
 0x574   :  { %v1807_v58 = vsel %vm333_vm6, %v1804_v57, %v1806_v55  ;;  %v1808_v59 = vsel %vm333_vm6, %v1806_v55, %v1804_v57  ;;  %v2014_v60 = vld [vmem:[#allocation3 + $0x18] sm:$0xff]  ;;  %v2013_v23 = vld [vmem:[#allocation3 + $0x10] sm:$0xff] }
 0x575   :  { %1761 = vst.msk [vmem:[#allocation3 + $0x1] ss:$8 sm:$0x3] %vm6292_vm0, %v1759_v53  ;;  %v1792_v62 = vrot.slane %v1785_v54, %v6448_v46  ;;  %v1821_v63 = vmul.f32 %v1814_v47, %v1808_v59  ;;  %v1822_v0 = vmul.f32 %v1818_v51, %v1807_v58  ;;  %2055 = vmatprep.subr.mxu1 %v2014_v60  ;;  %v7034_v51 = vld [vmem:[%s8279_s4 + $0x18] sm:$0xff]  ;;  %v5996_v53 = vld [vmem:[%s8275_s0 + $0x170] sm:$0xff]  ;;  %v5995_v54 = vld [vmem:[%s8275_s0 + $0x168] sm:$0xff] }
 0x576   :  { %2056 = vmatpush1.msra.mxu1 %v2013_v23  ;;  %v5994_v55 = vld [vmem:[%s8275_s0 + $0x160] sm:$0xff]  ;;  %v5993_v57 = vld [vmem:[%s8275_s0 + $0x158] sm:$0xff]  ;;  %v5992_v58 = vld [vmem:[%s8275_s0 + $0x150] sm:$0xff] }
 0x577   :  { %v1799_v8 = vrot.slane %v1792_v62, %v6448_v46  ;;  %v1825_v9 = vcombine.low %v1821_v63, %v1822_v0  ;;  %v1850_v10 = vpop.permute.xlu0 %1849  ;;  %v1848_v11 = vpop.permute.xlu1 %1847  ;;  %v5991_v59 = vld [vmem:[%s8275_s0 + $0x148] sm:$0xff]  ;;  %v5990_v60 = vld [vmem:[%s8275_s0 + $0x140] sm:$0xff]  ;;  %v5989_v23 = vld [vmem:[%s8275_s0 + $0x138] sm:$0xff] }
 0x578   :  { %v1851_v12 = vsel %vm382_vm7, %v1848_v11, %v1850_v10  ;;  %v1852_v13 = vsel %vm382_vm7, %v1850_v10, %v1848_v11  ;;  %v1648_v62 = vpop.f32.mrf.mxu0 }
 0x579   :  { %1801 = vst.msk [vmem:[#allocation3 + $0x2] ss:$8 sm:$0x3] %vm6292_vm0, %v1799_v8  ;;  %v1832_v15 = vrot.slane %v1825_v9, %v6448_v46  ;;  %v1865_v16 = vmul.f32 %v1858_v61, %v1851_v12  ;;  %v1866_v17 = vmul.f32 %v1862_v6, %v1852_v13  ;;  %v5988_v61 = vld [vmem:[%s8275_s0 + $0x130] sm:$0xff] }
 0x57a   :  { %v1650_v63 = vpop.f32.mrf.mxu0 }
 0x57b   :  { %v1839_v20 = vrot.slane %v1832_v15, %v6448_v46  ;;  %v1869_v21 = vcombine.low %v1865_v16, %v1866_v17  ;;  %v1890_v22 = vpop.permute.xlu0 %1889  ;;  %v1888_v27 = vpop.permute.xlu1 %1887 }
 0x57c   :  { %v1891_v33 = vsel %vm425_vm8, %v1888_v27, %v1890_v22  ;;  %v1892_v34 = vsel %vm425_vm8, %v1890_v22, %v1888_v27  ;;  %v1654_v0 = vpop.f32.mrf.mxu0 }
 0x57d   :  { %1841 = vst.msk [vmem:[#allocation3 + $0x3] ss:$8 sm:$0x3] %vm6292_vm0, %v1839_v20  ;;  %v1876_v42 = vrot.slane %v1869_v21, %v6448_v46  ;;  %v1905_v36 = vmul.f32 %v1898_v14, %v1891_v33  ;;  %v1906_v43 = vmul.f32 %v1902_v18, %v1892_v34 }
 0x57e   :  { %v1656_v6 = vpop.f32.mrf.mxu0 }
 0x57f   :  { %v1883_v44 = vrot.slane %v1876_v42, %v6448_v46  ;;  %v1909_v29 = vcombine.low %v1905_v36, %v1906_v43  ;;  %v1930_v37 = vpop.permute.xlu0 %1929  ;;  %v1928_v28 = vpop.permute.xlu1 %1927 }
 0x580   :  { %v1931_v30 = vsel %vm468_vm9, %v1928_v28, %v1930_v37  ;;  %v1932_v24 = vsel %vm468_vm9, %v1930_v37, %v1928_v28  ;;  %v1660_v7 = vpop.f32.mrf.mxu0 }
 0x581   :  { %1885 = vst.msk [vmem:[#allocation3 + $0x5] ss:$8 sm:$0x3] %vm6292_vm0, %v1883_v44  ;;  %v1916_v31 = vrot.slane %v1909_v29, %v6448_v46  ;;  %v1945_v32 = vmul.f32 %v1938_v41, %v1931_v30  ;;  %v1946_v38 = vmul.f32 %v1942_v56, %v1932_v24 }
 0x582   :  { %v1662_v9 = vpop.f32.mrf.mxu0 }
 0x583   :  { %v1923_v25 = vrot.slane %v1916_v31, %v6448_v46  ;;  %v1949_v39 = vcombine.low %v1945_v32, %v1946_v38 }
 0x584   :  { %v1666_v12 = vpop.f32.mrf.mxu0 }
 0x585   :  { %1925 = vst.msk [vmem:[#allocation3 + $0x6] ss:$8 sm:$0x3] %vm6292_vm0, %v1923_v25  ;;  %v1956_v26 = vrot.slane %v1949_v39, %v6448_v46 }
 0x586   :  { %v1668_v17 = vpop.f32.mrf.mxu0 }
 0x587   :  { %v1963_v40 = vrot.slane %v1956_v26, %v6448_v46 }
 0x589   :  { %1965 = vst.msk [vmem:[#allocation3 + $0x7] ss:$8 sm:$0x3] %vm6292_vm0, %v1963_v40 }
 0x58c   :  { %v1568_v13 = vpop.permute.xlu1 %1567  ;;  %v1563_v15 = vpop.permute.xlu0 %1562 }
 0x58d   :  { %v1667_v20 = vadd.f32 %v1666_v12, %v1568_v13  ;;  %v1663_v22 = vadd.f32 %v1662_v9, %v1563_v15  ;;  %v1669_v27 = vadd.f32 %v1668_v17, %v1568_v13  ;;  %v1661_v34 = vadd.f32 %v1660_v7, %v1563_v15 }
 0x590   :  { %v2011_v45 = vld [vmem:[#allocation3] sm:$0xff]  ;;  %v2012_v47 = vld [vmem:[#allocation3 + $0x8] sm:$0xff]  ;;  %v1558_v19 = vpop.permute.xlu1 %1557  ;;  %v1553_v33 = vpop.permute.xlu0 %1552 }
 0x591   :  { %2057 = vmatprep.subr.mxu1 %v2012_v47  ;;  %v1657_v36 = vadd.f32 %v1656_v6, %v1558_v19  ;;  %v1655_v44 = vadd.f32 %v1654_v0, %v1558_v19  ;;  %v1651_v37 = vadd.f32 %v1650_v63, %v1553_v33  ;;  %v1649_v24 = vadd.f32 %v1648_v62, %v1553_v33 }
 0x592   :  { %2058 = vmatpush1.msra.mxu1 %v2011_v45 }
 0x593   :  { %5977 = vmatmul.mubr.msk.f32.vlgmr.msra.gmra.mxu1 %vm558_vm10, %v7010_v48  ;;  %2330 = vmatprep.subr.mxu1 %v5997_v52 }
 0x594   :  { %2097 = vmatprep.mubr.f32.mxu1 %v6234_v1  ;;  %2331 = vmatpush1.msra.mxu1 %v5996_v53  ;;  %v7072_v53 = vld [vmem:[%s8280_s5] sm:$0xff] }
 0x595   :  { %2332 = vmatprep.subr.mxu1 %v5995_v54  ;;  %v5987_v54 = vld [vmem:[%s8275_s0 + $0x128] sm:$0xff] }
 0x596   :  { %2333 = vmatpush1.msra.mxu1 %v5994_v55  ;;  %v5986_v55 = vld [vmem:[%s8275_s0 + $0x120] sm:$0xff] }
 0x597   :  { %5978 = vmatmul.mubr.msk.f32.gmra.mxu1 %vm558_vm10, %v7018_v49  ;;  %2334 = vmatprep.subr.mxu1 %v5993_v57  ;;  %v7086_v57 = vld [vmem:[%s8276_s2] sm:$0xff] }
 0x598   :  { %2103 = vmatprep.mubr.f32.mxu1 %v6234_v1  ;;  %2335 = vmatpush1.msra.mxu1 %v5992_v58  ;;  %v7094_v58 = vld [vmem:[%s8276_s2 + $0x8] sm:$0xff] }
 0x599   :  { %2336 = vmatprep.subr.mxu1 %v5991_v59  ;;  %v7102_v59 = vld [vmem:[%s8276_s2 + $0x10] sm:$0xff] }
 0x59a   :  { %2337 = vmatpush1.msra.mxu1 %v5990_v60  ;;  %v7110_v60 = vld [vmem:[%s8276_s2 + $0x18] sm:$0xff] }
 0x59b   :  { %5979 = vmatmul.mubr.msk.f32.gmra.mxu1 %vm558_vm10, %v7026_v50  ;;  %2338 = vmatprep.subr.mxu1 %v5989_v23  ;;  %v2137_v23 = vpop.permute.xlu1 %2136 }
 0x59c   :  { %2109 = vmatprep.mubr.f32.mxu1 %v6234_v1  ;;  %2339 = vmatpush1.msra.mxu1 %v5988_v61 }
 0x59d   :  { %2340 = vmatprep.subr.mxu1 %v5987_v54 }
 0x59e   :  { %2341 = vmatpush1.msra.mxu1 %v5986_v55 }
 0x59f   :  { %5980 = vmatmul.mubr.msk.f32.gmra.mxu1 %vm558_vm10, %v7034_v51 }
 0x5a0   :  { %2374 = vmatprep.mubr.f32.mxu1 %v6234_v1 }
 0x5a3   :  { %5998 = vmatmul.mubr.msk.f32.vlgmr.msra.gmra.mxu1 %vm82_vm1, %v7086_v57 }
 0x5a4   :  { %2380 = vmatprep.mubr.f32.mxu1 %v6234_v1 }
 0x5a7   :  { %5999 = vmatmul.mubr.msk.f32.gmra.mxu1 %vm82_vm1, %v7094_v58 }
 0x5a8   :  { %2386 = vmatprep.mubr.f32.mxu1 %v6234_v1 }
 0x5ab   :  { %6000 = vmatmul.mubr.msk.f32.gmra.mxu1 %vm82_vm1, %v7102_v59 }
 0x5ac   :  { %2392 = vmatprep.mubr.f32.mxu1 %v6234_v1 }
 0x5af   :  { %6001 = vmatmul.mubr.msk.f32.gmra.mxu1 %vm82_vm1, %v7110_v60 }
 0x5b0   :  { %2934 = vmatprep.mubr.f32.mxu1 %v6234_v1 }
 0x653   :  { %v2093_v8 = vpop.f32.mrf.mxu1 }
 0x654   :  { %v2116_v39 = vadd.f32 %v2093_v8, %v1649_v24 }
 0x655   :  { %v2095_v10 = vpop.f32.mrf.mxu1 }
 0x656   :  { %v2117_v38 = vadd.f32 %v2095_v10, %v1651_v37  ;;  %v2124_v52 = vmax.f32 %v2116_v39, 0.0 }
 0x657   :  { %v2099_v11 = vpop.f32.mrf.mxu1 }
 0x658   :  { %v2118_v31 = vadd.f32 %v2099_v11, %v1655_v44  ;;  %v2125_v47 = vmax.f32 %v2117_v38, 0.0  ;;  %v6009_v44 = vld [vmem:[%s8274_s1 + $0x10] ss:$8 sm:$0x3] }
 0x659   :  { %v2101_v14 = vpop.f32.mrf.mxu1  ;;  %v2710_v37 = vrot.slane %v6009_v44, %v6306_v5 }
 0x65a   :  { %v2119_v28 = vadd.f32 %v2101_v14, %v1657_v36  ;;  %v2126_v45 = vmax.f32 %v2118_v31, 0.0  ;;  %v7169_v36 = vld [vmem:[%s8277_s3] sm:$0xff] }
 0x65b   :  { %v2105_v16 = vpop.f32.mrf.mxu1 }
 0x65c   :  { %v2120_v29 = vadd.f32 %v2105_v16, %v1661_v34  ;;  %v2127_v40 = vmax.f32 %v2119_v28, 0.0  ;;  %v2417_v28 = vld [vmem:[%s8274_s1] ss:$8 sm:$0x3] }
 0x65d   :  { %v2107_v18 = vpop.f32.mrf.mxu1  ;;  %v2422_v39 = vrot.slane %v2417_v28, %v6303_v4 }
 0x65e   :  { %v2121_v43 = vadd.f32 %v2107_v18, %v1663_v22  ;;  %v2128_v26 = vmax.f32 %v2120_v29, 0.0  ;;  %v2706_v29 = vrot.slane %v6009_v44, %v6303_v4 }
 0x65f   :  { %v2111_v21 = vpop.f32.mrf.mxu1 }
 0x660   :  { %v2122_v41 = vadd.f32 %v2111_v21, %v1667_v20  ;;  %v2129_v25 = vmax.f32 %v2121_v43, 0.0  ;;  %v6005_v21 = vld [vmem:[%s8274_s1 + $0x4] ss:$8 sm:$0x3] }
 0x661   :  { %v2113_v42 = vpop.f32.mrf.mxu1  ;;  %v7174_v43 = vld [vmem:[%s8277_s3 + $0x8] sm:$0xff] }
 0x662   :  { %v2123_v56 = vadd.f32 %v2113_v42, %v1669_v27  ;;  %v2130_v32 = vmax.f32 %v2122_v41, 0.0  ;;  %v7157_v41 = vld [vmem:[%s8277_s3 + $0x10] sm:$0xff]  ;;  %v7162_v42 = vld [vmem:[%s8277_s3 + $0x18] sm:$0xff] }
 0x664   :  { %v2131_v30 = vmax.f32 %v2123_v56, 0.0  ;;  %v7181_v56 = vld [vmem:[%s8278_s6] sm:$0xff] }
 0x666   :  { %2166 = vmatprep.subr.mxu0 %v2131_v30 }
 0x667   :  { %2167 = vmatpush1.msra.mxu0 %v2130_v32 }
 0x668   :  { %2168 = vmatprep.subr.mxu0 %v2129_v25 }
 0x669   :  { %2169 = vmatpush1.msra.mxu0 %v2128_v26  ;;  %v2426_v26 = vrot.slane %v2417_v28, %v6306_v5 }
 0x66a   :  { %2170 = vmatprep.subr.mxu0 %v2127_v40  ;;  %v6002_v40 = vld [vmem:[%s8274_s1 + $0x1] ss:$8 sm:$0x3] }
 0x66b   :  { %2171 = vmatpush1.msra.mxu0 %v2126_v45 }
 0x66c   :  { %2172 = vmatprep.subr.mxu0 %v2125_v47 }
 0x66d   :  { %2173 = vmatpush1.msra.mxu0 %v2124_v52 }
 0x66e   :  { %5981 = vmatmul.mubr.msk.f32.vlgmr.msra.gmra.mxu0 %vm683_vm11, %v7072_v53 }
 0x66f   :  { %2819 = vmatprep.mubr.f32.mxu0 %v6234_v1 }
 0x72e   :  { %v2208_v61 = vpop.f32.mrf.mxu0 }
 0x72f   :  { %v2209_v62 = vadd.f32 %v2208_v61, %v2137_v23 }
 0x730   :  { %v2210_v63 = vpop.f32.mrf.mxu0 }
 0x731   :  { %v5982_v0 = vmul.f32 -1.442695, %v2209_v62  ;;  %v2211_v6 = vadd.f32 %v2210_v63, %v2137_v23  ;;  %v2462_v23 = vrot.slane %v6002_v40, %v6303_v4 }
 0x733   :  { %6180 = vpow2.f32 %v5982_v0  ;;  %v5983_v7 = vmul.f32 -1.442695, %v2211_v6  ;;  %v2466_v0 = vrot.slane %v6002_v40, %v6306_v5 }
 0x735   :  { %6182 = vpow2.f32 %v5983_v7 }
 0x740   :  { %v6181_v8 = vpop.eup %6180 }
 0x741   :  { %v2219_v9 = vadd.f32 1.0, %v6181_v8 }
 0x742   :  { %v6183_v10 = vpop.eup %6182 }
 0x743   :  { %6184 = vrcp.f32 %v2219_v9  ;;  %v2220_v11 = vadd.f32 1.0, %v6183_v10 }
 0x745   :  { %6186 = vrcp.f32 %v2220_v11 }
 0x750   :  { %v6185_v12 = vpop.eup %6184 }
 0x751   :  { %v2228_v13 = vrot.slane %v6185_v12, %v6303_v4 }
 0x752   :  { %v6187_v14 = vpop.eup %6186 }
 0x753   :  { %v2233_v15 = vsel %vm41_vm12, %v2228_v13, %v2209_v62  ;;  %v2232_v16 = vrot.slane %v6187_v14, %v6303_v4  ;;  %v2240_v17 = vcombine.low %v6185_v12, %v6187_v14 }
 0x754   :  { %5984 = vst [vmem:[%s8281_s7 + $0x20] sm:$0xff] %v2233_v15 }
 0x755   :  { %v2234_v18 = vsel %vm41_vm12, %v2232_v16, %v2211_v6  ;;  %v2247_v19 = vrot.slane %v2240_v17, %v6448_v46  ;;  %v6003_v6 = vld [vmem:[%s8274_s1 + $0x2] ss:$8 sm:$0x3] }
 0x756   :  { %5985 = vst [vmem:[%s8281_s7 + $0x28] sm:$0xff] %v2234_v18  ;;  %v2502_v13 = vrot.slane %v6003_v6, %v6303_v4  ;;  %v2506_v17 = vrot.slane %v6003_v6, %v6306_v5  ;;  %v6004_v18 = vld [vmem:[%s8274_s1 + $0x3] ss:$8 sm:$0x3] }
 0x757   :  { %v2254_v20 = vrot.slane %v2247_v19, %v6448_v46  ;;  %v2546_v28 = vrot.slane %v6004_v18, %v6306_v5 }
 0x759   :  { %2256 = vst.msk [vmem:[#allocation2] sm:$0x3] %vm6292_vm0, %v2254_v20 }
 0x760   :  { %v2399_v22 = vld [vmem:[#allocation2] sm:$0x3] }
 0x761   :  { %v2408_v27 = vrot.slane %v2399_v22, %v6306_v5  ;;  %v2572_v33 = vmul.f32 %v6005_v21, %v2399_v22  ;;  %v2404_v34 = vrot.slane %v2399_v22, %v6303_v4 }
 0x763   :  { %2573 = vst.msk [vmem:[#allocation3 + $0x4] ss:$8 sm:$0x3] %vm6292_vm0, %v2572_v33  ;;  %2697 = vrot.lane.b32.xlu1 %v2408_v27, %s6236_s25  ;;  %2695 = vrot.lane.b32.xlu0 %v2404_v34, %s6236_s25 }
 0x767   :  { %2413 = vrot.lane.b32.xlu1 %v2408_v27, %s6235_s24  ;;  %2411 = vrot.lane.b32.xlu0 %v2404_v34, %s6235_s24 }
 0x76b   :  { %2453 = vrot.lane.b32.xlu1 %v2408_v27, %s6237_s28  ;;  %2451 = vrot.lane.b32.xlu0 %v2404_v34, %s6237_s28 }
 0x76f   :  { %2493 = vrot.lane.b32.xlu1 %v2408_v27, %s6238_s29  ;;  %2491 = vrot.lane.b32.xlu0 %v2404_v34, %s6238_s29 }
 0x773   :  { %2533 = vrot.lane.b32.xlu1 %v2408_v27, %s6239_s30  ;;  %2531 = vrot.lane.b32.xlu0 %v2404_v34, %s6239_s30 }
 0x777   :  { %2577 = vrot.lane.b32.xlu1 %v2408_v27, %s6240_s14  ;;  %2575 = vrot.lane.b32.xlu0 %v2404_v34, %s6240_s14 }
 0x77b   :  { %2617 = vrot.lane.b32.xlu1 %v2408_v27, %s6241_s23  ;;  %2615 = vrot.lane.b32.xlu0 %v2404_v34, %s6241_s23 }
 0x77f   :  { %2657 = vrot.lane.b32.xlu1 %v2408_v27, %s6242_s12  ;;  %2655 = vrot.lane.b32.xlu0 %v2404_v34, %s6242_s12  ;;  %v2542_v34 = vrot.slane %v6004_v18, %v6303_v4 }
 0x783   :  { %2290 = vperm.xlu1 %6163, %v7157_v41   ;;  %2295 = vperm.xlu0 %6162, %v7162_v42  }
 0x787   :  { %2280 = vperm.xlu1 %6163, %v7169_v36   ;;  %2285 = vperm.xlu0 %6162, %v7174_v43  }
 0x78b   :  { %2864 = vperm.xlu0 %6162, %v7181_v56  }
 0x7d5   :  { %v2698_v30 = vpop.permute.xlu1 %2697  ;;  %v2696_v24 = vpop.permute.xlu0 %2695 }
 0x7d6   :  { %v2699_v31 = vsel %vm511_vm3, %v2696_v24, %v2698_v30  ;;  %v2700_v32 = vsel %vm511_vm3, %v2698_v30, %v2696_v24  ;;  %v6006_v30 = vld [vmem:[%s8274_s1 + $0x5] ss:$8 sm:$0x3] }
 0x7d7   :  { %v2713_v38 = vmul.f32 %v2706_v29, %v2699_v31  ;;  %v2714_v25 = vmul.f32 %v2710_v37, %v2700_v32 }
 0x7d9   :  { %v2717_v45 = vcombine.low %v2713_v38, %v2714_v25  ;;  %v2414_v47 = vpop.permute.xlu1 %2413  ;;  %v2412_v52 = vpop.permute.xlu0 %2411 }
 0x7da   :  { %v2415_v54 = vsel %vm202_vm2, %v2412_v52, %v2414_v47  ;;  %v2416_v55 = vsel %vm202_vm2, %v2414_v47, %v2412_v52 }
 0x7db   :  { %v2724_v61 = vrot.slane %v2717_v45, %v6448_v46  ;;  %v2429_v62 = vmul.f32 %v2422_v39, %v2416_v55  ;;  %v2430_v63 = vmul.f32 %v2426_v26, %v2415_v54  ;;  %v2586_v45 = vrot.slane %v6006_v30, %v6303_v4 }
 0x7dc   :  { %v2590_v55 = vrot.slane %v6006_v30, %v6306_v5 }
 0x7dd   :  { %v2731_v7 = vrot.slane %v2724_v61, %v6448_v46  ;;  %v2433_v8 = vcombine.low %v2429_v62, %v2430_v63  ;;  %v2454_v9 = vpop.permute.xlu1 %2453  ;;  %v2452_v10 = vpop.permute.xlu0 %2451 }
 0x7de   :  { %v2455_v11 = vsel %vm247_vm4, %v2452_v10, %v2454_v9  ;;  %v2456_v12 = vsel %vm247_vm4, %v2454_v9, %v2452_v10 }
 0x7df   :  { %2733 = vst.msk [vmem:[#allocation3 + $0x10] ss:$8 sm:$0x3] %vm6292_vm0, %v2731_v7  ;;  %v2440_v14 = vrot.slane %v2433_v8, %v6448_v46  ;;  %v2469_v15 = vmul.f32 %v2462_v23, %v2456_v12  ;;  %v2470_v16 = vmul.f32 %v2466_v0, %v2455_v11  ;;  %v6007_v23 = vld [vmem:[%s8274_s1 + $0x6] ss:$8 sm:$0x3] }
 0x7e0   :  { %v2626_v8 = vrot.slane %v6007_v23, %v6303_v4  ;;  %v2630_v12 = vrot.slane %v6007_v23, %v6306_v5  ;;  %v6022_v23 = vld [vmem:[%s8275_s0 + $0x198] sm:$0xff] }
 0x7e1   :  { %v2447_v19 = vrot.slane %v2440_v14, %v6448_v46  ;;  %v2473_v20 = vcombine.low %v2469_v15, %v2470_v16  ;;  %v2494_v21 = vpop.permute.xlu1 %2493  ;;  %v2492_v22 = vpop.permute.xlu0 %2491 }
 0x7e2   :  { %v2495_v27 = vsel %vm290_vm5, %v2492_v22, %v2494_v21  ;;  %v2496_v33 = vsel %vm290_vm5, %v2494_v21, %v2492_v22 }
 0x7e3   :  { %2449 = vst.msk [vmem:[#allocation3] ss:$8 sm:$0x3] %vm6292_vm0, %v2447_v19  ;;  %v2480_v44 = vrot.slane %v2473_v20, %v6448_v46  ;;  %v2509_v29 = vmul.f32 %v2502_v13, %v2496_v33  ;;  %v2510_v37 = vmul.f32 %v2506_v17, %v2495_v27  ;;  %v6008_v13 = vld [vmem:[%s8274_s1 + $0x7] ss:$8 sm:$0x3] }
 0x7e4   :  { %v2666_v20 = vrot.slane %v6008_v13, %v6303_v4  ;;  %v2670_v33 = vrot.slane %v6008_v13, %v6306_v5 }
 0x7e5   :  { %v2487_v24 = vrot.slane %v2480_v44, %v6448_v46  ;;  %v2513_v31 = vcombine.low %v2509_v29, %v2510_v37  ;;  %v2534_v32 = vpop.permute.xlu1 %2533  ;;  %v2532_v38 = vpop.permute.xlu0 %2531 }
 0x7e6   :  { %v2535_v25 = vsel %vm333_vm6, %v2532_v38, %v2534_v32  ;;  %v2536_v39 = vsel %vm333_vm6, %v2534_v32, %v2532_v38  ;;  %v2742_v26 = vld [vmem:[#allocation3 + $0x18] sm:$0xff]  ;;  %v2741_v40 = vld [vmem:[#allocation3 + $0x10] sm:$0xff] }
 0x7e7   :  { %2489 = vst.msk [vmem:[#allocation3 + $0x1] ss:$8 sm:$0x3] %vm6292_vm0, %v2487_v24  ;;  %v2520_v47 = vrot.slane %v2513_v31, %v6448_v46  ;;  %v2549_v52 = vmul.f32 %v2542_v34, %v2536_v39  ;;  %v2550_v54 = vmul.f32 %v2546_v28, %v2535_v25  ;;  %2783 = vmatprep.subr.mxu0 %v2742_v26 }
 0x7e8   :  { %2784 = vmatpush1.msra.mxu0 %v2741_v40 }
 0x7e9   :  { %v2527_v61 = vrot.slane %v2520_v47, %v6448_v46  ;;  %v2553_v62 = vcombine.low %v2549_v52, %v2550_v54  ;;  %v2578_v63 = vpop.permute.xlu1 %2577  ;;  %v2576_v0 = vpop.permute.xlu0 %2575  ;;  %v6028_v47 = vld [vmem:[%s8275_s0 + $0x1c8] sm:$0xff]  ;;  %v6025_v52 = vld [vmem:[%s8275_s0 + $0x1b0] sm:$0xff] }
 0x7ea   :  { %v2579_v6 = vsel %vm382_vm7, %v2576_v0, %v2578_v63  ;;  %v2580_v7 = vsel %vm382_vm7, %v2578_v63, %v2576_v0  ;;  %v6024_v54 = vld [vmem:[%s8275_s0 + $0x1a8] sm:$0xff] }
 0x7eb   :  { %2529 = vst.msk [vmem:[#allocation3 + $0x2] ss:$8 sm:$0x3] %vm6292_vm0, %v2527_v61  ;;  %v2560_v9 = vrot.slane %v2553_v62, %v6448_v46  ;;  %v2593_v10 = vmul.f32 %v2586_v45, %v2579_v6  ;;  %v2594_v11 = vmul.f32 %v2590_v55, %v2580_v7  ;;  %v6023_v55 = vld [vmem:[%s8275_s0 + $0x1a0] sm:$0xff]  ;;  %v6021_v61 = vld [vmem:[%s8275_s0 + $0x190] sm:$0xff]  ;;  %v2376_v62 = vpop.f32.mrf.mxu1 }
 0x7ed   :  { %v2567_v14 = vrot.slane %v2560_v9, %v6448_v46  ;;  %v2597_v15 = vcombine.low %v2593_v10, %v2594_v11  ;;  %v2618_v16 = vpop.permute.xlu1 %2617  ;;  %v2616_v17 = vpop.permute.xlu0 %2615 }
 0x7ee   :  { %v2619_v18 = vsel %vm425_vm8, %v2616_v17, %v2618_v16  ;;  %v2620_v19 = vsel %vm425_vm8, %v2618_v16, %v2616_v17  ;;  %v2378_v63 = vpop.f32.mrf.mxu1 }
 0x7ef   :  { %2569 = vst.msk [vmem:[#allocation3 + $0x3] ss:$8 sm:$0x3] %vm6292_vm0, %v2567_v14  ;;  %v2604_v21 = vrot.slane %v2597_v15, %v6448_v46  ;;  %v2633_v22 = vmul.f32 %v2626_v8, %v2619_v18  ;;  %v2634_v27 = vmul.f32 %v2630_v12, %v2620_v19 }
 0x7f0   :  { %v2382_v0 = vpop.f32.mrf.mxu1 }
 0x7f1   :  { %v2611_v34 = vrot.slane %v2604_v21, %v6448_v46  ;;  %v2637_v44 = vcombine.low %v2633_v22, %v2634_v27  ;;  %v2658_v29 = vpop.permute.xlu1 %2657  ;;  %v2656_v37 = vpop.permute.xlu0 %2655 }
 0x7f2   :  { %v2659_v28 = vsel %vm468_vm9, %v2656_v37, %v2658_v29  ;;  %v2660_v30 = vsel %vm468_vm9, %v2658_v29, %v2656_v37  ;;  %v2384_v6 = vpop.f32.mrf.mxu1 }
 0x7f3   :  { %2613 = vst.msk [vmem:[#allocation3 + $0x5] ss:$8 sm:$0x3] %vm6292_vm0, %v2611_v34  ;;  %v2644_v24 = vrot.slane %v2637_v44, %v6448_v46  ;;  %v2673_v31 = vmul.f32 %v2666_v20, %v2659_v28  ;;  %v2674_v32 = vmul.f32 %v2670_v33, %v2660_v30 }
 0x7f4   :  { %v2388_v7 = vpop.f32.mrf.mxu1 }
 0x7f5   :  { %v2651_v38 = vrot.slane %v2644_v24, %v6448_v46  ;;  %v2677_v25 = vcombine.low %v2673_v31, %v2674_v32 }
 0x7f6   :  { %v2390_v9 = vpop.f32.mrf.mxu1 }
 0x7f7   :  { %2653 = vst.msk [vmem:[#allocation3 + $0x6] ss:$8 sm:$0x3] %vm6292_vm0, %v2651_v38  ;;  %v2684_v39 = vrot.slane %v2677_v25, %v6448_v46 }
 0x7f8   :  { %v2394_v12 = vpop.f32.mrf.mxu1 }
 0x7f9   :  { %v2691_v26 = vrot.slane %v2684_v39, %v6448_v46 }
 0x7fa   :  { %v2396_v17 = vpop.f32.mrf.mxu1 }
 0x7fb   :  { %2693 = vst.msk [vmem:[#allocation3 + $0x7] ss:$8 sm:$0x3] %vm6292_vm0, %v2691_v26 }
 0x7fe   :  { %v2296_v13 = vpop.permute.xlu0 %2295  ;;  %v2291_v15 = vpop.permute.xlu1 %2290 }
 0x7ff   :  { %v2395_v19 = vadd.f32 %v2394_v12, %v2296_v13  ;;  %v2391_v22 = vadd.f32 %v2390_v9, %v2291_v15  ;;  %v2397_v27 = vadd.f32 %v2396_v17, %v2296_v13  ;;  %v2389_v33 = vadd.f32 %v2388_v7, %v2291_v15  ;;  %v6038_v17 = vld [vmem:[%s8274_s1 + $0x4] ss:$8 sm:$0x3] }
 0x802   :  { %v2739_v40 = vld [vmem:[#allocation3] sm:$0xff]  ;;  %v2740_v45 = vld [vmem:[#allocation3 + $0x8] sm:$0xff]  ;;  %v2286_v20 = vpop.permute.xlu0 %2285  ;;  %v2281_v34 = vpop.permute.xlu1 %2280 }
 0x803   :  { %2785 = vmatprep.subr.mxu0 %v2740_v45  ;;  %v2385_v37 = vadd.f32 %v2384_v6, %v2286_v20  ;;  %v2383_v24 = vadd.f32 %v2382_v0, %v2286_v20  ;;  %v2379_v32 = vadd.f32 %v2378_v63, %v2281_v34  ;;  %v2377_v39 = vadd.f32 %v2376_v62, %v2281_v34 }
 0x804   :  { %2786 = vmatpush1.msra.mxu0 %v2739_v40 }
 0x805   :  { %6010 = vmatmul.mubr.msk.f32.vlgmr.msra.gmra.mxu0 %vm558_vm10, %v7010_v48  ;;  %v6030_v48 = vld [vmem:[%s8275_s0 + $0x1d8] sm:$0xff] }
 0x806   :  { %2825 = vmatprep.mubr.f32.mxu0 %v6234_v1  ;;  %3058 = vmatprep.subr.mxu0 %v6030_v48 }
 0x809   :  { %6011 = vmatmul.mubr.msk.f32.gmra.mxu0 %vm558_vm10, %v7018_v49  ;;  %v6029_v49 = vld [vmem:[%s8275_s0 + $0x1d0] sm:$0xff] }
 0x80a   :  { %2831 = vmatprep.mubr.f32.mxu0 %v6234_v1  ;;  %3059 = vmatpush1.msra.mxu0 %v6029_v49 }
 0x80b   :  { %3060 = vmatprep.subr.mxu0 %v6028_v47 }
 0x80d   :  { %6012 = vmatmul.mubr.msk.f32.gmra.mxu0 %vm558_vm10, %v7026_v50  ;;  %v6027_v50 = vld [vmem:[%s8275_s0 + $0x1c0] sm:$0xff] }
 0x80e   :  { %2837 = vmatprep.mubr.f32.mxu0 %v6234_v1  ;;  %3061 = vmatpush1.msra.mxu0 %v6027_v50 }
 0x811   :  { %6013 = vmatmul.mubr.msk.f32.gmra.mxu0 %vm558_vm10, %v7034_v51  ;;  %v6026_v51 = vld [vmem:[%s8275_s0 + $0x1b8] sm:$0xff] }
 0x812   :  { %3102 = vmatprep.mubr.f32.mxu0 %v6234_v1  ;;  %3062 = vmatprep.subr.mxu0 %v6026_v51 }
 0x813   :  { %3063 = vmatpush1.msra.mxu0 %v6025_v52 }
 0x814   :  { %3064 = vmatprep.subr.mxu0 %v6024_v54 }
 0x815   :  { %3065 = vmatpush1.msra.mxu0 %v6023_v55  ;;  %v6020_v55 = vld [vmem:[%s8275_s0 + $0x188] sm:$0xff] }
 0x816   :  { %3066 = vmatprep.subr.mxu0 %v6022_v23  ;;  %v6019_v23 = vld [vmem:[%s8275_s0 + $0x180] sm:$0xff] }
 0x817   :  { %3067 = vmatpush1.msra.mxu0 %v6021_v61 }
 0x818   :  { %3068 = vmatprep.subr.mxu0 %v6020_v55 }
 0x819   :  { %3069 = vmatpush1.msra.mxu0 %v6019_v23 }
 0x81a   :  { %6031 = vmatmul.mubr.msk.f32.vlgmr.msra.gmra.mxu0 %vm82_vm1, %v7086_v57 }
 0x81b   :  { %3108 = vmatprep.mubr.f32.mxu0 %v6234_v1 }
 0x81e   :  { %6032 = vmatmul.mubr.msk.f32.gmra.mxu0 %vm82_vm1, %v7094_v58 }
 0x81f   :  { %3114 = vmatprep.mubr.f32.mxu0 %v6234_v1 }
 0x822   :  { %6033 = vmatmul.mubr.msk.f32.gmra.mxu0 %vm82_vm1, %v7102_v59 }
 0x823   :  { %3120 = vmatprep.mubr.f32.mxu0 %v6234_v1 }
 0x826   :  { %6034 = vmatmul.mubr.msk.f32.gmra.mxu0 %vm82_vm1, %v7110_v60 }
 0x827   :  { %3662 = vmatprep.mubr.f32.mxu0 %v6234_v1 }
 0x8c5   :  { %v2821_v8 = vpop.f32.mrf.mxu0 }
 0x8c6   :  { %v2844_v49 = vadd.f32 %v2821_v8, %v2377_v39 }
 0x8c7   :  { %v2823_v10 = vpop.f32.mrf.mxu0 }
 0x8c8   :  { %v2845_v45 = vadd.f32 %v2823_v10, %v2379_v32  ;;  %v2852_v54 = vmax.f32 %v2844_v49, 0.0 }
 0x8c9   :  { %v2827_v11 = vpop.f32.mrf.mxu0 }
 0x8ca   :  { %v2846_v26 = vadd.f32 %v2827_v11, %v2383_v24  ;;  %v2853_v52 = vmax.f32 %v2845_v45, 0.0 }
 0x8cb   :  { %v2829_v14 = vpop.f32.mrf.mxu0 }
 0x8cc   :  { %v2847_v38 = vadd.f32 %v2829_v14, %v2385_v37  ;;  %v2854_v51 = vmax.f32 %v2846_v26, 0.0 }
 0x8cd   :  { %v2833_v16 = vpop.f32.mrf.mxu0 }
 0x8ce   :  { %v2848_v31 = vadd.f32 %v2833_v16, %v2389_v33  ;;  %v2855_v50 = vmax.f32 %v2847_v38, 0.0 }
 0x8cf   :  { %v2835_v18 = vpop.f32.mrf.mxu0 }
 0x8d0   :  { %v2849_v28 = vadd.f32 %v2835_v18, %v2391_v22  ;;  %v2856_v47 = vmax.f32 %v2848_v31, 0.0  ;;  %v6042_v22 = vld [vmem:[%s8274_s1 + $0x10] ss:$8 sm:$0x3] }
 0x8d1   :  { %v2839_v21 = vpop.f32.mrf.mxu0  ;;  %v3438_v33 = vrot.slane %v6042_v22, %v6306_v5 }
 0x8d2   :  { %v2850_v44 = vadd.f32 %v2839_v21, %v2395_v19  ;;  %v2857_v48 = vmax.f32 %v2849_v28, 0.0  ;;  %v6035_v28 = vld [vmem:[%s8274_s1 + $0x1] ss:$8 sm:$0x3] }
 0x8d3   :  { %v2841_v29 = vpop.f32.mrf.mxu0  ;;  %v3194_v45 = vrot.slane %v6035_v28, %v6306_v5 }
 0x8d4   :  { %v2851_v30 = vadd.f32 %v2841_v29, %v2397_v27  ;;  %v2858_v40 = vmax.f32 %v2850_v44, 0.0  ;;  %v3434_v27 = vrot.slane %v6042_v22, %v6303_v4 }
 0x8d6   :  { %v2859_v25 = vmax.f32 %v2851_v30, 0.0 }
 0x8d8   :  { %2894 = vmatprep.subr.mxu1 %v2859_v25  ;;  %v3190_v25 = vrot.slane %v6035_v28, %v6303_v4 }
 0x8d9   :  { %2895 = vmatpush1.msra.mxu1 %v2858_v40 }
 0x8da   :  { %2896 = vmatprep.subr.mxu1 %v2857_v48  ;;  %v6036_v48 = vld [vmem:[%s8274_s1 + $0x2] ss:$8 sm:$0x3] }
 0x8db   :  { %2897 = vmatpush1.msra.mxu1 %v2856_v47  ;;  %v3230_v55 = vrot.slane %v6036_v48, %v6303_v4 }
 0x8dc   :  { %2898 = vmatprep.subr.mxu1 %v2855_v50 }
 0x8dd   :  { %2899 = vmatpush1.msra.mxu1 %v2854_v51 }
 0x8de   :  { %2900 = vmatprep.subr.mxu1 %v2853_v52 }
 0x8df   :  { %2901 = vmatpush1.msra.mxu1 %v2852_v54 }
 0x8e0   :  { %6014 = vmatmul.mubr.msk.f32.vlgmr.msra.gmra.mxu1 %vm683_vm11, %v7072_v53  ;;  %v2865_v53 = vpop.permute.xlu0 %2864 }
 0x8e1   :  { %3547 = vmatprep.mubr.f32.mxu1 %v6234_v1 }
 0x9a0   :  { %v2936_v61 = vpop.f32.mrf.mxu1 }
 0x9a1   :  { %v2937_v57 = vadd.f32 %v2936_v61, %v2865_v53 }
 0x9a2   :  { %v2938_v62 = vpop.f32.mrf.mxu1 }
 0x9a3   :  { %v6015_v63 = vmul.f32 -1.442695, %v2937_v57  ;;  %v2939_v0 = vadd.f32 %v2938_v62, %v2865_v53  ;;  %v6037_v62 = vld [vmem:[%s8274_s1 + $0x3] ss:$8 sm:$0x3] }
 0x9a5   :  { %6188 = vpow2.f32 %v6015_v63  ;;  %v6016_v58 = vmul.f32 -1.442695, %v2939_v0 }
 0x9a7   :  { %6190 = vpow2.f32 %v6016_v58 }
 0x9b2   :  { %v6189_v6 = vpop.eup %6188 }
 0x9b3   :  { %v2947_v7 = vadd.f32 1.0, %v6189_v6 }
 0x9b4   :  { %v6191_v8 = vpop.eup %6190 }
 0x9b5   :  { %6192 = vrcp.f32 %v2947_v7  ;;  %v2948_v59 = vadd.f32 1.0, %v6191_v8 }
 0x9b7   :  { %6194 = vrcp.f32 %v2948_v59  ;;  %v3270_v59 = vrot.slane %v6037_v62, %v6303_v4 }
 0x9c2   :  { %v6193_v9 = vpop.eup %6192 }
 0x9c3   :  { %v2956_v60 = vrot.slane %v6193_v9, %v6303_v4 }
 0x9c4   :  { %v6195_v10 = vpop.eup %6194 }
 0x9c5   :  { %v2961_v11 = vsel %vm41_vm12, %v2956_v60, %v2937_v57  ;;  %v2960_v12 = vrot.slane %v6195_v10, %v6303_v4  ;;  %v2968_v13 = vcombine.low %v6193_v9, %v6195_v10  ;;  %v3234_v57 = vrot.slane %v6036_v48, %v6306_v5 }
 0x9c6   :  { %6017 = vst [vmem:[%s8281_s7 + $0x30] sm:$0xff] %v2961_v11  ;;  %v3274_v11 = vrot.slane %v6037_v62, %v6306_v5 }
 0x9c7   :  { %v2962_v14 = vsel %vm41_vm12, %v2960_v12, %v2939_v0  ;;  %v2975_v15 = vrot.slane %v2968_v13, %v6448_v46  ;;  %v6039_v12 = vld [vmem:[%s8274_s1 + $0x5] ss:$8 sm:$0x3] }
 0x9c8   :  { %6018 = vst [vmem:[%s8281_s7 + $0x38] sm:$0xff] %v2962_v14 }
 0x9c9   :  { %v2982_v16 = vrot.slane %v2975_v15, %v6448_v46 }
 0x9cb   :  { %2984 = vst.msk [vmem:[#allocation2] sm:$0x3] %vm6292_vm0, %v2982_v16 }
 0x9d2   :  { %v3127_v18 = vld [vmem:[#allocation2] sm:$0x3] }
 0x9d3   :  { %v3136_v19 = vrot.slane %v3127_v18, %v6306_v5  ;;  %v3300_v20 = vmul.f32 %v6038_v17, %v3127_v18  ;;  %v3132_v21 = vrot.slane %v3127_v18, %v6303_v4 }
 0x9d5   :  { %3301 = vst.msk [vmem:[#allocation3 + $0x4] ss:$8 sm:$0x3] %vm6292_vm0, %v3300_v20  ;;  %3425 = vrot.lane.b32.xlu0 %v3136_v19, %s6236_s25  ;;  %3423 = vrot.lane.b32.xlu1 %v3132_v21, %s6236_s25 }
 0x9d9   :  { %3141 = vrot.lane.b32.xlu0 %v3136_v19, %s6235_s24  ;;  %3139 = vrot.lane.b32.xlu1 %v3132_v21, %s6235_s24 }
 0x9dd   :  { %3181 = vrot.lane.b32.xlu0 %v3136_v19, %s6237_s28  ;;  %3179 = vrot.lane.b32.xlu1 %v3132_v21, %s6237_s28 }
 0x9e1   :  { %3221 = vrot.lane.b32.xlu0 %v3136_v19, %s6238_s29  ;;  %3219 = vrot.lane.b32.xlu1 %v3132_v21, %s6238_s29 }
 0x9e5   :  { %3261 = vrot.lane.b32.xlu0 %v3136_v19, %s6239_s30  ;;  %3259 = vrot.lane.b32.xlu1 %v3132_v21, %s6239_s30 }
 0x9e9   :  { %3305 = vrot.lane.b32.xlu0 %v3136_v19, %s6240_s14  ;;  %3303 = vrot.lane.b32.xlu1 %v3132_v21, %s6240_s14 }
 0x9ed   :  { %3345 = vrot.lane.b32.xlu0 %v3136_v19, %s6241_s23  ;;  %3343 = vrot.lane.b32.xlu1 %v3132_v21, %s6241_s23 }
 0x9f1   :  { %3385 = vrot.lane.b32.xlu0 %v3136_v19, %s6242_s12  ;;  %3383 = vrot.lane.b32.xlu1 %v3132_v21, %s6242_s12  ;;  %v3314_v21 = vrot.slane %v6039_v12, %v6303_v4 }
 0x9f5   :  { %3018 = vperm.xlu0 %6162, %v7157_v41   ;;  %3023 = vperm.xlu1 %6163, %v7162_v42   ;;  %v3145_v41 = vld [vmem:[%s8274_s1] ss:$8 sm:$0x3] }
 0x9f6   :  { %v3150_v29 = vrot.slane %v3145_v41, %v6303_v4  ;;  %v3154_v37 = vrot.slane %v3145_v41, %v6306_v5  ;;  %v3318_v41 = vrot.slane %v6039_v12, %v6306_v5  ;;  %v6063_v12 = vld [vmem:[%s8275_s0 + $0x238] sm:$0xff] }
 0x9f9   :  { %3008 = vperm.xlu0 %6162, %v7169_v36   ;;  %3013 = vperm.xlu1 %6163, %v7174_v43  }
 0x9fd   :  { %3592 = vperm.xlu1 %6163, %v7181_v56  }
 0xa47   :  { %v3426_v34 = vpop.permute.xlu0 %3425  ;;  %v3424_v42 = vpop.permute.xlu1 %3423 }
 0xa48   :  { %v3427_v36 = vsel %vm511_vm3, %v3424_v42, %v3426_v34  ;;  %v3428_v43 = vsel %vm511_vm3, %v3426_v34, %v3424_v42  ;;  %v6040_v34 = vld [vmem:[%s8274_s1 + $0x6] ss:$8 sm:$0x3] }
 0xa49   :  { %v3441_v56 = vmul.f32 %v3434_v27, %v3427_v36  ;;  %v3442_v44 = vmul.f32 %v3438_v33, %v3428_v43 }
 0xa4b   :  { %v3445_v30 = vcombine.low %v3441_v56, %v3442_v44  ;;  %v3142_v24 = vpop.permute.xlu0 %3141  ;;  %v3140_v31 = vpop.permute.xlu1 %3139 }
 0xa4c   :  { %v3143_v32 = vsel %vm202_vm2, %v3140_v31, %v3142_v24  ;;  %v3144_v38 = vsel %vm202_vm2, %v3142_v24, %v3140_v31  ;;  %v3358_v31 = vrot.slane %v6040_v34, %v6306_v5 }
 0xa4d   :  { %v3452_v39 = vrot.slane %v3445_v30, %v6448_v46  ;;  %v3157_v26 = vmul.f32 %v3150_v29, %v3144_v38  ;;  %v3158_v40 = vmul.f32 %v3154_v37, %v3143_v32  ;;  %v3354_v37 = vrot.slane %v6040_v34, %v6303_v4  ;;  %v6041_v32 = vld [vmem:[%s8274_s1 + $0x7] ss:$8 sm:$0x3] }
 0xa4e   :  { %v3394_v48 = vrot.slane %v6041_v32, %v6303_v4 }
 0xa4f   :  { %v3459_v49 = vrot.slane %v3452_v39, %v6448_v46  ;;  %v3161_v47 = vcombine.low %v3157_v26, %v3158_v40  ;;  %v3182_v50 = vpop.permute.xlu0 %3181  ;;  %v3180_v51 = vpop.permute.xlu1 %3179 }
 0xa50   :  { %v3183_v52 = vsel %vm247_vm4, %v3180_v51, %v3182_v50  ;;  %v3184_v54 = vsel %vm247_vm4, %v3182_v50, %v3180_v51  ;;  %v3398_v51 = vrot.slane %v6041_v32, %v6306_v5 }
 0xa51   :  { %3461 = vst.msk [vmem:[#allocation3 + $0x10] ss:$8 sm:$0x3] %vm6292_vm0, %v3459_v49  ;;  %v3168_v23 = vrot.slane %v3161_v47, %v6448_v46  ;;  %v3197_v53 = vmul.f32 %v3190_v25, %v3184_v54  ;;  %v3198_v61 = vmul.f32 %v3194_v45, %v3183_v52 }
 0xa53   :  { %v3175_v63 = vrot.slane %v3168_v23, %v6448_v46  ;;  %v3201_v0 = vcombine.low %v3197_v53, %v3198_v61  ;;  %v3222_v58 = vpop.permute.xlu0 %3221  ;;  %v3220_v6 = vpop.permute.xlu1 %3219 }
 0xa54   :  { %v3223_v7 = vsel %vm290_vm5, %v3220_v6, %v3222_v58  ;;  %v3224_v8 = vsel %vm290_vm5, %v3222_v58, %v3220_v6 }
 0xa55   :  { %3177 = vst.msk [vmem:[#allocation3] ss:$8 sm:$0x3] %vm6292_vm0, %v3175_v63  ;;  %v3208_v9 = vrot.slane %v3201_v0, %v6448_v46  ;;  %v3237_v60 = vmul.f32 %v3230_v55, %v3224_v8  ;;  %v3238_v10 = vmul.f32 %v3234_v57, %v3223_v7 }
 0xa57   :  { %v3215_v13 = vrot.slane %v3208_v9, %v6448_v46  ;;  %v3241_v14 = vcombine.low %v3237_v60, %v3238_v10  ;;  %v3262_v15 = vpop.permute.xlu0 %3261  ;;  %v3260_v16 = vpop.permute.xlu1 %3259  ;;  %v7502_v9 = vld [vmem:[%s8279_s4] sm:$0xff]  ;;  %v7510_v60 = vld [vmem:[%s8279_s4 + $0x8] sm:$0xff]  ;;  %v7518_v10 = vld [vmem:[%s8279_s4 + $0x10] sm:$0xff] }
 0xa58   :  { %v3263_v17 = vsel %vm333_vm6, %v3260_v16, %v3262_v15  ;;  %v3264_v18 = vsel %vm333_vm6, %v3262_v15, %v3260_v16  ;;  %v3470_v19 = vld [vmem:[#allocation3 + $0x18] sm:$0xff]  ;;  %v3469_v20 = vld [vmem:[#allocation3 + $0x10] sm:$0xff] }
 0xa59   :  { %3217 = vst.msk [vmem:[#allocation3 + $0x1] ss:$8 sm:$0x3] %vm6292_vm0, %v3215_v13  ;;  %v3248_v22 = vrot.slane %v3241_v14, %v6448_v46  ;;  %v3277_v27 = vmul.f32 %v3270_v59, %v3264_v18  ;;  %v3278_v33 = vmul.f32 %v3274_v11, %v3263_v17  ;;  %3511 = vmatprep.subr.mxu1 %v3470_v19  ;;  %v7526_v11 = vld [vmem:[%s8279_s4 + $0x18] sm:$0xff]  ;;  %v6062_v13 = vld [vmem:[%s8275_s0 + $0x230] sm:$0xff]  ;;  %v6061_v14 = vld [vmem:[%s8275_s0 + $0x228] sm:$0xff] }
 0xa5a   :  { %3512 = vmatpush1.msra.mxu1 %v3469_v20  ;;  %v6060_v15 = vld [vmem:[%s8275_s0 + $0x220] sm:$0xff]  ;;  %v6059_v16 = vld [vmem:[%s8275_s0 + $0x218] sm:$0xff]  ;;  %v6058_v17 = vld [vmem:[%s8275_s0 + $0x210] sm:$0xff] }
 0xa5b   :  { %v3255_v42 = vrot.slane %v3248_v22, %v6448_v46  ;;  %v3281_v36 = vcombine.low %v3277_v27, %v3278_v33  ;;  %v3306_v43 = vpop.permute.xlu0 %3305  ;;  %v3304_v56 = vpop.permute.xlu1 %3303  ;;  %v6057_v18 = vld [vmem:[%s8275_s0 + $0x208] sm:$0xff]  ;;  %v6056_v19 = vld [vmem:[%s8275_s0 + $0x200] sm:$0xff]  ;;  %v6055_v20 = vld [vmem:[%s8275_s0 + $0x1f8] sm:$0xff] }
 0xa5c   :  { %v3307_v44 = vsel %vm382_vm7, %v3304_v56, %v3306_v43  ;;  %v3308_v29 = vsel %vm382_vm7, %v3306_v43, %v3304_v56  ;;  %v3104_v22 = vpop.f32.mrf.mxu0 }
 0xa5d   :  { %3257 = vst.msk [vmem:[#allocation3 + $0x2] ss:$8 sm:$0x3] %vm6292_vm0, %v3255_v42  ;;  %v3288_v28 = vrot.slane %v3281_v36, %v6448_v46  ;;  %v3321_v30 = vmul.f32 %v3314_v21, %v3307_v44  ;;  %v3322_v24 = vmul.f32 %v3318_v41, %v3308_v29  ;;  %v6054_v21 = vld [vmem:[%s8275_s0 + $0x1f0] sm:$0xff] }
 0xa5e   :  { %v3106_v27 = vpop.f32.mrf.mxu0 }
 0xa5f   :  { %v3295_v38 = vrot.slane %v3288_v28, %v6448_v46  ;;  %v3325_v25 = vcombine.low %v3321_v30, %v3322_v24  ;;  %v3346_v39 = vpop.permute.xlu0 %3345  ;;  %v3344_v26 = vpop.permute.xlu1 %3343 }
 0xa60   :  { %v3347_v40 = vsel %vm425_vm8, %v3344_v26, %v3346_v39  ;;  %v3348_v45 = vsel %vm425_vm8, %v3346_v39, %v3344_v26  ;;  %v3110_v33 = vpop.f32.mrf.mxu0 }
 0xa61   :  { %3297 = vst.msk [vmem:[#allocation3 + $0x3] ss:$8 sm:$0x3] %vm6292_vm0, %v3295_v38  ;;  %v3332_v49 = vrot.slane %v3325_v25, %v6448_v46  ;;  %v3361_v47 = vmul.f32 %v3354_v37, %v3347_v40  ;;  %v3362_v50 = vmul.f32 %v3358_v31, %v3348_v45 }
 0xa62   :  { %v3112_v41 = vpop.f32.mrf.mxu0 }
 0xa63   :  { %v3339_v52 = vrot.slane %v3332_v49, %v6448_v46  ;;  %v3365_v54 = vcombine.low %v3361_v47, %v3362_v50  ;;  %v3386_v55 = vpop.permute.xlu0 %3385  ;;  %v3384_v23 = vpop.permute.xlu1 %3383 }
 0xa64   :  { %v3387_v53 = vsel %vm468_vm9, %v3384_v23, %v3386_v55  ;;  %v3388_v61 = vsel %vm468_vm9, %v3386_v55, %v3384_v23  ;;  %v3116_v34 = vpop.f32.mrf.mxu0 }
 0xa65   :  { %3341 = vst.msk [vmem:[#allocation3 + $0x5] ss:$8 sm:$0x3] %vm6292_vm0, %v3339_v52  ;;  %v3372_v57 = vrot.slane %v3365_v54, %v6448_v46  ;;  %v3401_v62 = vmul.f32 %v3394_v48, %v3387_v53  ;;  %v3402_v63 = vmul.f32 %v3398_v51, %v3388_v61 }
 0xa66   :  { %v3118_v36 = vpop.f32.mrf.mxu0 }
 0xa67   :  { %v3379_v0 = vrot.slane %v3372_v57, %v6448_v46  ;;  %v3405_v58 = vcombine.low %v3401_v62, %v3402_v63 }
 0xa68   :  { %v3122_v44 = vpop.f32.mrf.mxu0 }
 0xa69   :  { %3381 = vst.msk [vmem:[#allocation3 + $0x6] ss:$8 sm:$0x3] %vm6292_vm0, %v3379_v0  ;;  %v3412_v6 = vrot.slane %v3405_v58, %v6448_v46 }
 0xa6a   :  { %v3124_v24 = vpop.f32.mrf.mxu0 }
 0xa6b   :  { %v3419_v7 = vrot.slane %v3412_v6, %v6448_v46 }
 0xa6d   :  { %3421 = vst.msk [vmem:[#allocation3 + $0x7] ss:$8 sm:$0x3] %vm6292_vm0, %v3419_v7 }
 0xa70   :  { %v3024_v29 = vpop.permute.xlu1 %3023  ;;  %v3019_v28 = vpop.permute.xlu0 %3018 }
 0xa71   :  { %v3123_v32 = vadd.f32 %v3122_v44, %v3024_v29  ;;  %v3119_v39 = vadd.f32 %v3118_v36, %v3019_v28  ;;  %v3125_v26 = vadd.f32 %v3124_v24, %v3024_v29  ;;  %v3117_v40 = vadd.f32 %v3116_v34, %v3019_v28 }
 0xa74   :  { %v3467_v8 = vld [vmem:[#allocation3] sm:$0xff]  ;;  %v3468_v59 = vld [vmem:[#allocation3 + $0x8] sm:$0xff]  ;;  %v3014_v38 = vpop.permute.xlu1 %3013  ;;  %v3009_v45 = vpop.permute.xlu0 %3008 }
 0xa75   :  { %3513 = vmatprep.subr.mxu1 %v3468_v59  ;;  %v3113_v47 = vadd.f32 %v3112_v41, %v3014_v38  ;;  %v3111_v52 = vadd.f32 %v3110_v33, %v3014_v38  ;;  %v3107_v55 = vadd.f32 %v3106_v27, %v3009_v45  ;;  %v3105_v61 = vadd.f32 %v3104_v22, %v3009_v45 }
 0xa76   :  { %3514 = vmatpush1.msra.mxu1 %v3467_v8 }
 0xa77   :  { %6043 = vmatmul.mubr.msk.f32.vlgmr.msra.gmra.mxu1 %vm558_vm10, %v7502_v9  ;;  %3786 = vmatprep.subr.mxu1 %v6063_v12 }
 0xa78   :  { %3553 = vmatprep.mubr.f32.mxu1 %v6234_v1  ;;  %3787 = vmatpush1.msra.mxu1 %v6062_v13  ;;  %v7564_v13 = vld [vmem:[%s8280_s5] sm:$0xff] }
 0xa79   :  { %3788 = vmatprep.subr.mxu1 %v6061_v14  ;;  %v6053_v14 = vld [vmem:[%s8275_s0 + $0x1e8] sm:$0xff] }
 0xa7a   :  { %3789 = vmatpush1.msra.mxu1 %v6060_v15  ;;  %v6052_v15 = vld [vmem:[%s8275_s0 + $0x1e0] sm:$0xff] }
 0xa7b   :  { %6044 = vmatmul.mubr.msk.f32.gmra.mxu1 %vm558_vm10, %v7510_v60  ;;  %3790 = vmatprep.subr.mxu1 %v6059_v16  ;;  %v7578_v16 = vld [vmem:[%s8276_s2] sm:$0xff] }
 0xa7c   :  { %3559 = vmatprep.mubr.f32.mxu1 %v6234_v1  ;;  %3791 = vmatpush1.msra.mxu1 %v6058_v17  ;;  %v7586_v17 = vld [vmem:[%s8276_s2 + $0x8] sm:$0xff] }
 0xa7d   :  { %3792 = vmatprep.subr.mxu1 %v6057_v18  ;;  %v7594_v18 = vld [vmem:[%s8276_s2 + $0x10] sm:$0xff] }
 0xa7e   :  { %3793 = vmatpush1.msra.mxu1 %v6056_v19  ;;  %v7602_v19 = vld [vmem:[%s8276_s2 + $0x18] sm:$0xff] }
 0xa7f   :  { %6045 = vmatmul.mubr.msk.f32.gmra.mxu1 %vm558_vm10, %v7518_v10  ;;  %3794 = vmatprep.subr.mxu1 %v6055_v20  ;;  %v3593_v20 = vpop.permute.xlu1 %3592 }
 0xa80   :  { %3565 = vmatprep.mubr.f32.mxu1 %v6234_v1  ;;  %3795 = vmatpush1.msra.mxu1 %v6054_v21 }
 0xa81   :  { %3796 = vmatprep.subr.mxu1 %v6053_v14 }
 0xa82   :  { %3797 = vmatpush1.msra.mxu1 %v6052_v15 }
 0xa83   :  { %6046 = vmatmul.mubr.msk.f32.gmra.mxu1 %vm558_vm10, %v7526_v11 }
 0xa84   :  { %3830 = vmatprep.mubr.f32.mxu1 %v6234_v1 }
 0xa87   :  { %6064 = vmatmul.mubr.msk.f32.vlgmr.msra.gmra.mxu1 %vm82_vm1, %v7578_v16 }
 0xa88   :  { %3836 = vmatprep.mubr.f32.mxu1 %v6234_v1 }
 0xa8b   :  { %6065 = vmatmul.mubr.msk.f32.gmra.mxu1 %vm82_vm1, %v7586_v17 }
 0xa8c   :  { %3842 = vmatprep.mubr.f32.mxu1 %v6234_v1 }
 0xa8f   :  { %6066 = vmatmul.mubr.msk.f32.gmra.mxu1 %vm82_vm1, %v7594_v18 }
 0xa90   :  { %3848 = vmatprep.mubr.f32.mxu1 %v6234_v1 }
 0xa93   :  { %6067 = vmatmul.mubr.msk.f32.gmra.mxu1 %vm82_vm1, %v7602_v19 }
 0xa94   :  { %4390 = vmatprep.mubr.f32.mxu1 %v6234_v1 }
 0xb37   :  { %v3549_v42 = vpop.f32.mrf.mxu1 }
 0xb38   :  { %v3572_v58 = vadd.f32 %v3549_v42, %v3105_v61 }
 0xb39   :  { %v3551_v43 = vpop.f32.mrf.mxu1 }
 0xb3a   :  { %v3573_v63 = vadd.f32 %v3551_v43, %v3107_v55  ;;  %v3580_v12 = vmax.f32 %v3572_v58, 0.0 }
 0xb3b   :  { %v3555_v56 = vpop.f32.mrf.mxu1 }
 0xb3c   :  { %v3574_v57 = vadd.f32 %v3555_v56, %v3111_v52  ;;  %v3581_v59 = vmax.f32 %v3573_v63, 0.0  ;;  %v6075_v52 = vld [vmem:[%s8274_s1 + $0x10] ss:$8 sm:$0x3] }
 0xb3d   :  { %v3557_v37 = vpop.f32.mrf.mxu1  ;;  %v4166_v55 = vrot.slane %v6075_v52, %v6306_v5 }
 0xb3e   :  { %v3575_v23 = vadd.f32 %v3557_v37, %v3113_v47  ;;  %v3582_v8 = vmax.f32 %v3574_v57, 0.0  ;;  %v7661_v47 = vld [vmem:[%s8277_s3] sm:$0xff] }
 0xb3f   :  { %v3561_v30 = vpop.f32.mrf.mxu1 }
 0xb40   :  { %v3576_v54 = vadd.f32 %v3561_v30, %v3117_v40  ;;  %v3583_v7 = vmax.f32 %v3575_v23, 0.0  ;;  %v3873_v23 = vld [vmem:[%s8274_s1] ss:$8 sm:$0x3] }
 0xb41   :  { %v3563_v31 = vpop.f32.mrf.mxu1  ;;  %v3878_v58 = vrot.slane %v3873_v23, %v6303_v4 }
 0xb42   :  { %v3577_v50 = vadd.f32 %v3563_v31, %v3119_v39  ;;  %v3584_v6 = vmax.f32 %v3576_v54, 0.0  ;;  %v4162_v54 = vrot.slane %v6075_v52, %v6303_v4 }
 0xb43   :  { %v3567_v25 = vpop.f32.mrf.mxu1 }
 0xb44   :  { %v3578_v48 = vadd.f32 %v3567_v25, %v3123_v32  ;;  %v3585_v0 = vmax.f32 %v3577_v50, 0.0  ;;  %v6071_v25 = vld [vmem:[%s8274_s1 + $0x4] ss:$8 sm:$0x3] }
 0xb45   :  { %v3569_v49 = vpop.f32.mrf.mxu1  ;;  %v7666_v50 = vld [vmem:[%s8277_s3 + $0x8] sm:$0xff] }
 0xb46   :  { %v3579_v51 = vadd.f32 %v3569_v49, %v3125_v26  ;;  %v3586_v62 = vmax.f32 %v3578_v48, 0.0  ;;  %v7649_v48 = vld [vmem:[%s8277_s3 + $0x10] sm:$0xff]  ;;  %v7654_v49 = vld [vmem:[%s8277_s3 + $0x18] sm:$0xff] }
 0xb48   :  { %v3587_v53 = vmax.f32 %v3579_v51, 0.0  ;;  %v7673_v51 = vld [vmem:[%s8278_s6] sm:$0xff] }
 0xb4a   :  { %3622 = vmatprep.subr.mxu0 %v3587_v53 }
 0xb4b   :  { %3623 = vmatpush1.msra.mxu0 %v3586_v62 }
 0xb4c   :  { %3624 = vmatprep.subr.mxu0 %v3585_v0 }
 0xb4d   :  { %3625 = vmatpush1.msra.mxu0 %v3584_v6  ;;  %v3882_v6 = vrot.slane %v3873_v23, %v6306_v5 }
 0xb4e   :  { %3626 = vmatprep.subr.mxu0 %v3583_v7  ;;  %v6068_v7 = vld [vmem:[%s8274_s1 + $0x1] ss:$8 sm:$0x3] }
 0xb4f   :  { %3627 = vmatpush1.msra.mxu0 %v3582_v8 }
 0xb50   :  { %3628 = vmatprep.subr.mxu0 %v3581_v59 }
 0xb51   :  { %3629 = vmatpush1.msra.mxu0 %v3580_v12 }
 0xb52   :  { %6047 = vmatmul.mubr.msk.f32.vlgmr.msra.gmra.mxu0 %vm683_vm11, %v7564_v13 }
 0xb53   :  { %4275 = vmatprep.mubr.f32.mxu0 %v6234_v1 }
 0xc12   :  { %v3664_v21 = vpop.f32.mrf.mxu0 }
 0xc13   :  { %v3665_v22 = vadd.f32 %v3664_v21, %v3593_v20 }
 0xc14   :  { %v3666_v27 = vpop.f32.mrf.mxu0 }
 0xc15   :  { %v6048_v33 = vmul.f32 -1.442695, %v3665_v22  ;;  %v3667_v41 = vadd.f32 %v3666_v27, %v3593_v20  ;;  %v3918_v20 = vrot.slane %v6068_v7, %v6303_v4 }
 0xc17   :  { %6196 = vpow2.f32 %v6048_v33  ;;  %v6049_v34 = vmul.f32 -1.442695, %v3667_v41  ;;  %v3922_v33 = vrot.slane %v6068_v7, %v6306_v5 }
 0xc19   :  { %6198 = vpow2.f32 %v6049_v34 }
 0xc24   :  { %v6197_v42 = vpop.eup %6196 }
 0xc25   :  { %v3675_v36 = vadd.f32 1.0, %v6197_v42 }
 0xc26   :  { %v6199_v43 = vpop.eup %6198 }
 0xc27   :  { %6200 = vrcp.f32 %v3675_v36  ;;  %v3676_v56 = vadd.f32 1.0, %v6199_v43 }
 0xc29   :  { %6202 = vrcp.f32 %v3676_v56 }
 0xc34   :  { %v6201_v44 = vpop.eup %6200 }
 0xc35   :  { %v3684_v29 = vrot.slane %v6201_v44, %v6303_v4 }
 0xc36   :  { %v6203_v37 = vpop.eup %6202 }
 0xc37   :  { %v3689_v28 = vsel %vm41_vm12, %v3684_v29, %v3665_v22  ;;  %v3688_v30 = vrot.slane %v6203_v37, %v6303_v4  ;;  %v3696_v24 = vcombine.low %v6201_v44, %v6203_v37 }
 0xc38   :  { %6050 = vst [vmem:[%s8281_s7 + $0x40] sm:$0xff] %v3689_v28 }
 0xc39   :  { %v3690_v31 = vsel %vm41_vm12, %v3688_v30, %v3667_v41  ;;  %v3703_v32 = vrot.slane %v3696_v24, %v6448_v46  ;;  %v6069_v41 = vld [vmem:[%s8274_s1 + $0x2] ss:$8 sm:$0x3] }
 0xc3a   :  { %6051 = vst [vmem:[%s8281_s7 + $0x48] sm:$0xff] %v3690_v31  ;;  %v3958_v29 = vrot.slane %v6069_v41, %v6303_v4  ;;  %v3962_v24 = vrot.slane %v6069_v41, %v6306_v5  ;;  %v6070_v31 = vld [vmem:[%s8274_s1 + $0x3] ss:$8 sm:$0x3] }
 0xc3b   :  { %v3710_v38 = vrot.slane %v3703_v32, %v6448_v46  ;;  %v4002_v23 = vrot.slane %v6070_v31, %v6306_v5 }
 0xc3d   :  { %3712 = vst.msk [vmem:[#allocation2] sm:$0x3] %vm6292_vm0, %v3710_v38 }
 0xc44   :  { %v3855_v39 = vld [vmem:[#allocation2] sm:$0x3] }
 0xc45   :  { %v3864_v26 = vrot.slane %v3855_v39, %v6306_v5  ;;  %v4028_v40 = vmul.f32 %v6071_v25, %v3855_v39  ;;  %v3860_v45 = vrot.slane %v3855_v39, %v6303_v4 }
 0xc47   :  { %4153 = vrot.lane.b32.xlu1 %v3864_v26, %s6236_s25  ;;  %4029 = vst.msk [vmem:[#allocation3 + $0x4] ss:$8 sm:$0x3] %vm6292_vm0, %v4028_v40  ;;  %4151 = vrot.lane.b32.xlu0 %v3860_v45, %s6236_s25 }
 0xc4b   :  { %3869 = vrot.lane.b32.xlu1 %v3864_v26, %s6235_s24  ;;  %3867 = vrot.lane.b32.xlu0 %v3860_v45, %s6235_s24 }
 0xc4f   :  { %3909 = vrot.lane.b32.xlu1 %v3864_v26, %s6237_s28  ;;  %3907 = vrot.lane.b32.xlu0 %v3860_v45, %s6237_s28 }
 0xc53   :  { %3949 = vrot.lane.b32.xlu1 %v3864_v26, %s6238_s29  ;;  %3947 = vrot.lane.b32.xlu0 %v3860_v45, %s6238_s29 }
 0xc57   :  { %3989 = vrot.lane.b32.xlu1 %v3864_v26, %s6239_s30  ;;  %3987 = vrot.lane.b32.xlu0 %v3860_v45, %s6239_s30 }
 0xc5b   :  { %4033 = vrot.lane.b32.xlu1 %v3864_v26, %s6240_s14  ;;  %4031 = vrot.lane.b32.xlu0 %v3860_v45, %s6240_s14 }
 0xc5f   :  { %4073 = vrot.lane.b32.xlu1 %v3864_v26, %s6241_s23  ;;  %4071 = vrot.lane.b32.xlu0 %v3860_v45, %s6241_s23 }
 0xc63   :  { %4113 = vrot.lane.b32.xlu1 %v3864_v26, %s6242_s12  ;;  %4111 = vrot.lane.b32.xlu0 %v3860_v45, %s6242_s12  ;;  %v3998_v45 = vrot.slane %v6070_v31, %v6303_v4 }
 0xc67   :  { %3746 = vperm.xlu1 %6163, %v7649_v48   ;;  %3751 = vperm.xlu0 %6162, %v7654_v49  }
 0xc6b   :  { %3736 = vperm.xlu1 %6163, %v7661_v47   ;;  %3741 = vperm.xlu0 %6162, %v7666_v50  }
 0xc6f   :  { %4320 = vperm.xlu0 %6162, %v7673_v51  }
 0xcb9   :  { %v4154_v53 = vpop.permute.xlu1 %4153  ;;  %v4152_v61 = vpop.permute.xlu0 %4151 }
 0xcba   :  { %v4155_v57 = vsel %vm511_vm3, %v4152_v61, %v4154_v53  ;;  %v4156_v62 = vsel %vm511_vm3, %v4154_v53, %v4152_v61  ;;  %v6072_v53 = vld [vmem:[%s8274_s1 + $0x5] ss:$8 sm:$0x3] }
 0xcbb   :  { %v4169_v63 = vmul.f32 %v4162_v54, %v4155_v57  ;;  %v4170_v0 = vmul.f32 %v4166_v55, %v4156_v62 }
 0xcbd   :  { %v4173_v8 = vcombine.low %v4169_v63, %v4170_v0  ;;  %v3870_v59 = vpop.permute.xlu1 %3869  ;;  %v3868_v12 = vpop.permute.xlu0 %3867 }
 0xcbe   :  { %v3871_v14 = vsel %vm202_vm2, %v3868_v12, %v3870_v59  ;;  %v3872_v15 = vsel %vm202_vm2, %v3870_v59, %v3868_v12 }
 0xcbf   :  { %v4180_v21 = vrot.slane %v4173_v8, %v6448_v46  ;;  %v3885_v22 = vmul.f32 %v3878_v58, %v3872_v15  ;;  %v3886_v27 = vmul.f32 %v3882_v6, %v3871_v14  ;;  %v4042_v8 = vrot.slane %v6072_v53, %v6303_v4 }
 0xcc0   :  { %v4046_v15 = vrot.slane %v6072_v53, %v6306_v5 }
 0xcc1   :  { %v4187_v34 = vrot.slane %v4180_v21, %v6448_v46  ;;  %v3889_v42 = vcombine.low %v3885_v22, %v3886_v27  ;;  %v3910_v36 = vpop.permute.xlu1 %3909  ;;  %v3908_v43 = vpop.permute.xlu0 %3907 }
 0xcc2   :  { %v3911_v56 = vsel %vm247_vm4, %v3908_v43, %v3910_v36  ;;  %v3912_v44 = vsel %vm247_vm4, %v3910_v36, %v3908_v43 }
 0xcc3   :  { %4189 = vst.msk [vmem:[#allocation3 + $0x10] ss:$8 sm:$0x3] %vm6292_vm0, %v4187_v34  ;;  %v3896_v37 = vrot.slane %v3889_v42, %v6448_v46  ;;  %v3925_v28 = vmul.f32 %v3918_v20, %v3912_v44  ;;  %v3926_v30 = vmul.f32 %v3922_v33, %v3911_v56  ;;  %v6073_v20 = vld [vmem:[%s8274_s1 + $0x6] ss:$8 sm:$0x3] }
 0xcc4   :  { %v4082_v42 = vrot.slane %v6073_v20, %v6303_v4  ;;  %v4086_v44 = vrot.slane %v6073_v20, %v6306_v5  ;;  %v6088_v20 = vld [vmem:[%s8275_s0 + $0x258] sm:$0xff] }
 0xcc5   :  { %v3903_v32 = vrot.slane %v3896_v37, %v6448_v46  ;;  %v3929_v38 = vcombine.low %v3925_v28, %v3926_v30  ;;  %v3950_v25 = vpop.permute.xlu1 %3949  ;;  %v3948_v39 = vpop.permute.xlu0 %3947 }
 0xcc6   :  { %v3951_v26 = vsel %vm290_vm5, %v3948_v39, %v3950_v25  ;;  %v3952_v40 = vsel %vm290_vm5, %v3950_v25, %v3948_v39 }
 0xcc7   :  { %3905 = vst.msk [vmem:[#allocation3] ss:$8 sm:$0x3] %vm6292_vm0, %v3903_v32  ;;  %v3936_v52 = vrot.slane %v3929_v38, %v6448_v46  ;;  %v3965_v54 = vmul.f32 %v3958_v29, %v3952_v40  ;;  %v3966_v55 = vmul.f32 %v3962_v24, %v3951_v26  ;;  %v6074_v29 = vld [vmem:[%s8274_s1 + $0x7] ss:$8 sm:$0x3] }
 0xcc8   :  { %v4122_v38 = vrot.slane %v6074_v29, %v6303_v4  ;;  %v4126_v40 = vrot.slane %v6074_v29, %v6306_v5 }
 0xcc9   :  { %v3943_v61 = vrot.slane %v3936_v52, %v6448_v46  ;;  %v3969_v57 = vcombine.low %v3965_v54, %v3966_v55  ;;  %v3990_v62 = vpop.permute.xlu1 %3989  ;;  %v3988_v63 = vpop.permute.xlu0 %3987 }
 0xcca   :  { %v3991_v0 = vsel %vm333_vm6, %v3988_v63, %v3990_v62  ;;  %v3992_v58 = vsel %vm333_vm6, %v3990_v62, %v3988_v63  ;;  %v4198_v6 = vld [vmem:[#allocation3 + $0x18] sm:$0xff]  ;;  %v4197_v7 = vld [vmem:[#allocation3 + $0x10] sm:$0xff] }
 0xccb   :  { %3945 = vst.msk [vmem:[#allocation3 + $0x1] ss:$8 sm:$0x3] %vm6292_vm0, %v3943_v61  ;;  %v3976_v59 = vrot.slane %v3969_v57, %v6448_v46  ;;  %v4005_v12 = vmul.f32 %v3998_v45, %v3992_v58  ;;  %v4006_v14 = vmul.f32 %v4002_v23, %v3991_v0  ;;  %4239 = vmatprep.subr.mxu0 %v4198_v6 }
 0xccc   :  { %4240 = vmatpush1.msra.mxu0 %v4197_v7 }
 0xccd   :  { %v3983_v21 = vrot.slane %v3976_v59, %v6448_v46  ;;  %v4009_v22 = vcombine.low %v4005_v12, %v4006_v14  ;;  %v4034_v27 = vpop.permute.xlu1 %4033  ;;  %v4032_v33 = vpop.permute.xlu0 %4031  ;;  %v6094_v59 = vld [vmem:[%s8275_s0 + $0x288] sm:$0xff]  ;;  %v6091_v12 = vld [vmem:[%s8275_s0 + $0x270] sm:$0xff] }
 0xcce   :  { %v4035_v41 = vsel %vm382_vm7, %v4032_v33, %v4034_v27  ;;  %v4036_v34 = vsel %vm382_vm7, %v4034_v27, %v4032_v33  ;;  %v6090_v14 = vld [vmem:[%s8275_s0 + $0x268] sm:$0xff] }
 0xccf   :  { %3985 = vst.msk [vmem:[#allocation3 + $0x2] ss:$8 sm:$0x3] %vm6292_vm0, %v3983_v21  ;;  %v4016_v36 = vrot.slane %v4009_v22, %v6448_v46  ;;  %v4049_v43 = vmul.f32 %v4042_v8, %v4035_v41  ;;  %v4050_v56 = vmul.f32 %v4046_v15, %v4036_v34  ;;  %v6089_v15 = vld [vmem:[%s8275_s0 + $0x260] sm:$0xff]  ;;  %v6087_v21 = vld [vmem:[%s8275_s0 + $0x250] sm:$0xff]  ;;  %v3832_v22 = vpop.f32.mrf.mxu1 }
 0xcd1   :  { %v4023_v37 = vrot.slane %v4016_v36, %v6448_v46  ;;  %v4053_v28 = vcombine.low %v4049_v43, %v4050_v56  ;;  %v4074_v30 = vpop.permute.xlu1 %4073  ;;  %v4072_v24 = vpop.permute.xlu0 %4071 }
 0xcd2   :  { %v4075_v31 = vsel %vm425_vm8, %v4072_v24, %v4074_v30  ;;  %v4076_v32 = vsel %vm425_vm8, %v4074_v30, %v4072_v24  ;;  %v3834_v27 = vpop.f32.mrf.mxu1 }
 0xcd3   :  { %4025 = vst.msk [vmem:[#allocation3 + $0x3] ss:$8 sm:$0x3] %vm6292_vm0, %v4023_v37  ;;  %v4060_v25 = vrot.slane %v4053_v28, %v6448_v46  ;;  %v4089_v39 = vmul.f32 %v4082_v42, %v4075_v31  ;;  %v4090_v26 = vmul.f32 %v4086_v44, %v4076_v32 }
 0xcd4   :  { %v3838_v33 = vpop.f32.mrf.mxu1 }
 0xcd5   :  { %v4067_v45 = vrot.slane %v4060_v25, %v6448_v46  ;;  %v4093_v52 = vcombine.low %v4089_v39, %v4090_v26  ;;  %v4114_v54 = vpop.permute.xlu1 %4113  ;;  %v4112_v55 = vpop.permute.xlu0 %4111 }
 0xcd6   :  { %v4115_v23 = vsel %vm468_vm9, %v4112_v55, %v4114_v54  ;;  %v4116_v53 = vsel %vm468_vm9, %v4114_v54, %v4112_v55  ;;  %v3840_v41 = vpop.f32.mrf.mxu1 }
 0xcd7   :  { %4069 = vst.msk [vmem:[#allocation3 + $0x5] ss:$8 sm:$0x3] %vm6292_vm0, %v4067_v45  ;;  %v4100_v61 = vrot.slane %v4093_v52, %v6448_v46  ;;  %v4129_v57 = vmul.f32 %v4122_v38, %v4115_v23  ;;  %v4130_v62 = vmul.f32 %v4126_v40, %v4116_v53 }
 0xcd8   :  { %v3844_v34 = vpop.f32.mrf.mxu1 }
 0xcd9   :  { %v4107_v63 = vrot.slane %v4100_v61, %v6448_v46  ;;  %v4133_v0 = vcombine.low %v4129_v57, %v4130_v62 }
 0xcda   :  { %v3846_v36 = vpop.f32.mrf.mxu1 }
 0xcdb   :  { %4109 = vst.msk [vmem:[#allocation3 + $0x6] ss:$8 sm:$0x3] %vm6292_vm0, %v4107_v63  ;;  %v4140_v58 = vrot.slane %v4133_v0, %v6448_v46 }
 0xcdc   :  { %v3850_v44 = vpop.f32.mrf.mxu1 }
 0xcdd   :  { %v4147_v6 = vrot.slane %v4140_v58, %v6448_v46 }
 0xcde   :  { %v3852_v24 = vpop.f32.mrf.mxu1 }
 0xcdf   :  { %4149 = vst.msk [vmem:[#allocation3 + $0x7] ss:$8 sm:$0x3] %vm6292_vm0, %v4147_v6 }
 0xce2   :  { %v3752_v29 = vpop.permute.xlu0 %3751  ;;  %v3747_v28 = vpop.permute.xlu1 %3746 }
 0xce3   :  { %v3851_v32 = vadd.f32 %v3850_v44, %v3752_v29  ;;  %v3847_v39 = vadd.f32 %v3846_v36, %v3747_v28  ;;  %v3853_v26 = vadd.f32 %v3852_v24, %v3752_v29  ;;  %v3845_v40 = vadd.f32 %v3844_v34, %v3747_v28  ;;  %v6104_v24 = vld [vmem:[%s8274_s1 + $0x4] ss:$8 sm:$0x3] }
 0xce6   :  { %v4196_v7 = vld [vmem:[#allocation3 + $0x8] sm:$0xff]  ;;  %v4195_v8 = vld [vmem:[#allocation3] sm:$0xff]  ;;  %v3742_v38 = vpop.permute.xlu0 %3741  ;;  %v3737_v45 = vpop.permute.xlu1 %3736 }
 0xce7   :  { %4241 = vmatprep.subr.mxu0 %v4196_v7  ;;  %v3841_v55 = vadd.f32 %v3840_v41, %v3742_v38  ;;  %v3839_v61 = vadd.f32 %v3838_v33, %v3742_v38  ;;  %v3835_v62 = vadd.f32 %v3834_v27, %v3737_v45  ;;  %v3833_v58 = vadd.f32 %v3832_v22, %v3737_v45 }
 0xce8   :  { %4242 = vmatpush1.msra.mxu0 %v4195_v8 }
 0xce9   :  { %6076 = vmatmul.mubr.msk.f32.vlgmr.msra.gmra.mxu0 %vm558_vm10, %v7502_v9  ;;  %v6096_v9 = vld [vmem:[%s8275_s0 + $0x298] sm:$0xff] }
 0xcea   :  { %4281 = vmatprep.mubr.f32.mxu0 %v6234_v1  ;;  %4514 = vmatprep.subr.mxu0 %v6096_v9 }
 0xced   :  { %6077 = vmatmul.mubr.msk.f32.gmra.mxu0 %vm558_vm10, %v7510_v60  ;;  %v6095_v60 = vld [vmem:[%s8275_s0 + $0x290] sm:$0xff] }
 0xcee   :  { %4287 = vmatprep.mubr.f32.mxu0 %v6234_v1  ;;  %4515 = vmatpush1.msra.mxu0 %v6095_v60 }
 0xcef   :  { %4516 = vmatprep.subr.mxu0 %v6094_v59 }
 0xcf1   :  { %6078 = vmatmul.mubr.msk.f32.gmra.mxu0 %vm558_vm10, %v7518_v10  ;;  %v6093_v10 = vld [vmem:[%s8275_s0 + $0x280] sm:$0xff] }
 0xcf2   :  { %4293 = vmatprep.mubr.f32.mxu0 %v6234_v1  ;;  %4517 = vmatpush1.msra.mxu0 %v6093_v10 }
 0xcf5   :  { %6079 = vmatmul.mubr.msk.f32.gmra.mxu0 %vm558_vm10, %v7526_v11  ;;  %v6092_v11 = vld [vmem:[%s8275_s0 + $0x278] sm:$0xff] }
 0xcf6   :  { %4558 = vmatprep.mubr.f32.mxu0 %v6234_v1  ;;  %4518 = vmatprep.subr.mxu0 %v6092_v11 }
 0xcf7   :  { %4519 = vmatpush1.msra.mxu0 %v6091_v12 }
 0xcf8   :  { %4520 = vmatprep.subr.mxu0 %v6090_v14 }
 0xcf9   :  { %4521 = vmatpush1.msra.mxu0 %v6089_v15  ;;  %v6086_v15 = vld [vmem:[%s8275_s0 + $0x248] sm:$0xff] }
 0xcfa   :  { %4522 = vmatprep.subr.mxu0 %v6088_v20  ;;  %v6085_v20 = vld [vmem:[%s8275_s0 + $0x240] sm:$0xff] }
 0xcfb   :  { %4523 = vmatpush1.msra.mxu0 %v6087_v21 }
 0xcfc   :  { %4524 = vmatprep.subr.mxu0 %v6086_v15 }
 0xcfd   :  { %4525 = vmatpush1.msra.mxu0 %v6085_v20 }
 0xcfe   :  { %6097 = vmatmul.mubr.msk.f32.vlgmr.msra.gmra.mxu0 %vm82_vm1, %v7578_v16 }
 0xcff   :  { %4564 = vmatprep.mubr.f32.mxu0 %v6234_v1 }
 0xd02   :  { %6098 = vmatmul.mubr.msk.f32.gmra.mxu0 %vm82_vm1, %v7586_v17 }
 0xd03   :  { %4570 = vmatprep.mubr.f32.mxu0 %v6234_v1 }
 0xd06   :  { %6099 = vmatmul.mubr.msk.f32.gmra.mxu0 %vm82_vm1, %v7594_v18 }
 0xd07   :  { %4576 = vmatprep.mubr.f32.mxu0 %v6234_v1 }
 0xd0a   :  { %6100 = vmatmul.mubr.msk.f32.gmra.mxu0 %vm82_vm1, %v7602_v19 }
 0xd0b   :  { %5118 = vmatprep.mubr.f32.mxu0 %v6234_v1 }
 0xda9   :  { %v4277_v42 = vpop.f32.mrf.mxu0 }
 0xdaa   :  { %v4300_v60 = vadd.f32 %v4277_v42, %v3833_v58 }
 0xdab   :  { %v4279_v43 = vpop.f32.mrf.mxu0 }
 0xdac   :  { %v4301_v8 = vadd.f32 %v4279_v43, %v3835_v62  ;;  %v4308_v14 = vmax.f32 %v4300_v60, 0.0 }
 0xdad   :  { %v4283_v56 = vpop.f32.mrf.mxu0 }
 0xdae   :  { %v4302_v6 = vadd.f32 %v4283_v56, %v3839_v61  ;;  %v4309_v12 = vmax.f32 %v4301_v8, 0.0 }
 0xdaf   :  { %v4285_v37 = vpop.f32.mrf.mxu0 }
 0xdb0   :  { %v4303_v63 = vadd.f32 %v4285_v37, %v3841_v55  ;;  %v4310_v11 = vmax.f32 %v4302_v6, 0.0 }
 0xdb1   :  { %v4289_v30 = vpop.f32.mrf.mxu0 }
 0xdb2   :  { %v4304_v57 = vadd.f32 %v4289_v30, %v3845_v40  ;;  %v4311_v10 = vmax.f32 %v4303_v63, 0.0 }
 0xdb3   :  { %v4291_v31 = vpop.f32.mrf.mxu0 }
 0xdb4   :  { %v4305_v23 = vadd.f32 %v4291_v31, %v3847_v39  ;;  %v4312_v59 = vmax.f32 %v4304_v57, 0.0  ;;  %v6108_v39 = vld [vmem:[%s8274_s1 + $0x10] ss:$8 sm:$0x3] }
 0xdb5   :  { %v4295_v25 = vpop.f32.mrf.mxu0  ;;  %v4894_v40 = vrot.slane %v6108_v39, %v6306_v5 }
 0xdb6   :  { %v4306_v52 = vadd.f32 %v4295_v25, %v3851_v32  ;;  %v4313_v9 = vmax.f32 %v4305_v23, 0.0  ;;  %v6101_v23 = vld [vmem:[%s8274_s1 + $0x1] ss:$8 sm:$0x3] }
 0xdb7   :  { %v4297_v54 = vpop.f32.mrf.mxu0  ;;  %v4650_v8 = vrot.slane %v6101_v23, %v6306_v5 }
 0xdb8   :  { %v4307_v53 = vadd.f32 %v4297_v54, %v3853_v26  ;;  %v4314_v7 = vmax.f32 %v4306_v52, 0.0  ;;  %v4890_v26 = vrot.slane %v6108_v39, %v6303_v4 }
 0xdba   :  { %v4315_v0 = vmax.f32 %v4307_v53, 0.0 }
 0xdbc   :  { %4350 = vmatprep.subr.mxu1 %v4315_v0  ;;  %v4646_v0 = vrot.slane %v6101_v23, %v6303_v4 }
 0xdbd   :  { %4351 = vmatpush1.msra.mxu1 %v4314_v7 }
 0xdbe   :  { %4352 = vmatprep.subr.mxu1 %v4313_v9  ;;  %v6102_v9 = vld [vmem:[%s8274_s1 + $0x2] ss:$8 sm:$0x3] }
 0xdbf   :  { %4353 = vmatpush1.msra.mxu1 %v4312_v59  ;;  %v4686_v15 = vrot.slane %v6102_v9, %v6303_v4 }
 0xdc0   :  { %4354 = vmatprep.subr.mxu1 %v4311_v10 }
 0xdc1   :  { %4355 = vmatpush1.msra.mxu1 %v4310_v11 }
 0xdc2   :  { %4356 = vmatprep.subr.mxu1 %v4309_v12 }
 0xdc3   :  { %4357 = vmatpush1.msra.mxu1 %v4308_v14 }
 0xdc4   :  { %6080 = vmatmul.mubr.msk.f32.vlgmr.msra.gmra.mxu1 %vm683_vm11, %v7564_v13  ;;  %v4321_v13 = vpop.permute.xlu0 %4320 }
 0xdc5   :  { %5003 = vmatprep.mubr.f32.mxu1 %v6234_v1 }
 0xe84   :  { %v4392_v21 = vpop.f32.mrf.mxu1 }
 0xe85   :  { %v4393_v16 = vadd.f32 %v4392_v21, %v4321_v13 }
 0xe86   :  { %v4394_v22 = vpop.f32.mrf.mxu1 }
 0xe87   :  { %v6081_v27 = vmul.f32 -1.442695, %v4393_v16  ;;  %v4395_v33 = vadd.f32 %v4394_v22, %v4321_v13  ;;  %v6103_v22 = vld [vmem:[%s8274_s1 + $0x3] ss:$8 sm:$0x3] }
 0xe89   :  { %6204 = vpow2.f32 %v6081_v27  ;;  %v6082_v17 = vmul.f32 -1.442695, %v4395_v33 }
 0xe8b   :  { %6206 = vpow2.f32 %v6082_v17 }
 0xe96   :  { %v6205_v41 = vpop.eup %6204 }
 0xe97   :  { %v4403_v34 = vadd.f32 1.0, %v6205_v41 }
 0xe98   :  { %v6207_v42 = vpop.eup %6206 }
 0xe99   :  { %6208 = vrcp.f32 %v4403_v34  ;;  %v4404_v18 = vadd.f32 1.0, %v6207_v42 }
 0xe9b   :  { %6210 = vrcp.f32 %v4404_v18  ;;  %v4726_v18 = vrot.slane %v6103_v22, %v6303_v4 }
 0xea6   :  { %v6209_v36 = vpop.eup %6208 }
 0xea7   :  { %v4412_v19 = vrot.slane %v6209_v36, %v6303_v4 }
 0xea8   :  { %v6211_v43 = vpop.eup %6210 }
 0xea9   :  { %v4417_v56 = vsel %vm41_vm12, %v4412_v19, %v4393_v16  ;;  %v4416_v44 = vrot.slane %v6211_v43, %v6303_v4  ;;  %v4424_v29 = vcombine.low %v6209_v36, %v6211_v43  ;;  %v4690_v16 = vrot.slane %v6102_v9, %v6306_v5 }
 0xeaa   :  { %6083 = vst [vmem:[%s8281_s7 + $0x50] sm:$0xff] %v4417_v56  ;;  %v4730_v56 = vrot.slane %v6103_v22, %v6306_v5 }
 0xeab   :  { %v4418_v37 = vsel %vm41_vm12, %v4416_v44, %v4395_v33  ;;  %v4431_v28 = vrot.slane %v4424_v29, %v6448_v46  ;;  %v6105_v44 = vld [vmem:[%s8274_s1 + $0x5] ss:$8 sm:$0x3] }
 0xeac   :  { %6084 = vst [vmem:[%s8281_s7 + $0x58] sm:$0xff] %v4418_v37 }
 0xead   :  { %v4438_v30 = vrot.slane %v4431_v28, %v6448_v46 }
 0xeaf   :  { %4440 = vst.msk [vmem:[#allocation2] sm:$0x3] %vm6292_vm0, %v4438_v30 }
 0xeb6   :  { %v4583_v31 = vld [vmem:[#allocation2] sm:$0x3] }
 0xeb7   :  { %v4592_v32 = vrot.slane %v4583_v31, %v6306_v5  ;;  %v4756_v38 = vmul.f32 %v6104_v24, %v4583_v31  ;;  %v4588_v25 = vrot.slane %v4583_v31, %v6303_v4 }
 0xeb9   :  { %4881 = vrot.lane.b32.xlu0 %v4592_v32, %s6236_s25  ;;  %4757 = vst.msk [vmem:[#allocation3 + $0x4] ss:$8 sm:$0x3] %vm6292_vm0, %v4756_v38  ;;  %4879 = vrot.lane.b32.xlu1 %v4588_v25, %s6236_s25 }
 0xebd   :  { %4597 = vrot.lane.b32.xlu0 %v4592_v32, %s6235_s24  ;;  %4595 = vrot.lane.b32.xlu1 %v4588_v25, %s6235_s24 }
 0xec1   :  { %4637 = vrot.lane.b32.xlu0 %v4592_v32, %s6237_s28  ;;  %4635 = vrot.lane.b32.xlu1 %v4588_v25, %s6237_s28 }
 0xec5   :  { %4677 = vrot.lane.b32.xlu0 %v4592_v32, %s6238_s29  ;;  %4675 = vrot.lane.b32.xlu1 %v4588_v25, %s6238_s29 }
 0xec9   :  { %4717 = vrot.lane.b32.xlu0 %v4592_v32, %s6239_s30  ;;  %4715 = vrot.lane.b32.xlu1 %v4588_v25, %s6239_s30 }
 0xecd   :  { %4761 = vrot.lane.b32.xlu0 %v4592_v32, %s6240_s14  ;;  %4759 = vrot.lane.b32.xlu1 %v4588_v25, %s6240_s14 }
 0xed1   :  { %4801 = vrot.lane.b32.xlu0 %v4592_v32, %s6241_s23  ;;  %4799 = vrot.lane.b32.xlu1 %v4588_v25, %s6241_s23 }
 0xed5   :  { %4841 = vrot.lane.b32.xlu0 %v4592_v32, %s6242_s12  ;;  %4839 = vrot.lane.b32.xlu1 %v4588_v25, %s6242_s12  ;;  %v4770_v25 = vrot.slane %v6105_v44, %v6303_v4 }
 0xed9   :  { %4474 = vperm.xlu0 %6162, %v7649_v48   ;;  %4479 = vperm.xlu1 %6163, %v7654_v49   ;;  %v4601_v48 = vld [vmem:[%s8274_s1] ss:$8 sm:$0x3] }
 0xeda   :  { %v4606_v54 = vrot.slane %v4601_v48, %v6303_v4  ;;  %v4610_v55 = vrot.slane %v4601_v48, %v6306_v5  ;;  %v4774_v48 = vrot.slane %v6105_v44, %v6306_v5  ;;  %v6129_v44 = vld [vmem:[%s8275_s0 + $0x2f8] sm:$0xff] }
 0xedd   :  { %4464 = vperm.xlu0 %6162, %v7661_v47   ;;  %4469 = vperm.xlu1 %6163, %v7666_v50  }
 0xee1   :  { %5048 = vperm.xlu1 %6163, %v7673_v51  }
 0xf2b   :  { %v4882_v45 = vpop.permute.xlu0 %4881  ;;  %v4880_v49 = vpop.permute.xlu1 %4879 }
 0xf2c   :  { %v4883_v47 = vsel %vm511_vm3, %v4880_v49, %v4882_v45  ;;  %v4884_v50 = vsel %vm511_vm3, %v4882_v45, %v4880_v49  ;;  %v6106_v45 = vld [vmem:[%s8274_s1 + $0x6] ss:$8 sm:$0x3] }
 0xf2d   :  { %v4897_v51 = vmul.f32 %v4890_v26, %v4883_v47  ;;  %v4898_v52 = vmul.f32 %v4894_v40, %v4884_v50 }
 0xf2f   :  { %v4901_v53 = vcombine.low %v4897_v51, %v4898_v52  ;;  %v4598_v61 = vpop.permute.xlu0 %4597  ;;  %v4596_v57 = vpop.permute.xlu1 %4595 }
 0xf30   :  { %v4599_v62 = vsel %vm202_vm2, %v4596_v57, %v4598_v61  ;;  %v4600_v63 = vsel %vm202_vm2, %v4598_v61, %v4596_v57  ;;  %v4814_v57 = vrot.slane %v6106_v45, %v6306_v5 }
 0xf31   :  { %v4908_v58 = vrot.slane %v4901_v53, %v6448_v46  ;;  %v4613_v6 = vmul.f32 %v4606_v54, %v4600_v63  ;;  %v4614_v7 = vmul.f32 %v4610_v55, %v4599_v62  ;;  %v4810_v55 = vrot.slane %v6106_v45, %v6303_v4  ;;  %v6107_v62 = vld [vmem:[%s8274_s1 + $0x7] ss:$8 sm:$0x3] }
 0xf32   :  { %v4850_v9 = vrot.slane %v6107_v62, %v6303_v4 }
 0xf33   :  { %v4915_v60 = vrot.slane %v4908_v58, %v6448_v46  ;;  %v4617_v59 = vcombine.low %v4613_v6, %v4614_v7  ;;  %v4638_v10 = vpop.permute.xlu0 %4637  ;;  %v4636_v11 = vpop.permute.xlu1 %4635 }
 0xf34   :  { %v4639_v12 = vsel %vm247_vm4, %v4636_v11, %v4638_v10  ;;  %v4640_v14 = vsel %vm247_vm4, %v4638_v10, %v4636_v11  ;;  %v4854_v11 = vrot.slane %v6107_v62, %v6306_v5 }
 0xf35   :  { %4917 = vst.msk [vmem:[#allocation3 + $0x10] ss:$8 sm:$0x3] %vm6292_vm0, %v4915_v60  ;;  %v4624_v20 = vrot.slane %v4617_v59, %v6448_v46  ;;  %v4653_v13 = vmul.f32 %v4646_v0, %v4640_v14  ;;  %v4654_v21 = vmul.f32 %v4650_v8, %v4639_v12 }
 0xf37   :  { %v4631_v27 = vrot.slane %v4624_v20, %v6448_v46  ;;  %v4657_v33 = vcombine.low %v4653_v13, %v4654_v21  ;;  %v4678_v17 = vpop.permute.xlu0 %4677  ;;  %v4676_v41 = vpop.permute.xlu1 %4675 }
 0xf38   :  { %v4679_v34 = vsel %vm290_vm5, %v4676_v41, %v4678_v17  ;;  %v4680_v42 = vsel %vm290_vm5, %v4678_v17, %v4676_v41 }
 0xf39   :  { %4633 = vst.msk [vmem:[#allocation3] ss:$8 sm:$0x3] %vm6292_vm0, %v4631_v27  ;;  %v4664_v36 = vrot.slane %v4657_v33, %v6448_v46  ;;  %v4693_v19 = vmul.f32 %v4686_v15, %v4680_v42  ;;  %v4694_v43 = vmul.f32 %v4690_v16, %v4679_v34 }
 0xf3b   :  { %v4671_v29 = vrot.slane %v4664_v36, %v6448_v46  ;;  %v4697_v37 = vcombine.low %v4693_v19, %v4694_v43  ;;  %v4718_v28 = vpop.permute.xlu0 %4717  ;;  %v4716_v30 = vpop.permute.xlu1 %4715  ;;  %v7994_v36 = vld [vmem:[%s8279_s4] sm:$0xff]  ;;  %v8002_v19 = vld [vmem:[%s8279_s4 + $0x8] sm:$0xff]  ;;  %v8010_v43 = vld [vmem:[%s8279_s4 + $0x10] sm:$0xff] }
 0xf3c   :  { %v4719_v24 = vsel %vm333_vm6, %v4716_v30, %v4718_v28  ;;  %v4720_v31 = vsel %vm333_vm6, %v4718_v28, %v4716_v30  ;;  %v4926_v32 = vld [vmem:[#allocation3 + $0x18] sm:$0xff]  ;;  %v4925_v38 = vld [vmem:[#allocation3 + $0x10] sm:$0xff] }
 0xf3d   :  { %4673 = vst.msk [vmem:[#allocation3 + $0x1] ss:$8 sm:$0x3] %vm6292_vm0, %v4671_v29  ;;  %v4704_v39 = vrot.slane %v4697_v37, %v6448_v46  ;;  %v4733_v26 = vmul.f32 %v4726_v18, %v4720_v31  ;;  %v4734_v40 = vmul.f32 %v4730_v56, %v4719_v24  ;;  %4967 = vmatprep.subr.mxu1 %v4926_v32  ;;  %v8018_v56 = vld [vmem:[%s8279_s4 + $0x18] sm:$0xff]  ;;  %v6128_v29 = vld [vmem:[%s8275_s0 + $0x2f0] sm:$0xff]  ;;  %v6127_v37 = vld [vmem:[%s8275_s0 + $0x2e8] sm:$0xff] }
 0xf3e   :  { %4968 = vmatpush1.msra.mxu1 %v4925_v38  ;;  %v6126_v28 = vld [vmem:[%s8275_s0 + $0x2e0] sm:$0xff]  ;;  %v6125_v30 = vld [vmem:[%s8275_s0 + $0x2d8] sm:$0xff]  ;;  %v6124_v24 = vld [vmem:[%s8275_s0 + $0x2d0] sm:$0xff] }
 0xf3f   :  { %v4711_v49 = vrot.slane %v4704_v39, %v6448_v46  ;;  %v4737_v47 = vcombine.low %v4733_v26, %v4734_v40  ;;  %v4762_v50 = vpop.permute.xlu0 %4761  ;;  %v4760_v51 = vpop.permute.xlu1 %4759  ;;  %v6123_v31 = vld [vmem:[%s8275_s0 + $0x2c8] sm:$0xff]  ;;  %v6122_v32 = vld [vmem:[%s8275_s0 + $0x2c0] sm:$0xff]  ;;  %v6121_v38 = vld [vmem:[%s8275_s0 + $0x2b8] sm:$0xff] }
 0xf40   :  { %v4763_v52 = vsel %vm382_vm7, %v4760_v51, %v4762_v50  ;;  %v4764_v54 = vsel %vm382_vm7, %v4762_v50, %v4760_v51  ;;  %v4560_v39 = vpop.f32.mrf.mxu0 }
 0xf41   :  { %4713 = vst.msk [vmem:[#allocation3 + $0x2] ss:$8 sm:$0x3] %vm6292_vm0, %v4711_v49  ;;  %v4744_v23 = vrot.slane %v4737_v47, %v6448_v46  ;;  %v4777_v53 = vmul.f32 %v4770_v25, %v4763_v52  ;;  %v4778_v61 = vmul.f32 %v4774_v48, %v4764_v54  ;;  %v6120_v25 = vld [vmem:[%s8275_s0 + $0x2b0] sm:$0xff] }
 0xf42   :  { %v4562_v26 = vpop.f32.mrf.mxu0 }
 0xf43   :  { %v4751_v63 = vrot.slane %v4744_v23, %v6448_v46  ;;  %v4781_v0 = vcombine.low %v4777_v53, %v4778_v61  ;;  %v4802_v58 = vpop.permute.xlu0 %4801  ;;  %v4800_v6 = vpop.permute.xlu1 %4799 }
 0xf44   :  { %v4803_v7 = vsel %vm425_vm8, %v4800_v6, %v4802_v58  ;;  %v4804_v8 = vsel %vm425_vm8, %v4802_v58, %v4800_v6  ;;  %v4566_v40 = vpop.f32.mrf.mxu0 }
 0xf45   :  { %4753 = vst.msk [vmem:[#allocation3 + $0x3] ss:$8 sm:$0x3] %vm6292_vm0, %v4751_v63  ;;  %v4788_v60 = vrot.slane %v4781_v0, %v6448_v46  ;;  %v4817_v59 = vmul.f32 %v4810_v55, %v4803_v7  ;;  %v4818_v10 = vmul.f32 %v4814_v57, %v4804_v8 }
 0xf46   :  { %v4568_v48 = vpop.f32.mrf.mxu0 }
 0xf47   :  { %v4795_v12 = vrot.slane %v4788_v60, %v6448_v46  ;;  %v4821_v14 = vcombine.low %v4817_v59, %v4818_v10  ;;  %v4842_v15 = vpop.permute.xlu0 %4841  ;;  %v4840_v20 = vpop.permute.xlu1 %4839 }
 0xf48   :  { %v4843_v13 = vsel %vm468_vm9, %v4840_v20, %v4842_v15  ;;  %v4844_v21 = vsel %vm468_vm9, %v4842_v15, %v4840_v20  ;;  %v4572_v45 = vpop.f32.mrf.mxu0 }
 0xf49   :  { %4797 = vst.msk [vmem:[#allocation3 + $0x5] ss:$8 sm:$0x3] %vm6292_vm0, %v4795_v12  ;;  %v4828_v16 = vrot.slane %v4821_v14, %v6448_v46  ;;  %v4857_v22 = vmul.f32 %v4850_v9, %v4843_v13  ;;  %v4858_v27 = vmul.f32 %v4854_v11, %v4844_v21 }
 0xf4a   :  { %v4574_v47 = vpop.f32.mrf.mxu0 }
 0xf4b   :  { %v4835_v33 = vrot.slane %v4828_v16, %v6448_v46  ;;  %v4861_v17 = vcombine.low %v4857_v22, %v4858_v27 }
 0xf4c   :  { %v4578_v52 = vpop.f32.mrf.mxu0 }
 0xf4d   :  { %4837 = vst.msk [vmem:[#allocation3 + $0x6] ss:$8 sm:$0x3] %vm6292_vm0, %v4835_v33  ;;  %v4868_v41 = vrot.slane %v4861_v17, %v6448_v46 }
 0xf4e   :  { %v4580_v61 = vpop.f32.mrf.mxu0 }
 0xf4f   :  { %v4875_v34 = vrot.slane %v4868_v41, %v6448_v46 }
 0xf51   :  { %4877 = vst.msk [vmem:[#allocation3 + $0x7] ss:$8 sm:$0x3] %vm6292_vm0, %v4875_v34 }
 0xf54   :  { %v4480_v54 = vpop.permute.xlu1 %4479  ;;  %v4475_v23 = vpop.permute.xlu0 %4474 }
 0xf55   :  { %v4579_v62 = vadd.f32 %v4578_v52, %v4480_v54  ;;  %v4575_v58 = vadd.f32 %v4574_v47, %v4475_v23  ;;  %v4581_v6 = vadd.f32 %v4580_v61, %v4480_v54  ;;  %v4573_v7 = vadd.f32 %v4572_v45, %v4475_v23 }
 0xf58   :  { %v4924_v42 = vld [vmem:[#allocation3 + $0x8] sm:$0xff]  ;;  %v4923_v18 = vld [vmem:[#allocation3] sm:$0xff]  ;;  %v4470_v63 = vpop.permute.xlu1 %4469  ;;  %v4465_v8 = vpop.permute.xlu0 %4464 }
 0xf59   :  { %4969 = vmatprep.subr.mxu1 %v4924_v42  ;;  %v4569_v59 = vadd.f32 %v4568_v48, %v4470_v63  ;;  %v4567_v12 = vadd.f32 %v4566_v40, %v4470_v63  ;;  %v4563_v15 = vadd.f32 %v4562_v26, %v4465_v8  ;;  %v4561_v21 = vadd.f32 %v4560_v39, %v4465_v8 }
 0xf5a   :  { %4970 = vmatpush1.msra.mxu1 %v4923_v18 }
 0xf5b   :  { %6109 = vmatmul.mubr.msk.f32.vlgmr.msra.gmra.mxu1 %vm558_vm10, %v7994_v36  ;;  %5242 = vmatprep.subr.mxu1 %v6129_v44 }
 0xf5c   :  { %5009 = vmatprep.mubr.f32.mxu1 %v6234_v1  ;;  %5243 = vmatpush1.msra.mxu1 %v6128_v29  ;;  %v8056_v29 = vld [vmem:[%s8280_s5] sm:$0xff] }
 0xf5d   :  { %5244 = vmatprep.subr.mxu1 %v6127_v37  ;;  %v6119_v37 = vld [vmem:[%s8275_s0 + $0x2a8] sm:$0xff] }
 0xf5e   :  { %5245 = vmatpush1.msra.mxu1 %v6126_v28  ;;  %v6118_v28 = vld [vmem:[%s8275_s0 + $0x2a0] sm:$0xff] }
 0xf5f   :  { %6110 = vmatmul.mubr.msk.f32.gmra.mxu1 %vm558_vm10, %v8002_v19  ;;  %5246 = vmatprep.subr.mxu1 %v6125_v30  ;;  %v5169_v30 = vld [vmem:[%s8276_s2] sm:$0xff] }
 0xf60   :  { %5015 = vmatprep.mubr.f32.mxu1 %v6234_v1  ;;  %5247 = vmatpush1.msra.mxu1 %v6124_v24  ;;  %v5170_v24 = vld [vmem:[%s8276_s2 + $0x8] sm:$0xff] }
 0xf61   :  { %5248 = vmatprep.subr.mxu1 %v6123_v31  ;;  %v5171_v31 = vld [vmem:[%s8276_s2 + $0x10] sm:$0xff] }
 0xf62   :  { %5249 = vmatpush1.msra.mxu1 %v6122_v32  ;;  %v5172_v32 = vld [vmem:[%s8276_s2 + $0x18] sm:$0xff] }
 0xf63   :  { %6111 = vmatmul.mubr.msk.f32.gmra.mxu1 %vm558_vm10, %v8010_v43  ;;  %5250 = vmatprep.subr.mxu1 %v6121_v38  ;;  %v5049_v38 = vpop.permute.xlu1 %5048 }
 0xf64   :  { %5021 = vmatprep.mubr.f32.mxu1 %v6234_v1  ;;  %5251 = vmatpush1.msra.mxu1 %v6120_v25 }
 0xf65   :  { %5252 = vmatprep.subr.mxu1 %v6119_v37 }
 0xf66   :  { %5253 = vmatpush1.msra.mxu1 %v6118_v28 }
 0xf67   :  { %6112 = vmatmul.mubr.msk.f32.gmra.mxu1 %vm558_vm10, %v8018_v56 }
 0xf68   :  { %5286 = vmatprep.mubr.f32.mxu1 %v6234_v1 }
 0xf6b   :  { %6130 = vmatmul.mubr.msk.f32.vlgmr.msra.gmra.mxu1 %vm82_vm1, %v5169_v30 }
 0xf6c   :  { %5292 = vmatprep.mubr.f32.mxu1 %v6234_v1 }
 0xf6f   :  { %6131 = vmatmul.mubr.msk.f32.gmra.mxu1 %vm82_vm1, %v5170_v24 }
 0xf70   :  { %5298 = vmatprep.mubr.f32.mxu1 %v6234_v1 }
 0xf73   :  { %6132 = vmatmul.mubr.msk.f32.gmra.mxu1 %vm82_vm1, %v5171_v31 }
 0xf74   :  { %5304 = vmatprep.mubr.f32.mxu1 %v6234_v1 }
 0xf77   :  { %6133 = vmatmul.mubr.msk.f32.gmra.mxu1 %vm82_vm1, %v5172_v32 }
 0xf78   :  { %5846 = vmatprep.mubr.f32.mxu1 %v6234_v1 }
0x101b   :  { %v5005_v49 = vpop.f32.mrf.mxu1 }
0x101c   :  { %v5028_v17 = vadd.f32 %v5005_v49, %v4561_v21 }
0x101d   :  { %v5007_v50 = vpop.f32.mrf.mxu1 }
0x101e   :  { %v5029_v27 = vadd.f32 %v5007_v50, %v4563_v15  ;;  %v5036_v44 = vmax.f32 %v5028_v17, 0.0 }
0x101f   :  { %v5011_v51 = vpop.f32.mrf.mxu1 }
0x1020   :  { %v5030_v16 = vadd.f32 %v5011_v51, %v4567_v12  ;;  %v5037_v18 = vmax.f32 %v5029_v27, 0.0  ;;  %v6141_v12 = vld [vmem:[%s8274_s1 + $0x10] ss:$8 sm:$0x3] }
0x1021   :  { %v5013_v55 = vpop.f32.mrf.mxu1  ;;  %v5622_v15 = vrot.slane %v6141_v12, %v6306_v5 }
0x1022   :  { %v5031_v20 = vadd.f32 %v5013_v55, %v4569_v59  ;;  %v5038_v42 = vmax.f32 %v5030_v16, 0.0  ;;  %v5186_v59 = vld [vmem:[%s8277_s3] sm:$0xff] }
0x1023   :  { %v5017_v53 = vpop.f32.mrf.mxu1 }
0x1024   :  { %v5032_v14 = vadd.f32 %v5017_v53, %v4573_v7  ;;  %v5039_v34 = vmax.f32 %v5031_v20, 0.0  ;;  %v5329_v20 = vld [vmem:[%s8274_s1] ss:$8 sm:$0x3] }
0x1025   :  { %v5019_v57 = vpop.f32.mrf.mxu1  ;;  %v5334_v17 = vrot.slane %v5329_v20, %v6303_v4 }
0x1026   :  { %v5033_v10 = vadd.f32 %v5019_v57, %v4575_v58  ;;  %v5040_v41 = vmax.f32 %v5032_v14, 0.0  ;;  %v5618_v14 = vrot.slane %v6141_v12, %v6303_v4 }
0x1027   :  { %v5023_v0 = vpop.f32.mrf.mxu1 }
0x1028   :  { %v5034_v9 = vadd.f32 %v5023_v0, %v4579_v62  ;;  %v5041_v33 = vmax.f32 %v5033_v10, 0.0  ;;  %v6137_v0 = vld [vmem:[%s8274_s1 + $0x4] ss:$8 sm:$0x3] }
0x1029   :  { %v5025_v60 = vpop.f32.mrf.mxu1  ;;  %v5187_v10 = vld [vmem:[%s8277_s3 + $0x8] sm:$0xff] }
0x102a   :  { %v5035_v11 = vadd.f32 %v5025_v60, %v4581_v6  ;;  %v5042_v22 = vmax.f32 %v5034_v9, 0.0  ;;  %v5188_v9 = vld [vmem:[%s8277_s3 + $0x10] sm:$0xff]  ;;  %v5189_v60 = vld [vmem:[%s8277_s3 + $0x18] sm:$0xff] }
0x102c   :  { %v5043_v13 = vmax.f32 %v5035_v11, 0.0  ;;  %v5773_v11 = vld [vmem:[%s8278_s6] sm:$0xff] }
0x102e   :  { %5078 = vmatprep.subr.mxu0 %v5043_v13 }
0x102f   :  { %5079 = vmatpush1.msra.mxu0 %v5042_v22 }
0x1030   :  { %5080 = vmatprep.subr.mxu0 %v5041_v33 }
0x1031   :  { %5081 = vmatpush1.msra.mxu0 %v5040_v41  ;;  %v5338_v41 = vrot.slane %v5329_v20, %v6306_v5 }
0x1032   :  { %5082 = vmatprep.subr.mxu0 %v5039_v34  ;;  %v6134_v34 = vld [vmem:[%s8274_s1 + $0x1] ss:$8 sm:$0x3] }
0x1033   :  { %5083 = vmatpush1.msra.mxu0 %v5038_v42  ;;  %v5374_v30 = vrot.slane %v6134_v34, %v6303_v4 }
0x1034   :  { %5084 = vmatprep.subr.mxu0 %v5037_v18 }
0x1035   :  { %5085 = vmatpush1.msra.mxu0 %v5036_v44 }
0x1036   :  { %6113 = vmatmul.mubr.msk.f32.vlgmr.msra.gmra.mxu0 %vm683_vm11, %v8056_v29 }
0x1037   :  { %5731 = vmatprep.mubr.f32.mxu0 %v6234_v1 }
0x10f6   :  { %v5120_v25 = vpop.f32.mrf.mxu0 }
0x10f7   :  { %v5121_v39 = vadd.f32 %v5120_v25, %v5049_v38  ;;  %v6135_v25 = vld [vmem:[%s8274_s1 + $0x2] ss:$8 sm:$0x3] }
0x10f8   :  { %v5122_v26 = vpop.f32.mrf.mxu0 }
0x10f9   :  { %v6114_v40 = vmul.f32 -1.442695, %v5121_v39  ;;  %v5123_v48 = vadd.f32 %v5122_v26, %v5049_v38  ;;  %v5378_v38 = vrot.slane %v6134_v34, %v6306_v5 }
0x10fb   :  { %6212 = vpow2.f32 %v6114_v40  ;;  %v6115_v45 = vmul.f32 -1.442695, %v5123_v48 }
0x10fd   :  { %6214 = vpow2.f32 %v6115_v45 }
0x1108   :  { %v6213_v49 = vpop.eup %6212 }
0x1109   :  { %v5131_v47 = vadd.f32 1.0, %v6213_v49 }
0x110a   :  { %v6215_v50 = vpop.eup %6214 }
0x110b   :  { %6216 = vrcp.f32 %v5131_v47  ;;  %v5132_v51 = vadd.f32 1.0, %v6215_v50  ;;  %v5414_v47 = vrot.slane %v6135_v25, %v6303_v4 }
0x110d   :  { %6218 = vrcp.f32 %v5132_v51 }
0x1118   :  { %v6217_v52 = vpop.eup %6216 }
0x1119   :  { %v5140_v54 = vrot.slane %v6217_v52, %v6303_v4 }
0x111a   :  { %v6219_v55 = vpop.eup %6218 }
0x111b   :  { %v5145_v23 = vsel %vm41_vm12, %v5140_v54, %v5121_v39  ;;  %v5144_v53 = vrot.slane %v6219_v55, %v6303_v4  ;;  %v5152_v61 = vcombine.low %v6217_v52, %v6219_v55  ;;  %v5418_v54 = vrot.slane %v6135_v25, %v6306_v5  ;;  %v6136_v55 = vld [vmem:[%s8274_s1 + $0x3] ss:$8 sm:$0x3] }
0x111c   :  { %6116 = vst [vmem:[%s8281_s7 + $0x60] sm:$0xff] %v5145_v23 }
0x111d   :  { %v5146_v57 = vsel %vm41_vm12, %v5144_v53, %v5123_v48  ;;  %v5159_v62 = vrot.slane %v5152_v61, %v6448_v46 }
0x111e   :  { %6117 = vst [vmem:[%s8281_s7 + $0x68] sm:$0xff] %v5146_v57 }
0x111f   :  { %v5166_v63 = vrot.slane %v5159_v62, %v6448_v46 }
0x1121   :  { %5168 = vst.msk [vmem:[#allocation2] sm:$0x3] %vm6292_vm0, %v5166_v63 }
0x1128   :  { %v5311_v58 = vld [vmem:[#allocation2] sm:$0x3] }
0x1129   :  { %v5320_v6 = vrot.slane %v5311_v58, %v6306_v5  ;;  %v5484_v7 = vmul.f32 %v6137_v0, %v5311_v58  ;;  %v5316_v8 = vrot.slane %v5311_v58, %v6303_v4  ;;  %v5454_v0 = vrot.slane %v6136_v55, %v6303_v4 }
0x112b   :  { %5609 = vrot.lane.b32.xlu1 %v5320_v6, %s6236_s25  ;;  %5485 = vst.msk [vmem:[#allocation3 + $0x4] ss:$8 sm:$0x3] %vm6292_vm0, %v5484_v7  ;;  %5607 = vrot.lane.b32.xlu0 %v5316_v8, %s6236_s25 }
0x112f   :  { %5325 = vrot.lane.b32.xlu1 %v5320_v6, %s6235_s24  ;;  %5323 = vrot.lane.b32.xlu0 %v5316_v8, %s6235_s24 }
0x1133   :  { %5365 = vrot.lane.b32.xlu1 %v5320_v6, %s6237_s28  ;;  %5363 = vrot.lane.b32.xlu0 %v5316_v8, %s6237_s28 }
0x1137   :  { %5405 = vrot.lane.b32.xlu1 %v5320_v6, %s6238_s29  ;;  %5403 = vrot.lane.b32.xlu0 %v5316_v8, %s6238_s29 }
0x113b   :  { %5445 = vrot.lane.b32.xlu1 %v5320_v6, %s6239_s30  ;;  %5443 = vrot.lane.b32.xlu0 %v5316_v8, %s6239_s30 }
0x113f   :  { %5489 = vrot.lane.b32.xlu1 %v5320_v6, %s6240_s14  ;;  %5487 = vrot.lane.b32.xlu0 %v5316_v8, %s6240_s14 }
0x1143   :  { %5529 = vrot.lane.b32.xlu1 %v5320_v6, %s6241_s23  ;;  %5527 = vrot.lane.b32.xlu0 %v5316_v8, %s6241_s23 }
0x1147   :  { %5569 = vrot.lane.b32.xlu1 %v5320_v6, %s6242_s12  ;;  %5567 = vrot.lane.b32.xlu0 %v5316_v8, %s6242_s12  ;;  %v5458_v8 = vrot.slane %v6136_v55, %v6306_v5 }
0x114b   :  { %5202 = vperm.xlu1 %6163, %v5188_v9   ;;  %5207 = vperm.xlu0 %6162, %v5189_v60   ;;  %v6138_v9 = vld [vmem:[%s8274_s1 + $0x5] ss:$8 sm:$0x3] }
0x114f   :  { %5192 = vperm.xlu1 %6163, %v5186_v59   ;;  %5197 = vperm.xlu0 %6162, %v5187_v10  }
0x1153   :  { %5776 = vperm.xlu0 %6162, %v5773_v11  }
0x119d   :  { %v5610_v13 = vpop.permute.xlu1 %5609  ;;  %v5608_v21 = vpop.permute.xlu0 %5607 }
0x119e   :  { %v5611_v16 = vsel %vm511_vm3, %v5608_v21, %v5610_v13  ;;  %v5612_v22 = vsel %vm511_vm3, %v5610_v13, %v5608_v21  ;;  %v5498_v13 = vrot.slane %v6138_v9, %v6303_v4 }
0x119f   :  { %v5625_v27 = vmul.f32 %v5618_v14, %v5611_v16  ;;  %v5626_v33 = vmul.f32 %v5622_v15, %v5612_v22 }
0x11a1   :  { %v5629_v42 = vcombine.low %v5625_v27, %v5626_v33  ;;  %v5326_v18 = vpop.permute.xlu1 %5325  ;;  %v5324_v44 = vpop.permute.xlu0 %5323  ;;  %v5502_v27 = vrot.slane %v6138_v9, %v6306_v5  ;;  %v6139_v33 = vld [vmem:[%s8274_s1 + $0x6] ss:$8 sm:$0x3] }
0x11a2   :  { %v5327_v37 = vsel %vm202_vm2, %v5324_v44, %v5326_v18  ;;  %v5328_v28 = vsel %vm202_vm2, %v5326_v18, %v5324_v44 }
0x11a3   :  { %v5636_v24 = vrot.slane %v5629_v42, %v6448_v46  ;;  %v5341_v31 = vmul.f32 %v5334_v17, %v5328_v28  ;;  %v5342_v32 = vmul.f32 %v5338_v41, %v5327_v37  ;;  %v5538_v37 = vrot.slane %v6139_v33, %v6303_v4 }
0x11a5   :  { %v5643_v39 = vrot.slane %v5636_v24, %v6448_v46  ;;  %v5345_v26 = vcombine.low %v5341_v31, %v5342_v32  ;;  %v5366_v40 = vpop.permute.xlu1 %5365  ;;  %v5364_v48 = vpop.permute.xlu0 %5363  ;;  %v5542_v31 = vrot.slane %v6139_v33, %v6306_v5  ;;  %v6140_v32 = vld [vmem:[%s8274_s1 + $0x7] ss:$8 sm:$0x3] }
0x11a6   :  { %v5367_v45 = vsel %vm247_vm4, %v5364_v48, %v5366_v40  ;;  %v5368_v49 = vsel %vm247_vm4, %v5366_v40, %v5364_v48 }
0x11a7   :  { %5645 = vst.msk [vmem:[#allocation3 + $0x10] ss:$8 sm:$0x3] %vm6292_vm0, %v5643_v39  ;;  %v5352_v50 = vrot.slane %v5345_v26, %v6448_v46  ;;  %v5381_v51 = vmul.f32 %v5374_v30, %v5368_v49  ;;  %v5382_v52 = vmul.f32 %v5378_v38, %v5367_v45  ;;  %v5578_v45 = vrot.slane %v6140_v32, %v6303_v4 }
0x11a9   :  { %v5359_v23 = vrot.slane %v5352_v50, %v6448_v46  ;;  %v5385_v53 = vcombine.low %v5381_v51, %v5382_v52  ;;  %v5406_v61 = vpop.permute.xlu1 %5405  ;;  %v5404_v57 = vpop.permute.xlu0 %5403  ;;  %v5582_v51 = vrot.slane %v6140_v32, %v6306_v5 }
0x11aa   :  { %v5407_v62 = vsel %vm290_vm5, %v5404_v57, %v5406_v61  ;;  %v5408_v63 = vsel %vm290_vm5, %v5406_v61, %v5404_v57 }
0x11ab   :  { %5361 = vst.msk [vmem:[#allocation3] ss:$8 sm:$0x3] %vm6292_vm0, %v5359_v23  ;;  %v5392_v58 = vrot.slane %v5385_v53, %v6448_v46  ;;  %v5421_v6 = vmul.f32 %v5414_v47, %v5408_v63  ;;  %v5422_v7 = vmul.f32 %v5418_v54, %v5407_v62 }
0x11ad   :  { %v5399_v60 = vrot.slane %v5392_v58, %v6448_v46  ;;  %v5425_v59 = vcombine.low %v5421_v6, %v5422_v7  ;;  %v5446_v10 = vpop.permute.xlu1 %5445  ;;  %v5444_v11 = vpop.permute.xlu0 %5443 }
0x11ae   :  { %v5447_v12 = vsel %vm333_vm6, %v5444_v11, %v5446_v10  ;;  %v5448_v14 = vsel %vm333_vm6, %v5446_v10, %v5444_v11  ;;  %v5654_v15 = vld [vmem:[#allocation3 + $0x18] sm:$0xff]  ;;  %v5653_v20 = vld [vmem:[#allocation3 + $0x10] sm:$0xff] }
0x11af   :  { %5401 = vst.msk [vmem:[#allocation3 + $0x1] ss:$8 sm:$0x3] %vm6292_vm0, %v5399_v60  ;;  %v5432_v21 = vrot.slane %v5425_v59, %v6448_v46  ;;  %v5461_v16 = vmul.f32 %v5454_v0, %v5448_v14  ;;  %v5462_v22 = vmul.f32 %v5458_v8, %v5447_v12  ;;  %5695 = vmatprep.subr.mxu0 %v5654_v15  ;;  %v5288_v8 = vpop.f32.mrf.mxu1 }
0x11b0   :  { %5696 = vmatpush1.msra.mxu0 %v5653_v20 }
0x11b1   :  { %v5439_v17 = vrot.slane %v5432_v21, %v6448_v46  ;;  %v5465_v41 = vcombine.low %v5461_v16, %v5462_v22  ;;  %v5490_v34 = vpop.permute.xlu1 %5489  ;;  %v5488_v42 = vpop.permute.xlu0 %5487 }
0x11b2   :  { %v5491_v18 = vsel %vm382_vm7, %v5488_v42, %v5490_v34  ;;  %v5492_v44 = vsel %vm382_vm7, %v5490_v34, %v5488_v42  ;;  %v5290_v9 = vpop.f32.mrf.mxu1 }
0x11b3   :  { %5441 = vst.msk [vmem:[#allocation3 + $0x2] ss:$8 sm:$0x3] %vm6292_vm0, %v5439_v17  ;;  %v5472_v28 = vrot.slane %v5465_v41, %v6448_v46  ;;  %v5505_v30 = vmul.f32 %v5498_v13, %v5491_v18  ;;  %v5506_v24 = vmul.f32 %v5502_v27, %v5492_v44 }
0x11b4   :  { %v5294_v60 = vpop.f32.mrf.mxu1 }
0x11b5   :  { %v5479_v38 = vrot.slane %v5472_v28, %v6448_v46  ;;  %v5509_v25 = vcombine.low %v5505_v30, %v5506_v24  ;;  %v5530_v39 = vpop.permute.xlu1 %5529  ;;  %v5528_v26 = vpop.permute.xlu0 %5527 }
0x11b6   :  { %v5531_v40 = vsel %vm425_vm8, %v5528_v26, %v5530_v39  ;;  %v5532_v48 = vsel %vm425_vm8, %v5530_v39, %v5528_v26  ;;  %v5296_v59 = vpop.f32.mrf.mxu1 }
0x11b7   :  { %5481 = vst.msk [vmem:[#allocation3 + $0x3] ss:$8 sm:$0x3] %vm6292_vm0, %v5479_v38  ;;  %v5516_v49 = vrot.slane %v5509_v25, %v6448_v46  ;;  %v5545_v47 = vmul.f32 %v5538_v37, %v5531_v40  ;;  %v5546_v50 = vmul.f32 %v5542_v31, %v5532_v48 }
0x11b9   :  { %v5523_v52 = vrot.slane %v5516_v49, %v6448_v46  ;;  %v5549_v54 = vcombine.low %v5545_v47, %v5546_v50  ;;  %v5570_v55 = vpop.permute.xlu1 %5569  ;;  %v5568_v23 = vpop.permute.xlu0 %5567 }
0x11ba   :  { %v5571_v53 = vsel %vm468_vm9, %v5568_v23, %v5570_v55  ;;  %v5572_v61 = vsel %vm468_vm9, %v5570_v55, %v5568_v23 }
0x11bb   :  { %5525 = vst.msk [vmem:[#allocation3 + $0x5] ss:$8 sm:$0x3] %vm6292_vm0, %v5523_v52  ;;  %v5556_v57 = vrot.slane %v5549_v54, %v6448_v46  ;;  %v5585_v62 = vmul.f32 %v5578_v45, %v5571_v53  ;;  %v5586_v63 = vmul.f32 %v5582_v51, %v5572_v61 }
0x11bd   :  { %v5563_v5 = vrot.slane %v5556_v57, %v6448_v46  ;;  %v5589_v0 = vcombine.low %v5585_v62, %v5586_v63 }
0x11bf   :  { %5565 = vst.msk [vmem:[#allocation3 + $0x6] ss:$8 sm:$0x3] %vm6292_vm0, %v5563_v5  ;;  %v5596_v58 = vrot.slane %v5589_v0, %v6448_v46 }
0x11c1   :  { %v5603_v6 = vrot.slane %v5596_v58, %v6448_v46 }
0x11c3   :  { %5605 = vst.msk [vmem:[#allocation3 + $0x7] ss:$8 sm:$0x3] %vm6292_vm0, %v5603_v6 }
0x11c6   :  { %v5208_v15 = vpop.permute.xlu0 %5207  ;;  %v5203_v13 = vpop.permute.xlu1 %5202 }
0x11ca   :  { %v5652_v35 = vld [vmem:[#allocation3 + $0x8] sm:$0xff]  ;;  %v5651_v7 = vld [vmem:[#allocation3] sm:$0xff]  ;;  %v5198_v22 = vpop.permute.xlu0 %5197  ;;  %v5193_v41 = vpop.permute.xlu1 %5192 }
0x11cb   :  { %5697 = vmatprep.subr.mxu0 %v5652_v35  ;;  %v5297_v18 = vadd.f32 %v5296_v59, %v5198_v22  ;;  %v5295_v28 = vadd.f32 %v5294_v60, %v5198_v22  ;;  %v5291_v24 = vadd.f32 %v5290_v9, %v5193_v41  ;;  %v5289_v38 = vadd.f32 %v5288_v8, %v5193_v41 }
0x11cc   :  { %5698 = vmatpush1.msra.mxu0 %v5651_v7 }
0x11cd   :  { %6142 = vmatmul.mubr.msk.f32.vlgmr.msra.gmra.mxu0 %vm558_vm10, %v7994_v36  ;;  %v5300_v36 = vpop.f32.mrf.mxu1 }
0x11ce   :  { %5737 = vmatprep.mubr.f32.mxu0 %v6234_v1  ;;  %v5301_v17 = vadd.f32 %v5300_v36, %v5203_v13  ;;  %v5777_v52 = vpop.permute.xlu0 %5776 }
0x11cf   :  { %v5302_v11 = vpop.f32.mrf.mxu1 }
0x11d1   :  { %6143 = vmatmul.mubr.msk.f32.gmra.mxu0 %vm558_vm10, %v8002_v19  ;;  %v5306_v19 = vpop.f32.mrf.mxu1 }
0x11d2   :  { %5743 = vmatprep.mubr.f32.mxu0 %v6234_v1 }
0x11d5   :  { %6144 = vmatmul.mubr.msk.f32.gmra.mxu0 %vm558_vm10, %v8010_v43  ;;  %v5308_v43 = vpop.f32.mrf.mxu1 }
0x11d6   :  { %5749 = vmatprep.mubr.f32.mxu0 %v6234_v1  ;;  %v5307_v1 = vadd.f32 %v5306_v19, %v5208_v15  ;;  %v5309_v33 = vadd.f32 %v5308_v43, %v5208_v15 }
0x11d9   :  { %6145 = vmatmul.mubr.msk.f32.gmra.mxu0 %vm558_vm10, %v8018_v56  ;;  %v5303_v56 = vadd.f32 %v5302_v11, %v5203_v13 }
0x128d   :  { %v5733_v10 = vpop.f32.mrf.mxu0 }
0x128e   :  { %v5756_v48 = vadd.f32 %v5733_v10, %v5289_v38 }
0x128f   :  { %v5735_v12 = vpop.f32.mrf.mxu0 }
0x1290   :  { %v5757_v26 = vadd.f32 %v5735_v12, %v5291_v24  ;;  %v5764_v51 = vmax.f32 %v5756_v48, 0.0 }
0x1291   :  { %v5739_v14 = vpop.f32.mrf.mxu0 }
0x1292   :  { %v5758_v25 = vadd.f32 %v5739_v14, %v5295_v28  ;;  %v5765_v50 = vmax.f32 %v5757_v26, 0.0 }
0x1293   :  { %v5741_v20 = vpop.f32.mrf.mxu0 }
0x1294   :  { %v5759_v31 = vadd.f32 %v5741_v20, %v5297_v18  ;;  %v5766_v47 = vmax.f32 %v5758_v25, 0.0 }
0x1295   :  { %v5745_v21 = vpop.f32.mrf.mxu0 }
0x1296   :  { %v5760_v30 = vadd.f32 %v5745_v21, %v5301_v17  ;;  %v5767_v49 = vmax.f32 %v5759_v31, 0.0 }
0x1297   :  { %v5747_v16 = vpop.f32.mrf.mxu0 }
0x1298   :  { %v5761_v44 = vadd.f32 %v5747_v16, %v5303_v56  ;;  %v5768_v45 = vmax.f32 %v5760_v30, 0.0 }
0x1299   :  { %v5751_v27 = vpop.f32.mrf.mxu0 }
0x129a   :  { %v5762_v34 = vadd.f32 %v5751_v27, %v5307_v1  ;;  %v5769_v40 = vmax.f32 %v5761_v44, 0.0 }
0x129b   :  { %v5753_v42 = vpop.f32.mrf.mxu0 }
0x129c   :  { %v5763_v37 = vadd.f32 %v5753_v42, %v5309_v33  ;;  %v5770_v39 = vmax.f32 %v5762_v34, 0.0 }
0x129e   :  { %v5771_v32 = vmax.f32 %v5763_v37, 0.0 }
0x12a0   :  { %5806 = vmatprep.subr.mxu1 %v5771_v32 }
0x12a1   :  { %5807 = vmatpush1.msra.mxu1 %v5770_v39 }
0x12a2   :  { %5808 = vmatprep.subr.mxu1 %v5769_v40 }
0x12a3   :  { %5809 = vmatpush1.msra.mxu1 %v5768_v45 }
0x12a4   :  { %5810 = vmatprep.subr.mxu1 %v5767_v49 }
0x12a5   :  { %5811 = vmatpush1.msra.mxu1 %v5766_v47 }
0x12a6   :  { %5812 = vmatprep.subr.mxu1 %v5765_v50 }
0x12a7   :  { %5813 = vmatpush1.msra.mxu1 %v5764_v51 }
0x12a8   :  { %6146 = vmatmul.mubr.msk.f32.vlgmr.msra.gmra.mxu1 %vm683_vm11, %v8056_v29 }
0x1368   :  { %v5848_v54 = vpop.f32.mrf.mxu1 }
0x1369   :  { %v5849_v55 = vadd.f32 %v5848_v54, %v5777_v52 }
0x136a   :  { %v5850_v23 = vpop.f32.mrf.mxu1 }
0x136b   :  { %v6147_v53 = vmul.f32 -1.442695, %v5849_v55  ;;  %v5851_v61 = vadd.f32 %v5850_v23, %v5777_v52 }
0x136d   :  { %6220 = vpow2.f32 %v6147_v53  ;;  %v6148_v57 = vmul.f32 -1.442695, %v5851_v61 }
0x136f   :  { %6222 = vpow2.f32 %v6148_v57 }
0x137a   :  { %v6221_v62 = vpop.eup %6220 }
0x137b   :  { %v5859_v63 = vadd.f32 1.0, %v6221_v62 }
0x137c   :  { %v6223_v5 = vpop.eup %6222 }
0x137d   :  { %6224 = vrcp.f32 %v5859_v63  ;;  %v5860_v0 = vadd.f32 1.0, %v6223_v5 }
0x137f   :  { %6226 = vrcp.f32 %v5860_v0 }
0x138a   :  { %v6225_v58 = vpop.eup %6224 }
0x138b   :  { %v5868_v6 = vrot.slane %v6225_v58, %v6303_v4 }
0x138c   :  { %v6227_v35 = vpop.eup %6226 }
0x138d   :  { %v5873_v29 = vsel %vm41_vm12, %v5868_v6, %v5849_v55  ;;  %v5872_v7 = vrot.slane %v6227_v35, %v6303_v4  ;;  %v5880_v8 = vcombine.low %v6225_v58, %v6227_v35 }
0x138e   :  { %6149 = vst [vmem:[%s8281_s7 + $0x70] sm:$0xff] %v5873_v29 }
0x138f   :  { %v5874_v9 = vsel %vm41_vm12, %v5872_v7, %v5851_v61  ;;  %v5887_v60 = vrot.slane %v5880_v8, %v6448_v46 }
0x1390   :  { %6150 = vst [vmem:[%s8281_s7 + $0x78] sm:$0xff] %v5874_v9 }
0x1391   :  { %v5894_v59 = vrot.slane %v5887_v60, %v6448_v46 }
0x1393   :  { %5896 = vst.msk [vmem:[#allocation2] sm:$0x3] %vm6292_vm0, %v5894_v59 }

</bundles_post_ra>
